<compile_context>
chip_gen: v5e
topology: v5e:2x2
jax: 0.10.0
libtpu: 0.0.40
codegen_flags: <defaults>
</compile_context>

<pallas_src>
import jax
import jax.numpy as jnp
from jax import lax
from jax.experimental import pallas as pl
from jax.experimental.pallas import tpu as pltpu

HIDDEN1 = 512
HIDDEN2 = 256
LEAKY_SLOPE = 0.2


def _round_up(n, m):
    return ((n + m - 1) // m) * m


def _choose_tb(B, D):
    """Batch row tile: large enough to amortize grid-step overhead, small enough
    to keep >=2 grid steps (v7x megacore) and the x tile inside scoped VMEM."""
    half = _round_up(max(pl.cdiv(B, 2), 1), 256)
    tb = max(256, min(2048, half))
    # Double-buffered f32 x tile budget ~8 MiB (v5e scoped default is 16 MiB).
    while tb > 256 and tb * D * 4 * 2 > 8 * 1024 * 1024:
        tb //= 2
    return tb


def _discriminator_kernel(x_ref, w1_ref, b1_ref, w2_ref, b2_ref, w3_ref, b3_ref, o_ref):
    # x_ref: (TB, D) f32 -> cast to bf16 for the MXU; accumulate in f32.
    x = x_ref[...].astype(jnp.bfloat16)

    h1 = jnp.dot(x, w1_ref[...], preferred_element_type=jnp.float32) + b1_ref[...]
    h1 = jnp.where(h1 > 0, h1, LEAKY_SLOPE * h1)

    h2 = jnp.dot(h1.astype(jnp.bfloat16), w2_ref[...],
                 preferred_element_type=jnp.float32) + b2_ref[...]
    h2 = jnp.where(h2 > 0, h2, LEAKY_SLOPE * h2)

    # Final layer (N=1) as an NT dot: (1,256) . (TB,256)^T -> (1, TB).
    # Batch lands in the lane dim -> lane-dense, unmasked stores.
    logits = lax.dot_general(
        w3_ref[...], h2.astype(jnp.bfloat16),
        dimension_numbers=(((1,), (1,)), ((), ())),
        preferred_element_type=jnp.float32) + b3_ref[...]

    o_ref[...] = jax.nn.sigmoid(logits).astype(o_ref.dtype)


def discriminator_forward(x, params):
    """x: (B, input_dim) float32. Returns (B, 1) float32 probabilities."""
    w1, b1, w2, b2, w3, b3 = params
    B, D = x.shape

    tb = _choose_tb(B, D)
    grid = pl.cdiv(B, tb)
    Bp = grid * tb  # padded logit row; extra lanes are garbage and sliced off

    # One-time tiny weight casts / reshapes (no copy of x).
    w1_bf = w1.astype(jnp.bfloat16)                       # (D, 512)
    w2_bf = w2.astype(jnp.bfloat16)                       # (512, 256)
    w3_row = w3.reshape(1, HIDDEN2).astype(jnp.bfloat16)  # (1, 256)
    b1_2d = b1.reshape(1, HIDDEN1).astype(jnp.float32)
    b2_2d = b2.reshape(1, HIDDEN2).astype(jnp.float32)
    b3_2d = b3.reshape(1, 1).astype(jnp.float32)

    const = lambda shape: pl.BlockSpec(shape, lambda i: (0, 0))  # VMEM-resident

    out = pl.pallas_call(
        _discriminator_kernel,
        out_shape=jax.ShapeDtypeStruct((1, Bp), jnp.float32),
        grid=(grid,),
        in_specs=[
            pl.BlockSpec((tb, D), lambda i: (i, 0)),         # x tile (D = full last dim)
            const((D, HIDDEN1)), const((1, HIDDEN1)),        # layer-1 weights/bias
            const((HIDDEN1, HIDDEN2)), const((1, HIDDEN2)),  # layer-2 weights/bias
            const((1, HIDDEN2)), const((1, 1)),              # layer-3 row + bias
        ],
        out_specs=pl.BlockSpec((1, tb), lambda i: (0, i)),   # lane-packed logit row
        compiler_params=pltpu.CompilerParams(dimension_semantics=("parallel",)),
    )(x, w1_bf, b1_2d, w2_bf, b2_2d, w3_row, b3_2d)

    return out[0, :B].reshape(B, 1)


def init_params(key, input_dim):
    """PyTorch-style nn.Linear default init (uniform +/- 1/sqrt(fan_in)).

    Weights are stored as (in_features, out_features) so the kernel computes x @ W + b.
    Biases are kept 2-D (1, out) for TPU-friendly layout.
    """
    ks = jax.random.split(key, 6)

    def lin(kw, kb, fan_in, fan_out):
        bound = 1.0 / jnp.sqrt(jnp.asarray(fan_in, jnp.float32))
        w = jax.random.uniform(kw, (fan_in, fan_out), jnp.float32, -bound, bound)
        b = jax.random.uniform(kb, (1, fan_out), jnp.float32, -bound, bound)
        return w, b

    w1, b1 = lin(ks[0], ks[1], input_dim, HIDDEN1)
    w2, b2 = lin(ks[2], ks[3], HIDDEN1, HIDDEN2)
    w3, b3 = lin(ks[4], ks[5], HIDDEN2, 1)
    return (w1, b1, w2, b2, w3, b3)


def _reference_forward(x, params):
    w1, b1, w2, b2, w3, b3 = params
    h1 = x @ w1 + b1
    h1 = jnp.where(h1 > 0, h1, LEAKY_SLOPE * h1)
    h2 = h1 @ w2 + b2
    h2 = jnp.where(h2 > 0, h2, LEAKY_SLOPE * h2)
    return jax.nn.sigmoid(h2 @ w3 + b3)


if __name__ == "__main__":
    key = jax.random.PRNGKey(0)
    k_param, k_x = jax.random.split(key)

    batch = 8
    input_dim = 64  # small "flattened image" dimension consistent with nn.Linear(input_dim, 512)

    params = init_params(k_param, input_dim)
    x = jax.random.normal(k_x, (batch, input_dim), jnp.float32)

    out = discriminator_forward(x, params)
    out = jax.block_until_ready(out)

    ref = _reference_forward(x, params)  # full-f32 reference
    assert out.shape == (batch, 1), out.shape
    # bf16 MXU inputs with f32 accumulation -> loosen tolerance vs. the f32 reference.
    assert jnp.allclose(out, ref, atol=2e-2, rtol=2e-2), "mismatch vs JAX reference"

    print("KERNEL_OK")
</pallas_src>

<mosaic_0001>
module attributes {stable_mosaic.version = 11 : i64} {
  func.func @_discriminator_kernel(%arg0: i32, %arg1: memref<256x64xf32, #tpu.memory_space<vmem>>, %arg2: memref<64x512xbf16, #tpu.memory_space<vmem>>, %arg3: memref<1x512xf32, #tpu.memory_space<vmem>>, %arg4: memref<512x256xbf16, #tpu.memory_space<vmem>>, %arg5: memref<1x256xf32, #tpu.memory_space<vmem>>, %arg6: memref<1x256xbf16, #tpu.memory_space<vmem>>, %arg7: memref<1x1xf32, #tpu.memory_space<vmem>>, %arg8: memref<1x256xf32, #tpu.memory_space<vmem>>) attributes {dimension_semantics = [#tpu.dimension_semantics<parallel>], iteration_bounds = array<i64: 1>, scalar_prefetch = 0 : i64, scratch_operands = 0 : i64, tpu.core_type = #tpu.core_type<tc>, window_params = [{transform_indices = @transform_0, window_bounds = array<i64: 256, 64>}, {pipeline_mode = #tpu.pipeline_mode<synchronous>, transform_indices = @transform_1, window_bounds = array<i64: 64, 512>}, {pipeline_mode = #tpu.pipeline_mode<synchronous>, transform_indices = @transform_2, window_bounds = array<i64: 1, 512>}, {pipeline_mode = #tpu.pipeline_mode<synchronous>, transform_indices = @transform_3, window_bounds = array<i64: 512, 256>}, {pipeline_mode = #tpu.pipeline_mode<synchronous>, transform_indices = @transform_4, window_bounds = array<i64: 1, 256>}, {pipeline_mode = #tpu.pipeline_mode<synchronous>, transform_indices = @transform_5, window_bounds = array<i64: 1, 256>}, {pipeline_mode = #tpu.pipeline_mode<synchronous>, transform_indices = @transform_6, window_bounds = array<i64: 1, 1>}, {transform_indices = @transform_7, window_bounds = array<i64: 1, 256>}]} {
    %c0 = arith.constant 0 : index
    %c0_0 = arith.constant 0 : index
    %0 = vector.load %arg1[%c0, %c0_0] : memref<256x64xf32, #tpu.memory_space<vmem>>, vector<256x64xf32>
    %1 = arith.truncf %0 : vector<256x64xf32> to vector<256x64xbf16>
    %c0_1 = arith.constant 0 : index
    %c0_2 = arith.constant 0 : index
    %2 = vector.load %arg2[%c0_1, %c0_2] : memref<64x512xbf16, #tpu.memory_space<vmem>>, vector<64x512xbf16>
    %cst = arith.constant dense<0.000000e+00> : vector<256x512xf32>
    %3 = tpu.matmul %1, %2, %cst {dimension_numbers = #tpu.dot_dimension_numbers<[1], [0], [0], [1], [0, 0, 1, 1], [], []>} : vector<256x64xbf16>, vector<64x512xbf16>, vector<256x512xf32> -> vector<256x512xf32>
    %c0_3 = arith.constant 0 : index
    %c0_4 = arith.constant 0 : index
    %4 = vector.load %arg3[%c0_3, %c0_4] : memref<1x512xf32, #tpu.memory_space<vmem>>, vector<1x512xf32>
    %5 = vector.broadcast %4 : vector<1x512xf32> to vector<256x512xf32>
    %6 = arith.addf %3, %5 : vector<256x512xf32>
    %cst_5 = arith.constant 0.000000e+00 : f32
    %7 = vector.broadcast %cst_5 : f32 to vector<256x512xf32>
    %8 = arith.cmpf ogt, %6, %7 : vector<256x512xf32>
    %cst_6 = arith.constant 2.000000e-01 : f32
    %9 = vector.broadcast %cst_6 : f32 to vector<256x512xf32>
    %10 = arith.mulf %9, %6 : vector<256x512xf32>
    %11 = arith.select %8, %6, %10 : vector<256x512xi1>, vector<256x512xf32>
    %12 = arith.truncf %11 : vector<256x512xf32> to vector<256x512xbf16>
    %c0_7 = arith.constant 0 : index
    %c0_8 = arith.constant 0 : index
    %13 = vector.load %arg4[%c0_7, %c0_8] : memref<512x256xbf16, #tpu.memory_space<vmem>>, vector<512x256xbf16>
    %cst_9 = arith.constant dense<0.000000e+00> : vector<256x256xf32>
    %14 = tpu.matmul %12, %13, %cst_9 {dimension_numbers = #tpu.dot_dimension_numbers<[1], [0], [0], [1], [0, 0, 1, 1], [], []>} : vector<256x512xbf16>, vector<512x256xbf16>, vector<256x256xf32> -> vector<256x256xf32>
    %c0_10 = arith.constant 0 : index
    %c0_11 = arith.constant 0 : index
    %15 = vector.load %arg5[%c0_10, %c0_11] : memref<1x256xf32, #tpu.memory_space<vmem>>, vector<1x256xf32>
    %16 = vector.broadcast %15 : vector<1x256xf32> to vector<256x256xf32>
    %17 = arith.addf %14, %16 : vector<256x256xf32>
    %cst_12 = arith.constant 0.000000e+00 : f32
    %18 = vector.broadcast %cst_12 : f32 to vector<256x256xf32>
    %19 = arith.cmpf ogt, %17, %18 : vector<256x256xf32>
    %cst_13 = arith.constant 2.000000e-01 : f32
    %20 = vector.broadcast %cst_13 : f32 to vector<256x256xf32>
    %21 = arith.mulf %20, %17 : vector<256x256xf32>
    %22 = arith.select %19, %17, %21 : vector<256x256xi1>, vector<256x256xf32>
    %c0_14 = arith.constant 0 : index
    %c0_15 = arith.constant 0 : index
    %23 = vector.load %arg6[%c0_14, %c0_15] : memref<1x256xbf16, #tpu.memory_space<vmem>>, vector<1x256xbf16>
    %24 = arith.truncf %22 : vector<256x256xf32> to vector<256x256xbf16>
    %cst_16 = arith.constant dense<0.000000e+00> : vector<1x256xf32>
    %25 = tpu.matmul %23, %24, %cst_16 {dimension_numbers = #tpu.dot_dimension_numbers<[1], [1], [0], [0], [0, 0, 1, 0], [], []>} : vector<1x256xbf16>, vector<256x256xbf16>, vector<1x256xf32> -> vector<1x256xf32>
    %c0_17 = arith.constant 0 : index
    %c0_18 = arith.constant 0 : index
    %26 = vector.load %arg7[%c0_17, %c0_18] : memref<1x1xf32, #tpu.memory_space<vmem>>, vector<1x1xf32>
    %27 = vector.broadcast %26 : vector<1x1xf32> to vector<1x256xf32>
    %28 = arith.addf %25, %27 : vector<1x256xf32>
    %29 = arith.negf %28 : vector<1x256xf32>
    %30 = math.exp %29 : vector<1x256xf32>
    %cst_19 = arith.constant 1.000000e+00 : f32
    %31 = vector.broadcast %cst_19 : f32 to vector<1x256xf32>
    %32 = arith.addf %31, %30 : vector<1x256xf32>
    %33 = arith.divf %31, %32 : vector<1x256xf32>
    %c0_20 = arith.constant 0 : index
    %c0_21 = arith.constant 0 : index
    %34 = vector.load %arg8[%c0_20, %c0_21] : memref<1x256xf32, #tpu.memory_space<vmem>>, vector<1x256xf32>
    tpu.vector_store %arg8[%c0_20, %c0_21], %33 {strides = array<i32>} : memref<1x256xf32, #tpu.memory_space<vmem>>, vector<1x256xf32>,
    return
  }
  func.func @transform_0(%arg0: i32) -> (i32, i32) {
    %c0_i32 = arith.constant 0 : i32
    %c0_i32_0 = arith.constant 0 : i32
    return %arg0, %c0_i32 : i32, i32
  }
  func.func @transform_1(%arg0: i32) -> (i32, i32) {
    %c0_i32 = arith.constant 0 : i32
    %c0_i32_0 = arith.constant 0 : i32
    %c0_i32_1 = arith.constant 0 : i32
    return %c0_i32, %c0_i32_0 : i32, i32
  }
  func.func @transform_2(%arg0: i32) -> (i32, i32) {
    %c0_i32 = arith.constant 0 : i32
    %c0_i32_0 = arith.constant 0 : i32
    %c0_i32_1 = arith.constant 0 : i32
    return %c0_i32, %c0_i32_0 : i32, i32
  }
  func.func @transform_3(%arg0: i32) -> (i32, i32) {
    %c0_i32 = arith.constant 0 : i32
    %c0_i32_0 = arith.constant 0 : i32
    %c0_i32_1 = arith.constant 0 : i32
    return %c0_i32, %c0_i32_0 : i32, i32
  }
  func.func @transform_4(%arg0: i32) -> (i32, i32) {
    %c0_i32 = arith.constant 0 : i32
    %c0_i32_0 = arith.constant 0 : i32
    %c0_i32_1 = arith.constant 0 : i32
    return %c0_i32, %c0_i32_0 : i32, i32
  }
  func.func @transform_5(%arg0: i32) -> (i32, i32) {
    %c0_i32 = arith.constant 0 : i32
    %c0_i32_0 = arith.constant 0 : i32
    %c0_i32_1 = arith.constant 0 : i32
    return %c0_i32, %c0_i32_0 : i32, i32
  }
  func.func @transform_6(%arg0: i32) -> (i32, i32) {
    %c0_i32 = arith.constant 0 : i32
    %c0_i32_0 = arith.constant 0 : i32
    %c0_i32_1 = arith.constant 0 : i32
    return %c0_i32, %c0_i32_0 : i32, i32
  }
  func.func @transform_7(%arg0: i32) -> (i32, i32) {
    %c0_i32 = arith.constant 0 : i32
    %c0_i32_0 = arith.constant 0 : i32
    return %c0_i32, %arg0 : i32, i32
  }
}

</mosaic_0001>

<bundles_post_ra>
// kernel: tpu_custom_call.1
= control target key start
LH: loop header
LB: loop body
LE: loop exit
PB: predicated region body
PF: predicated region fallthrough
CT: control target
= control target key end

     0   :  { %s4091_s0 = inlined_call_operand.hbm [shape: f32[8,64], index: 0, kind: input, shape index: {}]   ;;  %s4092_s1 = inlined_call_operand.hbm [shape: bf16[64,512], index: 1, kind: input, shape index: {}]   ;;  %s4093_s2 = inlined_call_operand.hbm [shape: f32[1,512], index: 2, kind: input, shape index: {}]   ;;  %s4094_s3 = inlined_call_operand.hbm [shape: bf16[512,256], index: 3, kind: input, shape index: {}]   ;;  %s4095_s4 = inlined_call_operand.vmem [shape: f32[1,256], index: 4, kind: input, shape index: {}]   ;;  %s4096_s5 = inlined_call_operand.vmem [shape: bf16[1,256], index: 5, kind: input, shape index: {}]   ;;  %s4097_s6 = inlined_call_operand.<no memory space> [shape: f32[1,1], index: 6, kind: input, shape index: {}]   ;;  %s4098_s7 = inlined_call_operand.hbm [shape: f32[1,256], index: 7, kind: output, shape index: {}]  }
   0x1   :  { %v12_v0 = vstv %s4097_s6 }
   0x2   :  { %13 = vst [vmem:[#allocation2] sm:$0x1] %v12_v0 }
   0x3   :  { %14 = vsyncpa [#allocation4], 0 }
   0x4   :  { %15 = vsyncpa [#allocation7], 0 }
   0x5   :  { %16 = vsyncpa [#allocation10], 0 }
   0x6   :  { %17 = vsyncpa [#allocation5], 0  ;;  %s35_s28 = sshll.u32 %s4092_s1, 4  ;;  %s36_s28 = int_to_ptr.hbm [resolvable:$true] %s35_s28 }
   0x7   :  { %21 = vsyncadd [#allocation4], 3968  ;;  %s3172_s29 = smov [#allocation6]   ;;  %s22_s10 = sshll.u32 %s4091_s0, 4  ;;  %s23_s10 = int_to_ptr.hbm [resolvable:$true] %s22_s10 }
   0x8   :  { %s37_s30 = sshll.u32 %s3172_s29, 4  ;;  %s3173_s11 = smov 256   ;;  %s38_s30 = int_to_ptr.vmem [resolvable:$true] %s37_s30 }
   0x9   :  { %s3174_s6 = smov 16   ;;  %s3175_s12 = smov [#allocation3]  }
   0xa   :  { %43 = dma.hbm_to_vmem [thread:$0]  %s36_s28, 2048, %s38_s30, [#allocation7], %s3173_s11, %s3173_s11, %s3174_s6  }
   0xb   :  { %s24_s13 = sshll.u32 %s3175_s12, 4  ;;  %s3176_s14 = smov 128   ;;  %s25_s13 = int_to_ptr.vmem [resolvable:$true] %s24_s13 }
   0xc   :  { %s3177_s15 = smov 8   ;;  %s49_s17 = sshll.u32 %s4093_s2, 4  ;;  %s50_s17 = int_to_ptr.hbm [resolvable:$true] %s49_s17 }
   0xd   :  { %30 = dma.hbm_to_vmem [thread:$0]  %s23_s10, 128, %s25_s13, [#allocation4], %s3176_s14, %s3176_s14, %s3177_s15  }
   0xe   :  { %s3178_s18 = smov [#allocation8]   ;;  %s59_s21 = sshll.u32 %s4094_s3, 4  ;;  %s60_s21 = int_to_ptr.hbm [resolvable:$true] %s59_s21 }
   0xf   :  { %s51_s19 = sshll.u32 %s3178_s18, 4  ;;  %s3179_s22 = smov [#allocation9]   ;;  %s52_s19 = int_to_ptr.vmem [resolvable:$true] %s51_s19 }
  0x10   :  { %54 = dma.hbm_to_vmem [thread:$0]  %s50_s17, 64, %s52_s19, [#allocation7]  }
  0x11   :  { %s61_s23 = sshll.u32 %s3179_s22, 4  ;;  %s62_s23 = int_to_ptr.vmem [resolvable:$true] %s61_s23 }
  0x12   :  { %67 = dma.hbm_to_vmem [thread:$0]  %s60_s21, 8192, %s62_s23, [#allocation10], %s3176_s14, %s3176_s14, %s3177_s15  }
  0x13   :  { %3164 = dma.done.wait [#allocation4], 4096  }
  0x14   :  { %3165 = vsyncadd [#allocation4], 4294963200 }
  0x15   :  { %3166 = dma.done.wait [#allocation7], 2112  }
  0x16   :  { %3167 = vsyncadd [#allocation7], 4294965184 }
  0x17   :  { %3168 = dma.done.wait [#allocation10], 8192  }
  0x18   :  { %3169 = vsyncadd [#allocation10], 4294959104  ;;  %v2608_v1 = vld [vmem:[#allocation6 + $0x60] sm:$0xf]  ;;  %v2958_v2 = vld [vmem:[#allocation6 + $0x6c] sm:$0xf0] }
  0x19   :  { %v2956_v3 = vld [vmem:[#allocation6 + $0x64] sm:$0xf]  ;;  %v2609_v4 = vor.u32 %v2958_v2, %v2608_v1  ;;  %v2610_v5 = vld [vmem:[#allocation6 + $0x70] sm:$0xf0]  ;;  %v2616_v6 = vld [vmem:[#allocation6 + $0x68] sm:$0xf] }
  0x1a   :  { %v2959_v7 = vld [vmem:[#allocation6 + $0x74] sm:$0xf0]  ;;  %v2613_v8 = vor.u32 %v2956_v3, %v2610_v5  ;;  %v2957_v10 = vld [vmem:[#allocation6 + $0x6c] sm:$0xf]  ;;  %v2618_v11 = vld [vmem:[#allocation6 + $0x78] sm:$0xf0] }
  0x1b   :  { %v2617_v9 = vor.u32 %v2959_v7, %v2616_v6  ;;  %v2592_v12 = vld [vmem:[#allocation6 + $0x40] sm:$0xf]  ;;  %298 = vmatpush.bf16.msra.mxu0 %v2609_v4  ;;  %v2621_v13 = vor.u32 %v2957_v10, %v2618_v11  ;;  %v2954_v14 = vld [vmem:[#allocation6 + $0x4c] sm:$0xf0]  ;;  %v2952_v15 = vld [vmem:[#allocation6 + $0x44] sm:$0xf] }
  0x1c   :  { %v2594_v16 = vld [vmem:[#allocation6 + $0x50] sm:$0xf0]  ;;  %387 = vmatpush.bf16.msra.mxu1 %v2613_v8  ;;  %v2593_v17 = vor.u32 %v2954_v14, %v2592_v12  ;;  %v2600_v19 = vld [vmem:[#allocation6 + $0x48] sm:$0xf]  ;;  %v2955_v20 = vld [vmem:[#allocation6 + $0x54] sm:$0xf0] }
  0x1d   :  { %476 = vmatpush.bf16.msra.mxu2 %v2617_v9  ;;  %v2597_v18 = vor.u32 %v2952_v15, %v2594_v16  ;;  %v2953_v21 = vld [vmem:[#allocation6 + $0x4c] sm:$0xf]  ;;  %565 = vmatpush.bf16.msra.mxu3 %v2621_v13  ;;  %v2601_v22 = vor.u32 %v2955_v20, %v2600_v19  ;;  %v2602_v23 = vld [vmem:[#allocation6 + $0x58] sm:$0xf0]  ;;  %v2576_v24 = vld [vmem:[#allocation6 + $0x20] sm:$0xf] }
  0x1e   :  { %v2950_v25 = vld [vmem:[#allocation6 + $0x2c] sm:$0xf0]  ;;  %v2605_v26 = vor.u32 %v2953_v21, %v2602_v23  ;;  %v2948_v27 = vld [vmem:[#allocation6 + $0x24] sm:$0xf]  ;;  %v2578_v28 = vld [vmem:[#allocation6 + $0x30] sm:$0xf0] }
  0x1f   :  { %v2584_v29 = vld [vmem:[#allocation6 + $0x28] sm:$0xf]  ;;  %299 = vmatpush.bf16.msra.mxu0 %v2593_v17  ;;  %v2577_v30 = vor.u32 %v2950_v25, %v2576_v24  ;;  %v2951_v31 = vld [vmem:[#allocation6 + $0x34] sm:$0xf0]  ;;  %v2949_v32 = vld [vmem:[#allocation6 + $0x2c] sm:$0xf]  ;;  %v2581_v34 = vor.u32 %v2948_v27, %v2578_v28 }
  0x20   :  { %v2586_v33 = vld [vmem:[#allocation6 + $0x38] sm:$0xf0]  ;;  %388 = vmatpush.bf16.msra.mxu1 %v2597_v18  ;;  %v2585_v35 = vor.u32 %v2951_v31, %v2584_v29  ;;  %v2560_v36 = vld [vmem:[#allocation6] sm:$0xf]  ;;  %v2946_v37 = vld [vmem:[#allocation6 + $0xc] sm:$0xf0] }
  0x21   :  { %477 = vmatpush.bf16.msra.mxu2 %v2601_v22  ;;  %v2944_v38 = vld [vmem:[#allocation6 + $0x4] sm:$0xf]  ;;  %566 = vmatpush.bf16.msra.mxu3 %v2605_v26  ;;  %v2589_v39 = vor.u32 %v2949_v32, %v2586_v33  ;;  %v2562_v40 = vld [vmem:[#allocation6 + $0x10] sm:$0xf0]  ;;  %v2568_v41 = vld [vmem:[#allocation6 + $0x8] sm:$0xf]  ;;  %v2561_v45 = vor.u32 %v2946_v37, %v2560_v36 }
  0x22   :  { %v2947_v42 = vld [vmem:[#allocation6 + $0x14] sm:$0xf0]  ;;  %v2945_v43 = vld [vmem:[#allocation6 + $0xc] sm:$0xf]  ;;  %v2570_v44 = vld [vmem:[#allocation6 + $0x18] sm:$0xf0]  ;;  %v2565_v48 = vor.u32 %v2944_v38, %v2562_v40 }
  0x23   :  { %300 = vmatpush.bf16.msra.mxu0 %v2577_v30  ;;  %v91_v46 = vld [vmem:[#allocation3] sm:$0xff]  ;;  %v92_v47 = vld [vmem:[#allocation3 + $0x8] sm:$0xff]  ;;  %v2569_v49 = vor.u32 %v2947_v42, %v2568_v41  ;;  %v2573_v50 = vor.u32 %v2945_v43, %v2570_v44  ;;  %vm245_vm0 = vcmask 523264   ;;  %v93_v52 = vld [vmem:[#allocation3 + $0x10] sm:$0xff]  ;;  %s2546_s30 = sshll.u32 %s4098_s7, 4  ;;  %s2547_s30 = int_to_ptr.hbm [resolvable:$true] %s2546_s30 }
  0x24   :  { %389 = vmatpush.bf16.msra.mxu1 %v2581_v34  ;;  %v123_v51 = vpack.c.bf16 %v92_v47, %v91_v46  ;;  %v94_v53 = vld [vmem:[#allocation3 + $0x18] sm:$0xff]  ;;  %v95_v55 = vld [vmem:[#allocation3 + $0x20] sm:$0xff]  ;;  %v96_v56 = vld [vmem:[#allocation3 + $0x28] sm:$0xff] }
  0x25   :  { %478 = vmatpush.bf16.msra.mxu2 %v2585_v35  ;;  %567 = vmatpush.bf16.msra.mxu3 %v2589_v39  ;;  %v124_v54 = vpack.c.bf16 %v94_v53, %v93_v52  ;;  %v125_v57 = vpack.c.bf16 %v96_v56, %v95_v55  ;;  %v97_v58 = vld [vmem:[#allocation3 + $0x30] sm:$0xff]  ;;  %v98_v59 = vld [vmem:[#allocation3 + $0x38] sm:$0xff]  ;;  %v99_v61 = vld [vmem:[#allocation3 + $0x40] sm:$0xff] }
  0x26   :  { %v126_v60 = vpack.c.bf16 %v98_v59, %v97_v58  ;;  %v100_v62 = vld [vmem:[#allocation3 + $0x48] sm:$0xff]  ;;  %v101_v0 = vld [vmem:[#allocation3 + $0x50] sm:$0xff]  ;;  %v102_v1 = vld [vmem:[#allocation3 + $0x58] sm:$0xff] }
  0x27   :  { %301 = vmatpush.bf16.msra.mxu0 %v2561_v45  ;;  %v127_v63 = vpack.c.bf16 %v100_v62, %v99_v61  ;;  %v128_v2 = vpack.c.bf16 %v102_v1, %v101_v0  ;;  %v103_v3 = vld [vmem:[#allocation3 + $0x60] sm:$0xff]  ;;  %v104_v4 = vld [vmem:[#allocation3 + $0x68] sm:$0xff]  ;;  %v105_v6 = vld [vmem:[#allocation3 + $0x70] sm:$0xff] }
  0x28   :  { %390 = vmatpush.bf16.msra.mxu1 %v2565_v48  ;;  %v129_v5 = vpack.c.bf16 %v104_v4, %v103_v3  ;;  %v106_v7 = vld [vmem:[#allocation3 + $0x78] sm:$0xff]  ;;  %v107_v9 = vld [vmem:[#allocation3 + $0x80] sm:$0xff]  ;;  %v108_v10 = vld [vmem:[#allocation3 + $0x88] sm:$0xff] }
  0x29   :  { %479 = vmatpush.bf16.msra.mxu2 %v2569_v49  ;;  %568 = vmatpush.bf16.msra.mxu3 %v2573_v50  ;;  %v130_v8 = vpack.c.bf16 %v106_v7, %v105_v6  ;;  %v155_v11 = vld [vmem:[#allocation8] sm:$0xf]  ;;  %v131_v12 = vpack.c.bf16 %v108_v10, %v107_v9  ;;  %v109_v32 = vld [vmem:[#allocation3 + $0x90] sm:$0xff]  ;;  %v110_v33 = vld [vmem:[#allocation3 + $0x98] sm:$0xff] }
  0x2a   :  { %2622 = vmatmul.msk.bf16.vlgmr.msra.gmra.mxu0 %vm245_vm0, %v123_v51  ;;  %v3269_v14 = vperm.slane %v155_v11, 0  ;;  %v3271_v16 = vperm.slane %v155_v11, 1  ;;  %v3279_v20 = vperm.slane %v155_v11, 2  ;;  %v3281_v24 = vperm.slane %v155_v11, 3  ;;  %v112_v9 = vld [vmem:[#allocation3 + $0xa8] sm:$0xff] }
  0x2b   :  { %2638 = vmatmul.msk.bf16.vlgmr.msra.gmra.mxu1 %vm245_vm0, %v123_v51  ;;  %v132_v42 = vpack.c.bf16 %v110_v33, %v109_v32 }
  0x2c   :  { %2654 = vmatmul.msk.bf16.vlgmr.msra.gmra.mxu2 %vm245_vm0, %v123_v51  ;;  %2670 = vmatmul.msk.bf16.vlgmr.msra.gmra.mxu3 %vm245_vm0, %v123_v51 }
  0x3a   :  { %2623 = vmatmul.msk.bf16.gmra.mxu0 %vm245_vm0, %v124_v54 }
  0x3b   :  { %2639 = vmatmul.msk.bf16.gmra.mxu1 %vm245_vm0, %v124_v54 }
  0x3c   :  { %2655 = vmatmul.msk.bf16.gmra.mxu2 %vm245_vm0, %v124_v54  ;;  %2671 = vmatmul.msk.bf16.gmra.mxu3 %vm245_vm0, %v124_v54 }
  0x4a   :  { %2624 = vmatmul.msk.bf16.gmra.mxu0 %vm245_vm0, %v125_v57 }
  0x4b   :  { %2640 = vmatmul.msk.bf16.gmra.mxu1 %vm245_vm0, %v125_v57 }
  0x4c   :  { %2656 = vmatmul.msk.bf16.gmra.mxu2 %vm245_vm0, %v125_v57  ;;  %2672 = vmatmul.msk.bf16.gmra.mxu3 %vm245_vm0, %v125_v57 }
  0x5a   :  { %2625 = vmatmul.msk.bf16.gmra.mxu0 %vm245_vm0, %v126_v60 }
  0x5b   :  { %2641 = vmatmul.msk.bf16.gmra.mxu1 %vm245_vm0, %v126_v60 }
  0x5c   :  { %2657 = vmatmul.msk.bf16.gmra.mxu2 %vm245_vm0, %v126_v60  ;;  %2673 = vmatmul.msk.bf16.gmra.mxu3 %vm245_vm0, %v126_v60 }
  0x6a   :  { %2626 = vmatmul.msk.bf16.gmra.mxu0 %vm245_vm0, %v127_v63 }
  0x6b   :  { %2642 = vmatmul.msk.bf16.gmra.mxu1 %vm245_vm0, %v127_v63 }
  0x6c   :  { %2658 = vmatmul.msk.bf16.gmra.mxu2 %vm245_vm0, %v127_v63  ;;  %2674 = vmatmul.msk.bf16.gmra.mxu3 %vm245_vm0, %v127_v63 }
  0x7a   :  { %2627 = vmatmul.msk.bf16.gmra.mxu0 %vm245_vm0, %v128_v2 }
  0x7b   :  { %2643 = vmatmul.msk.bf16.gmra.mxu1 %vm245_vm0, %v128_v2 }
  0x7c   :  { %2659 = vmatmul.msk.bf16.gmra.mxu2 %vm245_vm0, %v128_v2  ;;  %2675 = vmatmul.msk.bf16.gmra.mxu3 %vm245_vm0, %v128_v2 }
  0x8a   :  { %2628 = vmatmul.msk.bf16.gmra.mxu0 %vm245_vm0, %v129_v5 }
  0x8b   :  { %2644 = vmatmul.msk.bf16.gmra.mxu1 %vm245_vm0, %v129_v5 }
  0x8c   :  { %2660 = vmatmul.msk.bf16.gmra.mxu2 %vm245_vm0, %v129_v5  ;;  %2676 = vmatmul.msk.bf16.gmra.mxu3 %vm245_vm0, %v129_v5 }
  0x9a   :  { %2629 = vmatmul.msk.bf16.gmra.mxu0 %vm245_vm0, %v130_v8 }
  0x9b   :  { %2645 = vmatmul.msk.bf16.gmra.mxu1 %vm245_vm0, %v130_v8 }
  0x9c   :  { %2661 = vmatmul.msk.bf16.gmra.mxu2 %vm245_vm0, %v130_v8  ;;  %2677 = vmatmul.msk.bf16.gmra.mxu3 %vm245_vm0, %v130_v8  ;;  %v111_v8 = vld [vmem:[#allocation3 + $0xa0] sm:$0xff] }
  0xa7   :  { %v303_v13 = vpop.f32.mrf.mxu0 }
  0xa8   :  { %v392_v15 = vpop.f32.mrf.mxu1  ;;  %v304_v17 = vadd.f32 %v303_v13, %v3269_v14 }
  0xa9   :  { %v393_v18 = vadd.f32 %v392_v15, %v3271_v16 }
  0xaa   :  { %2630 = vmatmul.msk.bf16.gmra.mxu0 %vm245_vm0, %v131_v12  ;;  %v778_v23 = vmul.f32 0.2, %v304_v17  ;;  %vm650_vm1 = vcmp.gt.f32.partialorder %v304_v17, 0.0 }
  0xab   :  { %2646 = vmatmul.msk.bf16.gmra.mxu1 %vm245_vm0, %v131_v12  ;;  %v779_v27 = vmul.f32 0.2, %v393_v18  ;;  %vm651_vm2 = vcmp.gt.f32.partialorder %v393_v18, 0.0 }
  0xac   :  { %2662 = vmatmul.msk.bf16.gmra.mxu2 %vm245_vm0, %v131_v12  ;;  %2678 = vmatmul.msk.bf16.gmra.mxu3 %vm245_vm0, %v131_v12  ;;  %v906_v34 = vsel %vm650_vm1, %v304_v17, %v778_v23 }
  0xad   :  { %v907_v37 = vsel %vm651_vm2, %v393_v18, %v779_v27  ;;  %v133_v18 = vpack.c.bf16 %v112_v9, %v111_v8 }
  0xaf   :  { %v481_v19 = vpop.f32.mrf.mxu2  ;;  %v570_v21 = vpop.f32.mrf.mxu3 }
  0xb0   :  { %v305_v22 = vpop.f32.mrf.mxu0  ;;  %v394_v26 = vpop.f32.mrf.mxu1  ;;  %v482_v30 = vadd.f32 %v481_v19, %v3279_v20  ;;  %v571_v35 = vadd.f32 %v570_v21, %v3281_v24 }
  0xb1   :  { %v306_v25 = vadd.f32 %v305_v22, %v3269_v14  ;;  %v395_v28 = vadd.f32 %v394_v26, %v3271_v16 }
  0xb2   :  { %v780_v43 = vmul.f32 0.2, %v482_v30  ;;  %vm652_vm5 = vcmp.gt.f32.partialorder %v482_v30, 0.0  ;;  %v781_v47 = vmul.f32 0.2, %v571_v35  ;;  %vm653_vm6 = vcmp.gt.f32.partialorder %v571_v35, 0.0 }
  0xb3   :  { %vm654_vm3 = vcmp.gt.f32.partialorder %v306_v25, 0.0  ;;  %v782_v29 = vmul.f32 0.2, %v306_v25  ;;  %vm655_vm4 = vcmp.gt.f32.partialorder %v395_v28, 0.0  ;;  %v783_v31 = vmul.f32 0.2, %v395_v28 }
  0xb4   :  { %v908_v52 = vsel %vm652_vm5, %v482_v30, %v780_v43  ;;  %v909_v54 = vsel %vm653_vm6, %v571_v35, %v781_v47 }
  0xb5   :  { %v910_v36 = vsel %vm654_vm3, %v306_v25, %v782_v29  ;;  %v911_v39 = vsel %vm655_vm4, %v395_v28, %v783_v31 }
  0xb6   :  { %v3287_v38 = vpack.c.bf16 %v910_v36, %v906_v34  ;;  %v3289_v40 = vpack.c.bf16 %v911_v39, %v907_v37  ;;  %v2872_v36 = vld [vmem:[#allocation9 + $0x170] sm:$0xf]  ;;  %v3007_v37 = vld [vmem:[#allocation9 + $0x174] sm:$0xf0] }
  0xb7   :  { %v483_v41 = vpop.f32.mrf.mxu2  ;;  %v572_v45 = vpop.f32.mrf.mxu3 }
  0xb8   :  { %v484_v44 = vadd.f32 %v483_v41, %v3279_v20  ;;  %v308_v46 = vpop.f32.mrf.mxu0  ;;  %v573_v48 = vadd.f32 %v572_v45, %v3281_v24  ;;  %v397_v49 = vpop.f32.mrf.mxu1 }
  0xb9   :  { %v309_v57 = vadd.f32 %v308_v46, %v3269_v14  ;;  %v398_v59 = vadd.f32 %v397_v49, %v3271_v16 }
  0xba   :  { %vm656_vm7 = vcmp.gt.f32.partialorder %v484_v44, 0.0  ;;  %v784_v50 = vmul.f32 0.2, %v484_v44  ;;  %vm657_vm8 = vcmp.gt.f32.partialorder %v573_v48, 0.0  ;;  %v785_v51 = vmul.f32 0.2, %v573_v48  ;;  %2631 = vmatmul.msk.bf16.gmra.mxu0 %vm245_vm0, %v132_v42 }
  0xbb   :  { %2647 = vmatmul.msk.bf16.gmra.mxu1 %vm245_vm0, %v132_v42  ;;  %v786_v63 = vmul.f32 0.2, %v309_v57  ;;  %vm658_vm9 = vcmp.gt.f32.partialorder %v309_v57, 0.0  ;;  %v787_v2 = vmul.f32 0.2, %v398_v59  ;;  %vm659_vm10 = vcmp.gt.f32.partialorder %v398_v59, 0.0 }
  0xbc   :  { %v912_v53 = vsel %vm656_vm7, %v484_v44, %v784_v50  ;;  %2663 = vmatmul.msk.bf16.gmra.mxu2 %vm245_vm0, %v132_v42  ;;  %v913_v56 = vsel %vm657_vm8, %v573_v48, %v785_v51  ;;  %2679 = vmatmul.msk.bf16.gmra.mxu3 %vm245_vm0, %v132_v42  ;;  %v2873_v42 = vor.u32 %v3007_v37, %v2872_v36 }
  0xbd   :  { %v3296_v55 = vpack.c.bf16 %v912_v53, %v908_v52  ;;  %v3300_v58 = vpack.c.bf16 %v913_v56, %v909_v54  ;;  %v914_v10 = vsel %vm658_vm9, %v309_v57, %v786_v63  ;;  %v915_v13 = vsel %vm659_vm10, %v398_v59, %v787_v2  ;;  %v113_v53 = vld [vmem:[#allocation3 + $0xb0] sm:$0xff]  ;;  %v114_v57 = vld [vmem:[#allocation3 + $0xb8] sm:$0xff] }
  0xbe   :  { %1666 = vmatpush.bf16.msrb.mxu2 %v2873_v42  ;;  %v2744_v59 = vld [vmem:[#allocation9 + $0x70] sm:$0xf]  ;;  %v3023_v63 = vld [vmem:[#allocation9 + $0x1f4] sm:$0xf0] }
  0xbf   :  { %v486_v60 = vpop.f32.mrf.mxu2  ;;  %v575_v61 = vpop.f32.mrf.mxu3 }
  0xc0   :  { %v310_v62 = vpop.f32.mrf.mxu0  ;;  %v399_v1 = vpop.f32.mrf.mxu1  ;;  %v487_v5 = vadd.f32 %v486_v60, %v3279_v20  ;;  %v576_v6 = vadd.f32 %v575_v61, %v3281_v24  ;;  %v2975_v61 = vld [vmem:[#allocation9 + $0x74] sm:$0xf0] }
  0xc1   :  { %v311_v0 = vadd.f32 %v310_v62, %v3269_v14  ;;  %v400_v3 = vadd.f32 %v399_v1, %v3271_v16  ;;  %v2936_v62 = vld [vmem:[#allocation9 + $0x1f0] sm:$0xf] }
  0xc2   :  { %v788_v21 = vmul.f32 0.2, %v487_v5  ;;  %v789_v22 = vmul.f32 0.2, %v576_v6  ;;  %vm660_vm13 = vcmp.gt.f32.partialorder %v487_v5, 0.0  ;;  %vm661_vm14 = vcmp.gt.f32.partialorder %v576_v6, 0.0 }
  0xc3   :  { %vm662_vm11 = vcmp.gt.f32.partialorder %v311_v0, 0.0  ;;  %v790_v4 = vmul.f32 0.2, %v311_v0  ;;  %vm663_vm12 = vcmp.gt.f32.partialorder %v400_v3, 0.0  ;;  %v791_v7 = vmul.f32 0.2, %v400_v3 }
  0xc4   :  { %v916_v31 = vsel %vm660_vm13, %v487_v5, %v788_v21  ;;  %v917_v33 = vsel %vm661_vm14, %v576_v6, %v789_v22  ;;  %v2808_v5 = vld [vmem:[#allocation9 + $0xf0] sm:$0xf]  ;;  %v2991_v6 = vld [vmem:[#allocation9 + $0xf4] sm:$0xf0] }
  0xc5   :  { %v918_v11 = vsel %vm662_vm11, %v311_v0, %v790_v4  ;;  %v919_v15 = vsel %vm663_vm12, %v400_v3, %v791_v7  ;;  %v2745_v3 = vor.u32 %v2975_v61, %v2744_v59  ;;  %v2937_v4 = vor.u32 %v3023_v63, %v2936_v62 }
  0xc6   :  { %v3307_v12 = vpack.c.bf16 %v918_v11, %v914_v10  ;;  %v3309_v19 = vpack.c.bf16 %v919_v15, %v915_v13  ;;  %v134_v10 = vpack.c.bf16 %v114_v57, %v113_v53  ;;  %v2809_v11 = vor.u32 %v2991_v6, %v2808_v5 }
  0xc7   :  { %v488_v17 = vpop.f32.mrf.mxu2  ;;  %v577_v25 = vpop.f32.mrf.mxu3  ;;  %1488 = vmatpush.bf16.msrb.mxu0 %v2745_v3  ;;  %1755 = vmatpush.bf16.msrb.mxu3 %v2937_v4 }
  0xc8   :  { %v489_v23 = vadd.f32 %v488_v17, %v3279_v20  ;;  %v313_v26 = vpop.f32.mrf.mxu0  ;;  %v578_v27 = vadd.f32 %v577_v25, %v3281_v24  ;;  %v402_v28 = vpop.f32.mrf.mxu1  ;;  %1577 = vmatpush.bf16.msrb.mxu1 %v2809_v11 }
  0xc9   :  { %v314_v34 = vadd.f32 %v313_v26, %v3269_v14  ;;  %v403_v35 = vadd.f32 %v402_v28, %v3271_v16 }
  0xca   :  { %vm664_vm15 = vcmp.gt.f32.partialorder %v489_v23, 0.0  ;;  %v792_v29 = vmul.f32 0.2, %v489_v23  ;;  %vm665_vm1 = vcmp.gt.f32.partialorder %v578_v27, 0.0  ;;  %v793_v30 = vmul.f32 0.2, %v578_v27  ;;  %2632 = vmatmul.msk.bf16.gmra.mxu0 %vm245_vm0, %v133_v18 }
  0xcb   :  { %2648 = vmatmul.msk.bf16.gmra.mxu1 %vm245_vm0, %v133_v18  ;;  %v794_v47 = vmul.f32 0.2, %v314_v34  ;;  %v795_v48 = vmul.f32 0.2, %v403_v35  ;;  %vm666_vm2 = vcmp.gt.f32.partialorder %v314_v34, 0.0  ;;  %vm667_vm3 = vcmp.gt.f32.partialorder %v403_v35, 0.0 }
  0xcc   :  { %2664 = vmatmul.msk.bf16.gmra.mxu2 %vm245_vm0, %v133_v18  ;;  %v920_v32 = vsel %vm664_vm15, %v489_v23, %v792_v29  ;;  %2680 = vmatmul.msk.bf16.gmra.mxu3 %vm245_vm0, %v133_v18  ;;  %v921_v41 = vsel %vm665_vm1, %v578_v27, %v793_v30 }
  0xcd   :  { %v3319_v39 = vpack.c.bf16 %v920_v32, %v916_v31  ;;  %v3321_v43 = vpack.c.bf16 %v921_v41, %v917_v33  ;;  %v922_v0 = vsel %vm666_vm2, %v314_v34, %v794_v47  ;;  %v923_v2 = vsel %vm667_vm3, %v403_v35, %v795_v48 }
  0xcf   :  { %4146 = vst [vmem:[#allocation16_spill] sm:$0xff] %v3321_v43  ;;  %v491_v44 = vpop.f32.mrf.mxu2  ;;  %v580_v45 = vpop.f32.mrf.mxu3 }
  0xd0   :  { %v315_v46 = vpop.f32.mrf.mxu0  ;;  %v404_v50 = vpop.f32.mrf.mxu1  ;;  %v492_v54 = vadd.f32 %v491_v44, %v3279_v20  ;;  %v581_v60 = vadd.f32 %v580_v45, %v3281_v24 }
  0xd1   :  { %v316_v49 = vadd.f32 %v315_v46, %v3269_v14  ;;  %v405_v51 = vadd.f32 %v404_v50, %v3271_v16 }
  0xd2   :  { %v796_v15 = vmul.f32 0.2, %v492_v54  ;;  %vm668_vm6 = vcmp.gt.f32.partialorder %v492_v54, 0.0  ;;  %v797_v22 = vmul.f32 0.2, %v581_v60  ;;  %vm669_vm7 = vcmp.gt.f32.partialorder %v581_v60, 0.0 }
  0xd3   :  { %vm670_vm4 = vcmp.gt.f32.partialorder %v316_v49, 0.0  ;;  %v798_v52 = vmul.f32 0.2, %v316_v49  ;;  %vm671_vm5 = vcmp.gt.f32.partialorder %v405_v51, 0.0  ;;  %v799_v56 = vmul.f32 0.2, %v405_v51 }
  0xd4   :  { %v924_v28 = vsel %vm668_vm6, %v492_v54, %v796_v15  ;;  %v925_v32 = vsel %vm669_vm7, %v581_v60, %v797_v22 }
  0xd5   :  { %v926_v1 = vsel %vm670_vm4, %v316_v49, %v798_v52  ;;  %v927_v8 = vsel %vm671_vm5, %v405_v51, %v799_v56  ;;  %v115_v51 = vld [vmem:[#allocation3 + $0xc0] sm:$0xff]  ;;  %v116_v52 = vld [vmem:[#allocation3 + $0xc8] sm:$0xff] }
  0xd6   :  { %v3328_v7 = vpack.c.bf16 %v926_v1, %v922_v0  ;;  %v3331_v13 = vpack.c.bf16 %v927_v8, %v923_v2  ;;  %v135_v62 = vpack.c.bf16 %v116_v52, %v115_v51 }
  0xd7   :  { %v493_v9 = vpop.f32.mrf.mxu2  ;;  %v582_v18 = vpop.f32.mrf.mxu3 }
  0xd8   :  { %4147 = vst [vmem:[#allocation17_spill] sm:$0xff] %v3328_v7  ;;  %v494_v17 = vadd.f32 %v493_v9, %v3279_v20  ;;  %v318_v21 = vpop.f32.mrf.mxu0  ;;  %v583_v23 = vadd.f32 %v582_v18, %v3281_v24  ;;  %v407_v25 = vpop.f32.mrf.mxu1  ;;  %v2864_v18 = vld [vmem:[#allocation9 + $0x160] sm:$0xf] }
  0xd9   :  { %4148 = vst [vmem:[#allocation18_spill] sm:$0xff] %v3331_v13  ;;  %v319_v30 = vadd.f32 %v318_v21, %v3269_v14  ;;  %v408_v34 = vadd.f32 %v407_v25, %v3271_v16  ;;  %v3005_v21 = vld [vmem:[#allocation9 + $0x164] sm:$0xf0] }
  0xda   :  { %vm672_vm8 = vcmp.gt.f32.partialorder %v494_v17, 0.0  ;;  %v800_v26 = vmul.f32 0.2, %v494_v17  ;;  %vm673_vm9 = vcmp.gt.f32.partialorder %v583_v23, 0.0  ;;  %v801_v27 = vmul.f32 0.2, %v583_v23  ;;  %2633 = vmatmul.msk.bf16.gmra.mxu0 %vm245_vm0, %v134_v10 }
  0xdb   :  { %2649 = vmatmul.msk.bf16.gmra.mxu1 %vm245_vm0, %v134_v10  ;;  %v802_v42 = vmul.f32 0.2, %v319_v30  ;;  %vm674_vm10 = vcmp.gt.f32.partialorder %v319_v30, 0.0  ;;  %v803_v46 = vmul.f32 0.2, %v408_v34  ;;  %vm675_vm11 = vcmp.gt.f32.partialorder %v408_v34, 0.0 }
  0xdc   :  { %2665 = vmatmul.msk.bf16.gmra.mxu2 %vm245_vm0, %v134_v10  ;;  %v928_v29 = vsel %vm672_vm8, %v494_v17, %v800_v26  ;;  %2681 = vmatmul.msk.bf16.gmra.mxu3 %vm245_vm0, %v134_v10  ;;  %v929_v33 = vsel %vm673_vm9, %v583_v23, %v801_v27 }
  0xdd   :  { %v3340_v31 = vpack.c.bf16 %v928_v29, %v924_v28  ;;  %v3343_v35 = vpack.c.bf16 %v929_v33, %v925_v32  ;;  %v930_v54 = vsel %vm674_vm10, %v319_v30, %v802_v42  ;;  %v931_v59 = vsel %vm675_vm11, %v408_v34, %v803_v46  ;;  %v2736_v32 = vld [vmem:[#allocation9 + $0x60] sm:$0xf]  ;;  %v2973_v33 = vld [vmem:[#allocation9 + $0x64] sm:$0xf0] }
  0xde   :  { %v2865_v28 = vor.u32 %v3005_v21, %v2864_v18  ;;  %v2928_v34 = vld [vmem:[#allocation9 + $0x1e0] sm:$0xf]  ;;  %v2737_v42 = vor.u32 %v2973_v33, %v2736_v32  ;;  %v2989_v46 = vld [vmem:[#allocation9 + $0xe4] sm:$0xf0] }
  0xdf   :  { %4149 = vst [vmem:[#allocation19_spill] sm:$0xff] %v3340_v31  ;;  %v496_v36 = vpop.f32.mrf.mxu2  ;;  %v585_v37 = vpop.f32.mrf.mxu3  ;;  %v2720_v32 = vld [vmem:[#allocation9 + $0x40] sm:$0xf]  ;;  %v2969_v33 = vld [vmem:[#allocation9 + $0x44] sm:$0xf0] }
  0xe0   :  { %4150 = vst [vmem:[#allocation20_spill] sm:$0xff] %v3343_v35  ;;  %v320_v41 = vpop.f32.mrf.mxu0  ;;  %v409_v45 = vpop.f32.mrf.mxu1  ;;  %v497_v49 = vadd.f32 %v496_v36, %v3279_v20  ;;  %v586_v53 = vadd.f32 %v585_v37, %v3281_v24  ;;  %1667 = vmatpush.bf16.msrb.mxu2 %v2865_v28  ;;  %1489 = vmatpush.bf16.msrb.mxu0 %v2737_v42  ;;  %v2848_v42 = vld [vmem:[#allocation9 + $0x140] sm:$0xf] }
  0xe1   :  { %v321_v44 = vadd.f32 %v320_v41, %v3269_v14  ;;  %v410_v47 = vadd.f32 %v409_v45, %v3271_v16  ;;  %v2800_v45 = vld [vmem:[#allocation9 + $0xe0] sm:$0xf] }
  0xe2   :  { %v804_v0 = vmul.f32 0.2, %v497_v49  ;;  %vm676_vm14 = vcmp.gt.f32.partialorder %v497_v49, 0.0  ;;  %vm677_vm15 = vcmp.gt.f32.partialorder %v586_v53, 0.0  ;;  %v805_v4 = vmul.f32 0.2, %v586_v53 }
  0xe3   :  { %vm678_vm12 = vcmp.gt.f32.partialorder %v321_v44, 0.0  ;;  %v806_v48 = vmul.f32 0.2, %v321_v44  ;;  %vm679_vm13 = vcmp.gt.f32.partialorder %v410_v47, 0.0  ;;  %v807_v50 = vmul.f32 0.2, %v410_v47 }
  0xe4   :  { %v932_v15 = vsel %vm676_vm14, %v497_v49, %v804_v0  ;;  %v933_v23 = vsel %vm677_vm15, %v586_v53, %v805_v4  ;;  %v2801_v51 = vor.u32 %v2989_v46, %v2800_v45  ;;  %v2971_v0 = vld [vmem:[#allocation9 + $0x54] sm:$0xf0] }
  0xe5   :  { %v934_v56 = vsel %vm678_vm12, %v321_v44, %v806_v48  ;;  %v935_v60 = vsel %vm679_vm13, %v410_v47, %v807_v50  ;;  %v3021_v44 = vld [vmem:[#allocation9 + $0x1e4] sm:$0xf0] }
  0xe6   :  { %v3349_v57 = vpack.c.bf16 %v934_v56, %v930_v54  ;;  %v3351_v63 = vpack.c.bf16 %v935_v60, %v931_v59  ;;  %v2929_v50 = vor.u32 %v3021_v44, %v2928_v34  ;;  %v117_v54 = vld [vmem:[#allocation3 + $0xd0] sm:$0xff]  ;;  %v118_v56 = vld [vmem:[#allocation3 + $0xd8] sm:$0xff]  ;;  %1578 = vmatpush.bf16.msrb.mxu1 %v2801_v51  ;;  %v2912_v51 = vld [vmem:[#allocation9 + $0x1c0] sm:$0xf] }
  0xe7   :  { %v498_v61 = vpop.f32.mrf.mxu2  ;;  %v587_v2 = vpop.f32.mrf.mxu3 }
  0xe8   :  { %4151 = vst [vmem:[#allocation21_spill] sm:$0xff] %v3349_v57  ;;  %v499_v1 = vadd.f32 %v498_v61, %v3279_v20  ;;  %v323_v3 = vpop.f32.mrf.mxu0  ;;  %v588_v5 = vadd.f32 %v587_v2, %v3281_v24  ;;  %v412_v6 = vpop.f32.mrf.mxu1  ;;  %1756 = vmatpush.bf16.msrb.mxu3 %v2929_v50  ;;  %v2987_v2 = vld [vmem:[#allocation9 + $0xd4] sm:$0xf0]  ;;  %v3001_v50 = vld [vmem:[#allocation9 + $0x144] sm:$0xf0] }
  0xe9   :  { %4152 = vst [vmem:[#allocation22_spill] sm:$0xff] %v3351_v63  ;;  %v324_v9 = vadd.f32 %v323_v3, %v3269_v14  ;;  %v413_v10 = vadd.f32 %v412_v6, %v3271_v16 }
  0xea   :  { %vm680_vm1 = vcmp.gt.f32.partialorder %v499_v1, 0.0  ;;  %v808_v8 = vmul.f32 0.2, %v499_v1  ;;  %vm681_vm2 = vcmp.gt.f32.partialorder %v588_v5, 0.0  ;;  %v809_v11 = vmul.f32 0.2, %v588_v5  ;;  %2634 = vmatmul.msk.bf16.gmra.mxu0 %vm245_vm0, %v135_v62 }
  0xeb   :  { %2650 = vmatmul.msk.bf16.gmra.mxu1 %vm245_vm0, %v135_v62  ;;  %v810_v26 = vmul.f32 0.2, %v324_v9  ;;  %v811_v27 = vmul.f32 0.2, %v413_v10  ;;  %vm682_vm3 = vcmp.gt.f32.partialorder %v324_v9, 0.0  ;;  %vm683_vm4 = vcmp.gt.f32.partialorder %v413_v10, 0.0 }
  0xec   :  { %2666 = vmatmul.msk.bf16.gmra.mxu2 %vm245_vm0, %v135_v62  ;;  %v936_v17 = vsel %vm680_vm1, %v499_v1, %v808_v8  ;;  %2682 = vmatmul.msk.bf16.gmra.mxu3 %vm245_vm0, %v135_v62  ;;  %v937_v25 = vsel %vm681_vm2, %v588_v5, %v809_v11  ;;  %v2728_v62 = vld [vmem:[#allocation9 + $0x50] sm:$0xf] }
  0xed   :  { %v3361_v22 = vpack.c.bf16 %v936_v17, %v932_v15  ;;  %v3364_v29 = vpack.c.bf16 %v937_v25, %v933_v23  ;;  %v2792_v1 = vld [vmem:[#allocation9 + $0xd0] sm:$0xf]  ;;  %v938_v3 = vsel %vm682_vm3, %v324_v9, %v810_v26  ;;  %v939_v5 = vsel %vm683_vm4, %v413_v10, %v811_v27  ;;  %v3003_v15 = vld [vmem:[#allocation9 + $0x154] sm:$0xf0] }
  0xee   :  { %v2729_v6 = vor.u32 %v2971_v0, %v2728_v62  ;;  %v2793_v8 = vor.u32 %v2987_v2, %v2792_v1  ;;  %v2856_v11 = vld [vmem:[#allocation9 + $0x150] sm:$0xf]  ;;  %v136_v25 = vpack.c.bf16 %v118_v56, %v117_v54 }
  0xef   :  { %4153 = vst [vmem:[#allocation23_spill] sm:$0xff] %v3361_v22  ;;  %v501_v30 = vpop.f32.mrf.mxu2  ;;  %v590_v37 = vpop.f32.mrf.mxu3  ;;  %v2920_v17 = vld [vmem:[#allocation9 + $0x1d0] sm:$0xf]  ;;  %v2857_v28 = vor.u32 %v3003_v15, %v2856_v11 }
  0xf0   :  { %4154 = vst [vmem:[#allocation24_spill] sm:$0xff] %v3364_v29  ;;  %v3367_v36 = vadd.f32 %v501_v30, %v3279_v20  ;;  %v325_v41 = vpop.f32.mrf.mxu0  ;;  %v3370_v47 = vadd.f32 %v590_v37, %v3281_v24  ;;  %v414_v49 = vpop.f32.mrf.mxu1  ;;  %v3019_v30 = vld [vmem:[#allocation9 + $0x1d4] sm:$0xf0]  ;;  %1490 = vmatpush.bf16.msrb.mxu0 %v2729_v6  ;;  %1579 = vmatpush.bf16.msrb.mxu1 %v2793_v8  ;;  %v2784_v37 = vld [vmem:[#allocation9 + $0xc0] sm:$0xf] }
  0xf1   :  { %v326_v48 = vadd.f32 %v325_v41, %v3269_v14  ;;  %v415_v53 = vadd.f32 %v414_v49, %v3271_v16  ;;  %v2921_v27 = vor.u32 %v3019_v30, %v2920_v17  ;;  %v2985_v41 = vld [vmem:[#allocation9 + $0xc4] sm:$0xf0]  ;;  %1668 = vmatpush.bf16.msrb.mxu2 %v2857_v28  ;;  %v2983_v6 = vld [vmem:[#allocation9 + $0xb4] sm:$0xf0]  ;;  %v2840_v17 = vld [vmem:[#allocation9 + $0x130] sm:$0xf] }
  0xf2   :  { %v3374_v52 = vmul.f32 0.2, %v3367_v36  ;;  %vm684_vm5 = vcmp.gt.f32.partialorder %v3367_v36, 0.0  ;;  %v3379_v59 = vmul.f32 0.2, %v3370_v47  ;;  %vm685_vm7 = vcmp.gt.f32.partialorder %v3370_v47, 0.0 }
  0xf3   :  { %vm686_vm6 = vcmp.gt.f32.partialorder %v326_v48, 0.0  ;;  %v814_v60 = vmul.f32 0.2, %v326_v48  ;;  %vm687_vm8 = vcmp.gt.f32.partialorder %v415_v53, 0.0  ;;  %v815_v61 = vmul.f32 0.2, %v415_v53  ;;  %1757 = vmatpush.bf16.msrb.mxu3 %v2921_v27 }
  0xf4   :  { %v2785_v49 = vor.u32 %v2985_v41, %v2784_v37  ;;  %v940_v0 = vsel %vm684_vm5, %v3367_v36, %v3374_v52  ;;  %v941_v52 = vsel %vm685_vm7, %v3370_v47, %v3379_v59  ;;  %v2768_v37 = vld [vmem:[#allocation9 + $0xa0] sm:$0xf]  ;;  %v2981_v41 = vld [vmem:[#allocation9 + $0xa4] sm:$0xf0] }
  0xf5   :  { %v942_v4 = vsel %vm686_vm6, %v326_v48, %v814_v60  ;;  %v943_v21 = vsel %vm687_vm8, %v415_v53, %v815_v61  ;;  %v2721_v48 = vor.u32 %v2969_v33, %v2720_v32  ;;  %v3017_v53 = vld [vmem:[#allocation9 + $0x1c4] sm:$0xf0]  ;;  %v2849_v60 = vor.u32 %v3001_v50, %v2848_v42  ;;  %v3015_v32 = vld [vmem:[#allocation9 + $0x1b4] sm:$0xf0]  ;;  %v2704_v33 = vld [vmem:[#allocation9 + $0x20] sm:$0xf] }
  0xf6   :  { %v3384_v18 = vpack.c.bf16 %v942_v4, %v938_v3  ;;  %v3386_v34 = vpack.c.bf16 %v943_v21, %v939_v5  ;;  %v2913_v2 = vor.u32 %v3017_v53, %v2912_v51  ;;  %v2712_v3 = vld [vmem:[#allocation9 + $0x30] sm:$0xf]  ;;  %v2967_v4 = vld [vmem:[#allocation9 + $0x34] sm:$0xf0]  ;;  %1580 = vmatpush.bf16.msrb.mxu1 %v2785_v49  ;;  %v2832_v42 = vld [vmem:[#allocation9 + $0x120] sm:$0xf] }
  0xf7   :  { %v503_v23 = vpop.f32.mrf.mxu2  ;;  %v592_v26 = vpop.f32.mrf.mxu3  ;;  %1491 = vmatpush.bf16.msrb.mxu0 %v2721_v48  ;;  %v2776_v5 = vld [vmem:[#allocation9 + $0xb0] sm:$0xf]  ;;  %1669 = vmatpush.bf16.msrb.mxu2 %v2849_v60  ;;  %v2713_v11 = vor.u32 %v2967_v4, %v2712_v3  ;;  %v2999_v21 = vld [vmem:[#allocation9 + $0x134] sm:$0xf0]  ;;  %v2997_v50 = vld [vmem:[#allocation9 + $0x124] sm:$0xf0] }
  0xf8   :  { %4155 = vst [vmem:[#allocation25_spill] sm:$0xff] %v3384_v18  ;;  %v504_v9 = vadd.f32 %v503_v23, %v3279_v20  ;;  %v328_v10 = vpop.f32.mrf.mxu0  ;;  %v593_v44 = vadd.f32 %v592_v26, %v3281_v24  ;;  %v417_v46 = vpop.f32.mrf.mxu1  ;;  %v2777_v15 = vor.u32 %v2983_v6, %v2776_v5  ;;  %v2904_v23 = vld [vmem:[#allocation9 + $0x1b0] sm:$0xf]  ;;  %1758 = vmatpush.bf16.msrb.mxu3 %v2913_v2  ;;  %v2896_v51 = vld [vmem:[#allocation9 + $0x1a0] sm:$0xf] }
  0xf9   :  { %4156 = vst [vmem:[#allocation26_spill] sm:$0xff] %v3386_v34  ;;  %v3391_v45 = vadd.f32 %v328_v10, %v3269_v14  ;;  %v3394_v56 = vadd.f32 %v417_v46, %v3271_v16  ;;  %v2841_v30 = vor.u32 %v2999_v21, %v2840_v17  ;;  %v2905_v27 = vor.u32 %v3015_v32, %v2904_v23  ;;  %v3013_v53 = vld [vmem:[#allocation9 + $0x1a4] sm:$0xf0]  ;;  %v2995_v32 = vld [vmem:[#allocation9 + $0x114] sm:$0xf0] }
  0xfa   :  { %vm688_vm9 = vcmp.gt.f32.partialorder %v504_v9, 0.0  ;;  %v816_v54 = vmul.f32 0.2, %v504_v9  ;;  %vm689_vm10 = vcmp.gt.f32.partialorder %v593_v44, 0.0  ;;  %v817_v61 = vmul.f32 0.2, %v593_v44  ;;  %2635 = vmatmul.msk.bf16.gmra.mxu0 %vm245_vm0, %v136_v25  ;;  %1581 = vmatpush.bf16.msrb.mxu1 %v2777_v15 }
  0xfb   :  { %v3397_v62 = vmul.f32 0.2, %v3391_v45  ;;  %vm690_vm11 = vcmp.gt.f32.partialorder %v3391_v45, 0.0  ;;  %vm691_vm12 = vcmp.gt.f32.partialorder %v3394_v56, 0.0  ;;  %v3407_v1 = vmul.f32 0.2, %v3394_v56  ;;  %2651 = vmatmul.msk.bf16.gmra.mxu1 %vm245_vm0, %v136_v25  ;;  %1492 = vmatpush.bf16.msrb.mxu0 %v2713_v11 }
  0xfc   :  { %2667 = vmatmul.msk.bf16.gmra.mxu2 %vm245_vm0, %v136_v25  ;;  %2683 = vmatmul.msk.bf16.gmra.mxu3 %vm245_vm0, %v136_v25  ;;  %v944_v36 = vsel %vm688_vm9, %v504_v9, %v816_v54  ;;  %v945_v8 = vsel %vm689_vm10, %v593_v44, %v817_v61  ;;  %v2965_v9 = vld [vmem:[#allocation9 + $0x24] sm:$0xf0]  ;;  %v119_v61 = vld [vmem:[#allocation3 + $0xe0] sm:$0xff]  ;;  %v2769_v2 = vor.u32 %v2981_v41, %v2768_v37  ;;  %v2760_v11 = vld [vmem:[#allocation9 + $0x90] sm:$0xf] }
  0xfd   :  { %v3418_v25 = vpack.c.bf16 %v944_v36, %v940_v0  ;;  %v3420_v26 = vpack.c.bf16 %v945_v8, %v941_v52  ;;  %v2705_v49 = vor.u32 %v2965_v9, %v2704_v33  ;;  %v120_v0 = vld [vmem:[#allocation3 + $0xe8] sm:$0xff]  ;;  %1670 = vmatpush.bf16.msrb.mxu2 %v2841_v30  ;;  %v2833_v3 = vor.u32 %v2997_v50, %v2832_v42  ;;  %v2696_v52 = vld [vmem:[#allocation9 + $0x10] sm:$0xf]  ;;  %v2963_v8 = vld [vmem:[#allocation9 + $0x14] sm:$0xf0] }
  0xfe   :  { %1759 = vmatpush.bf16.msrb.mxu3 %v2905_v27  ;;  %v2897_v36 = vor.u32 %v3013_v53, %v2896_v51  ;;  %v2979_v15 = vld [vmem:[#allocation9 + $0x94] sm:$0xf0]  ;;  %v946_v17 = vsel %vm690_vm11, %v3391_v45, %v3397_v62  ;;  %1582 = vmatpush.bf16.msrb.mxu1 %v2769_v2  ;;  %v2697_v23 = vor.u32 %v2963_v8, %v2696_v52  ;;  %v2824_v30 = vld [vmem:[#allocation9 + $0x110] sm:$0xf]  ;;  %v2688_v41 = vld [vmem:[#allocation9] sm:$0xf] }
  0xff   :  { %4157 = vst [vmem:[#allocation27_spill] sm:$0xff] %v3418_v25  ;;  %v506_v28 = vpop.f32.mrf.mxu2  ;;  %v595_v59 = vpop.f32.mrf.mxu3  ;;  %1493 = vmatpush.bf16.msrb.mxu0 %v2705_v49  ;;  %v2888_v33 = vld [vmem:[#allocation9 + $0x190] sm:$0xf]  ;;  %v2825_v27 = vor.u32 %v2995_v32, %v2824_v30  ;;  %v3011_v37 = vld [vmem:[#allocation9 + $0x194] sm:$0xf0]  ;;  %v947_v45 = vsel %vm691_vm12, %v3394_v56, %v3407_v1 }
 0x100   :  { %4158 = vst [vmem:[#allocation28_spill] sm:$0xff] %v3420_v26  ;;  %v3423_v47 = vadd.f32 %v506_v28, %v3279_v20  ;;  %v330_v10 = vpop.f32.mrf.mxu0  ;;  %v3426_v44 = vadd.f32 %v595_v59, %v3281_v24  ;;  %v419_v48 = vpop.f32.mrf.mxu1  ;;  %v2761_v28 = vor.u32 %v2979_v15, %v2760_v11  ;;  %v2961_v42 = vld [vmem:[#allocation9 + $0x4] sm:$0xf0]  ;;  %v2889_v50 = vor.u32 %v3011_v37, %v2888_v33  ;;  %v2752_v51 = vld [vmem:[#allocation9 + $0x80] sm:$0xf] }
 0x101   :  { %v331_v46 = vadd.f32 %v330_v10, %v3269_v14  ;;  %v420_v60 = vadd.f32 %v419_v48, %v3271_v16  ;;  %1671 = vmatpush.bf16.msrb.mxu2 %v2833_v3  ;;  %v137_v10 = vpack.c.bf16 %v120_v0, %v119_v61  ;;  %v2977_v53 = vld [vmem:[#allocation9 + $0x84] sm:$0xf0]  ;;  %v2816_v61 = vld [vmem:[#allocation9 + $0x100] sm:$0xf] }
 0x102   :  { %v3430_v54 = vmul.f32 0.2, %v3423_v47  ;;  %vm692_vm13 = vcmp.gt.f32.partialorder %v3423_v47, 0.0  ;;  %v3435_v4 = vmul.f32 0.2, %v3426_v44  ;;  %vm693_vm15 = vcmp.gt.f32.partialorder %v3426_v44, 0.0  ;;  %1760 = vmatpush.bf16.msrb.mxu3 %v2897_v36  ;;  %1583 = vmatpush.bf16.msrb.mxu1 %v2761_v28 }
 0x103   :  { %vm694_vm14 = vcmp.gt.f32.partialorder %v331_v46, 0.0  ;;  %v822_v5 = vmul.f32 0.2, %v331_v46  ;;  %vm695_vm1 = vcmp.gt.f32.partialorder %v420_v60, 0.0  ;;  %v823_v6 = vmul.f32 0.2, %v420_v60  ;;  %1494 = vmatpush.bf16.msrb.mxu0 %v2697_v23 }
 0x104   :  { %v2993_v36 = vld [vmem:[#allocation9 + $0x104] sm:$0xf0]  ;;  %v2880_v52 = vld [vmem:[#allocation9 + $0x180] sm:$0xf]  ;;  %v948_v11 = vsel %vm692_vm13, %v3423_v47, %v3430_v54 }
 0x105   :  { %v950_v21 = vsel %vm694_vm14, %v331_v46, %v822_v5  ;;  %v951_v62 = vsel %vm695_vm1, %v420_v60, %v823_v6  ;;  %v2689_v5 = vor.u32 %v2961_v42, %v2688_v41  ;;  %v3009_v56 = vld [vmem:[#allocation9 + $0x184] sm:$0xf0]  ;;  %1672 = vmatpush.bf16.msrb.mxu2 %v2825_v27  ;;  %v2753_v60 = vor.u32 %v2977_v53, %v2752_v51 }
 0x106   :  { %v3442_v9 = vpack.c.bf16 %v950_v21, %v946_v17  ;;  %v3450_v0 = vpack.c.bf16 %v951_v62, %v947_v45  ;;  %v2817_v6 = vor.u32 %v2993_v36, %v2816_v61  ;;  %1761 = vmatpush.bf16.msrb.mxu3 %v2889_v50  ;;  %v2881_v15 = vor.u32 %v3009_v56, %v2880_v52  ;;  %v121_v62 = vld [vmem:[#allocation3 + $0xf0] sm:$0xff] }
 0x107   :  { %v508_v59 = vpop.f32.mrf.mxu2  ;;  %v597_v48 = vpop.f32.mrf.mxu3  ;;  %v949_v21 = vsel %vm693_vm15, %v3426_v44, %v3435_v4  ;;  %1495 = vmatpush.bf16.msrb.mxu0 %v2689_v5  ;;  %1584 = vmatpush.bf16.msrb.mxu1 %v2753_v60 }
 0x108   :  { %4159 = vst [vmem:[#allocation29_spill] sm:$0xff] %v3442_v9  ;;  %v509_v46 = vadd.f32 %v508_v59, %v3279_v20  ;;  %v333_v49 = vpop.f32.mrf.mxu0  ;;  %v598_v2 = vadd.f32 %v597_v48, %v3281_v24  ;;  %v422_v3 = vpop.f32.mrf.mxu1 }
 0x109   :  { %4160 = vst [vmem:[#allocation30_spill] sm:$0xff] %v3450_v0  ;;  %v334_v23 = vadd.f32 %v333_v49, %v3269_v14  ;;  %v423_v47 = vadd.f32 %v422_v3, %v3271_v16  ;;  %1673 = vmatpush.bf16.msrb.mxu2 %v2817_v6 }
 0x10a   :  { %vm696_vm2 = vcmp.gt.f32.partialorder %v509_v46, 0.0  ;;  %v824_v1 = vmul.f32 0.2, %v509_v46  ;;  %vm697_vm3 = vcmp.gt.f32.partialorder %v598_v2, 0.0  ;;  %v825_v8 = vmul.f32 0.2, %v598_v2  ;;  %2636 = vmatmul.msk.bf16.gmra.mxu0 %vm245_vm0, %v137_v10  ;;  %1762 = vmatpush.bf16.msrb.mxu3 %v2881_v15 }
 0x10b   :  { %2652 = vmatmul.msk.bf16.gmra.mxu1 %vm245_vm0, %v137_v10  ;;  %v826_v27 = vmul.f32 0.2, %v334_v23  ;;  %vm698_vm4 = vcmp.gt.f32.partialorder %v334_v23, 0.0  ;;  %vm699_vm5 = vcmp.gt.f32.partialorder %v423_v47, 0.0 }
 0x10c   :  { %2668 = vmatmul.msk.bf16.gmra.mxu2 %vm245_vm0, %v137_v10  ;;  %v952_v17 = vsel %vm696_vm2, %v509_v46, %v824_v1  ;;  %2684 = vmatmul.msk.bf16.gmra.mxu3 %vm245_vm0, %v137_v10  ;;  %v953_v30 = vsel %vm697_vm3, %v598_v2, %v825_v8  ;;  %v827_v10 = vmul.f32 0.2, %v423_v47  ;;  %v122_v46 = vld [vmem:[#allocation3 + $0xf8] sm:$0xff] }
 0x10d   :  { %v3466_v28 = vpack.c.bf16 %v952_v17, %v948_v11  ;;  %v3469_v54 = vpack.c.bf16 %v953_v30, %v949_v21  ;;  %v954_v49 = vsel %vm698_vm4, %v334_v23, %v826_v27  ;;  %v138_v3 = vpack.c.bf16 %v122_v46, %v121_v62 }
 0x10e   :  { %v955_v53 = vsel %vm699_vm5, %v423_v47, %v827_v10 }
 0x10f   :  { %4161 = vst [vmem:[#allocation31_spill] sm:$0xff] %v3466_v28  ;;  %v511_v32 = vpop.f32.mrf.mxu2  ;;  %v600_v33 = vpop.f32.mrf.mxu3 }
 0x110   :  { %4162 = vst [vmem:[#allocation32_spill] sm:$0xff] %v3469_v54  ;;  %v335_v59 = vpop.f32.mrf.mxu0  ;;  %v424_v4 = vpop.f32.mrf.mxu1  ;;  %v512_v42 = vadd.f32 %v511_v32, %v3279_v20  ;;  %v601_v48 = vadd.f32 %v600_v33, %v3281_v24 }
 0x111   :  { %v336_v44 = vadd.f32 %v335_v59, %v3269_v14  ;;  %v425_v37 = vadd.f32 %v424_v4, %v3271_v16 }
 0x112   :  { %v828_v36 = vmul.f32 0.2, %v512_v42  ;;  %vm700_vm8 = vcmp.gt.f32.partialorder %v512_v42, 0.0  ;;  %v829_v60 = vmul.f32 0.2, %v601_v48  ;;  %vm701_vm9 = vcmp.gt.f32.partialorder %v601_v48, 0.0 }
 0x113   :  { %vm702_vm6 = vcmp.gt.f32.partialorder %v336_v44, 0.0  ;;  %v830_v41 = vmul.f32 0.2, %v336_v44  ;;  %vm703_vm7 = vcmp.gt.f32.partialorder %v425_v37, 0.0  ;;  %v831_v45 = vmul.f32 0.2, %v425_v37 }
 0x114   :  { %v956_v17 = vsel %vm700_vm8, %v512_v42, %v828_v36  ;;  %v957_v47 = vsel %vm701_vm9, %v601_v48, %v829_v60 }
 0x115   :  { %v958_v50 = vsel %vm702_vm6, %v336_v44, %v830_v41  ;;  %v959_v61 = vsel %vm703_vm7, %v425_v37, %v831_v45 }
 0x116   :  { %v3475_v51 = vpack.c.bf16 %v958_v50, %v954_v49  ;;  %v3477_v5 = vpack.c.bf16 %v959_v61, %v955_v53 }
 0x117   :  { %v513_v2 = vpop.f32.mrf.mxu2  ;;  %v602_v56 = vpop.f32.mrf.mxu3 }
 0x118   :  { %4163 = vst [vmem:[#allocation33_spill] sm:$0xff] %v3475_v51  ;;  %v514_v52 = vadd.f32 %v513_v2, %v3279_v20  ;;  %v338_v1 = vpop.f32.mrf.mxu0  ;;  %v603_v6 = vadd.f32 %v602_v56, %v3281_v24  ;;  %v427_v8 = vpop.f32.mrf.mxu1 }
 0x119   :  { %4164 = vst [vmem:[#allocation34_spill] sm:$0xff] %v3477_v5  ;;  %v339_v23 = vadd.f32 %v338_v1, %v3269_v14  ;;  %v428_v33 = vadd.f32 %v427_v8, %v3271_v16 }
 0x11a   :  { %vm704_vm10 = vcmp.gt.f32.partialorder %v514_v52, 0.0  ;;  %v832_v11 = vmul.f32 0.2, %v514_v52  ;;  %vm705_vm11 = vcmp.gt.f32.partialorder %v603_v6, 0.0  ;;  %v833_v15 = vmul.f32 0.2, %v603_v6  ;;  %2637 = vmatmul.msk.bf16.gmra.mxu0 %vm245_vm0, %v138_v3 }
 0x11b   :  { %2653 = vmatmul.msk.bf16.gmra.mxu1 %vm245_vm0, %v138_v3  ;;  %v834_v10 = vmul.f32 0.2, %v339_v23  ;;  %vm706_vm12 = vcmp.gt.f32.partialorder %v339_v23, 0.0  ;;  %v835_v42 = vmul.f32 0.2, %v428_v33 }
 0x11c   :  { %2669 = vmatmul.msk.bf16.gmra.mxu2 %vm245_vm0, %v138_v3  ;;  %v960_v21 = vsel %vm704_vm10, %v514_v52, %v832_v11  ;;  %2685 = vmatmul.msk.bf16.gmra.mxu3 %vm245_vm0, %v138_v3  ;;  %v961_v32 = vsel %vm705_vm11, %v603_v6, %v833_v15  ;;  %vm707_vm0 = vcmp.gt.f32.partialorder %v428_v33, 0.0 }
 0x11d   :  { %v3486_v30 = vpack.c.bf16 %v960_v21, %v956_v17  ;;  %v3489_v59 = vpack.c.bf16 %v961_v32, %v957_v47  ;;  %v962_v50 = vsel %vm706_vm12, %v339_v23, %v834_v10  ;;  %v963_v2 = vsel %vm707_vm0, %v428_v33, %v835_v42 }
 0x11f   :  { %4165 = vst [vmem:[#allocation35_spill] sm:$0xff] %v3486_v30  ;;  %v516_v27 = vpop.f32.mrf.mxu2  ;;  %v605_v44 = vpop.f32.mrf.mxu3 }
 0x120   :  { %4166 = vst [vmem:[#allocation36_spill] sm:$0xff] %v3489_v59  ;;  %v340_v4 = vpop.f32.mrf.mxu0  ;;  %v429_v41 = vpop.f32.mrf.mxu1  ;;  %v517_v46 = vadd.f32 %v516_v27, %v3279_v20  ;;  %v606_v49 = vadd.f32 %v605_v44, %v3281_v24 }
 0x121   :  { %v341_v37 = vadd.f32 %v340_v4, %v3269_v14  ;;  %v430_v45 = vadd.f32 %v429_v41, %v3271_v16 }
 0x122   :  { %v836_v56 = vmul.f32 0.2, %v517_v46  ;;  %vm708_vm15 = vcmp.gt.f32.partialorder %v517_v46, 0.0  ;;  %v837_v8 = vmul.f32 0.2, %v606_v49  ;;  %vm709_vm1 = vcmp.gt.f32.partialorder %v606_v49, 0.0 }
 0x123   :  { %vm710_vm13 = vcmp.gt.f32.partialorder %v341_v37, 0.0  ;;  %v838_v62 = vmul.f32 0.2, %v341_v37  ;;  %vm711_vm14 = vcmp.gt.f32.partialorder %v430_v45, 0.0  ;;  %v839_v48 = vmul.f32 0.2, %v430_v45 }
 0x124   :  { %v964_v23 = vsel %vm708_vm15, %v517_v46, %v836_v56  ;;  %v965_v27 = vsel %vm709_vm1, %v606_v49, %v837_v8 }
 0x125   :  { %v966_v53 = vsel %vm710_vm13, %v341_v37, %v838_v62  ;;  %v967_v3 = vsel %vm711_vm14, %v430_v45, %v839_v48 }
 0x126   :  { %v3495_v61 = vpack.c.bf16 %v966_v53, %v962_v50  ;;  %v3497_v52 = vpack.c.bf16 %v967_v3, %v963_v2 }
 0x127   :  { %v518_v36 = vpop.f32.mrf.mxu2  ;;  %v607_v60 = vpop.f32.mrf.mxu3 }
 0x128   :  { %v519_v1 = vadd.f32 %v518_v36, %v3279_v20  ;;  %v343_v6 = vpop.f32.mrf.mxu0  ;;  %v608_v11 = vadd.f32 %v607_v60, %v3281_v24  ;;  %v432_v15 = vpop.f32.mrf.mxu1 }
 0x129   :  { %v344_v32 = vadd.f32 %v343_v6, %v3269_v14  ;;  %v433_v4 = vadd.f32 %v432_v15, %v3271_v16 }
 0x12a   :  { %vm712_vm2 = vcmp.gt.f32.partialorder %v519_v1, 0.0  ;;  %v840_v17 = vmul.f32 0.2, %v519_v1  ;;  %vm713_vm3 = vcmp.gt.f32.partialorder %v608_v11, 0.0  ;;  %v841_v21 = vmul.f32 0.2, %v608_v11  ;;  %1496 = vmatmul.bf16.vlgmr.msrb.gmra.mxu0 %v3287_v38 }
 0x12b   :  { %1585 = vmatmul.bf16.vlgmr.msrb.gmra.mxu1 %v3289_v40  ;;  %v842_v45 = vmul.f32 0.2, %v344_v32  ;;  %vm714_vm4 = vcmp.gt.f32.partialorder %v344_v32, 0.0  ;;  %v843_v48 = vmul.f32 0.2, %v433_v4  ;;  %vm715_vm5 = vcmp.gt.f32.partialorder %v433_v4, 0.0 }
 0x12c   :  { %1674 = vmatmul.bf16.vlgmr.msrb.gmra.mxu2 %v3296_v55  ;;  %v968_v47 = vsel %vm712_vm2, %v519_v1, %v840_v17  ;;  %1763 = vmatmul.bf16.vlgmr.msrb.gmra.mxu3 %v3300_v58  ;;  %v969_v44 = vsel %vm713_vm3, %v608_v11, %v841_v21 }
 0x12d   :  { %v3506_v33 = vpack.c.bf16 %v968_v47, %v964_v23  ;;  %v3509_v10 = vpack.c.bf16 %v969_v44, %v965_v27  ;;  %v970_v36 = vsel %vm714_vm4, %v344_v32, %v842_v45  ;;  %v971_v60 = vsel %vm715_vm5, %v433_v4, %v843_v48 }
 0x12f   :  { %4167 = vst [vmem:[#allocation37_spill] sm:$0xff] %v3506_v33  ;;  %v521_v37 = vpop.f32.mrf.mxu2  ;;  %v610_v41 = vpop.f32.mrf.mxu3 }
 0x130   :  { %4168 = vst [vmem:[#allocation38_spill] sm:$0xff] %v3509_v10  ;;  %v345_v42 = vpop.f32.mrf.mxu0  ;;  %v434_v46 = vpop.f32.mrf.mxu1  ;;  %v522_v49 = vadd.f32 %v521_v37, %v3279_v20  ;;  %v611_v3 = vadd.f32 %v610_v41, %v3281_v24 }
 0x131   :  { %v346_v62 = vadd.f32 %v345_v42, %v3269_v14  ;;  %v435_v50 = vadd.f32 %v434_v46, %v3271_v16 }
 0x132   :  { %v844_v15 = vmul.f32 0.2, %v522_v49  ;;  %vm716_vm8 = vcmp.gt.f32.partialorder %v522_v49, 0.0  ;;  %v845_v47 = vmul.f32 0.2, %v611_v3  ;;  %vm717_vm9 = vcmp.gt.f32.partialorder %v611_v3, 0.0 }
 0x133   :  { %vm718_vm6 = vcmp.gt.f32.partialorder %v346_v62, 0.0  ;;  %v846_v53 = vmul.f32 0.2, %v346_v62  ;;  %vm719_vm7 = vcmp.gt.f32.partialorder %v435_v50, 0.0  ;;  %v847_v2 = vmul.f32 0.2, %v435_v50 }
 0x134   :  { %v972_v4 = vsel %vm716_vm8, %v522_v49, %v844_v15 }
 0x135   :  { %v974_v56 = vsel %vm718_vm6, %v346_v62, %v846_v53  ;;  %v975_v6 = vsel %vm719_vm7, %v435_v50, %v847_v2  ;;  %v973_v62 = vsel %vm717_vm9, %v611_v3, %v845_v47 }
 0x136   :  { %v3515_v1 = vpack.c.bf16 %v974_v56, %v970_v36  ;;  %v3517_v11 = vpack.c.bf16 %v975_v6, %v971_v60 }
 0x137   :  { %v523_v8 = vpop.f32.mrf.mxu2  ;;  %v612_v21 = vpop.f32.mrf.mxu3 }
 0x138   :  { %v524_v17 = vadd.f32 %v523_v8, %v3279_v20  ;;  %v348_v23 = vpop.f32.mrf.mxu0  ;;  %v613_v27 = vadd.f32 %v612_v21, %v3281_v24  ;;  %v437_v44 = vpop.f32.mrf.mxu1 }
 0x139   :  { %v349_v42 = vadd.f32 %v348_v23, %v3269_v14  ;;  %v438_v48 = vadd.f32 %v437_v44, %v3271_v16 }
 0x13a   :  { %vm720_vm10 = vcmp.gt.f32.partialorder %v524_v17, 0.0  ;;  %v848_v32 = vmul.f32 0.2, %v524_v17  ;;  %vm721_vm11 = vcmp.gt.f32.partialorder %v613_v27, 0.0  ;;  %v849_v37 = vmul.f32 0.2, %v613_v27  ;;  %1501 = vmatmul.bf16.gmra.mxu0 %v3307_v12 }
 0x13b   :  { %1590 = vmatmul.bf16.gmra.mxu1 %v3309_v19  ;;  %v850_v56 = vmul.f32 0.2, %v349_v42  ;;  %vm722_vm12 = vcmp.gt.f32.partialorder %v349_v42, 0.0  ;;  %v851_v6 = vmul.f32 0.2, %v438_v48  ;;  %vm723_vm0 = vcmp.gt.f32.partialorder %v438_v48, 0.0 }
 0x13c   :  { %1679 = vmatmul.bf16.gmra.mxu2 %v3319_v39  ;;  %v976_v41 = vsel %vm720_vm10, %v524_v17, %v848_v32  ;;  %1768 = vmatmul.bf16.gmra.mxu3 %v3321_v43  ;;  %v977_v46 = vsel %vm721_vm11, %v613_v27, %v849_v37 }
 0x13d   :  { %v3526_v45 = vpack.c.bf16 %v976_v41, %v972_v4  ;;  %v3529_v50 = vpack.c.bf16 %v977_v46, %v973_v62  ;;  %v978_v23 = vsel %vm722_vm12, %v349_v42, %v850_v56  ;;  %v979_v44 = vsel %vm723_vm0, %v438_v48, %v851_v6 }
 0x13f   :  { %v526_v53 = vpop.f32.mrf.mxu2  ;;  %v615_v2 = vpop.f32.mrf.mxu3 }
 0x140   :  { %v350_v36 = vpop.f32.mrf.mxu0  ;;  %v439_v49 = vpop.f32.mrf.mxu1  ;;  %v527_v3 = vadd.f32 %v526_v53, %v3279_v20  ;;  %v616_v21 = vadd.f32 %v615_v2, %v3281_v24 }
 0x141   :  { %v351_v60 = vadd.f32 %v350_v36, %v3269_v14  ;;  %v440_v8 = vadd.f32 %v439_v49, %v3271_v16 }
 0x142   :  { %v852_v41 = vmul.f32 0.2, %v527_v3  ;;  %vm724_vm15 = vcmp.gt.f32.partialorder %v527_v3, 0.0  ;;  %v853_v53 = vmul.f32 0.2, %v616_v21  ;;  %vm725_vm1 = vcmp.gt.f32.partialorder %v616_v21, 0.0 }
 0x143   :  { %vm726_vm13 = vcmp.gt.f32.partialorder %v351_v60, 0.0  ;;  %v854_v15 = vmul.f32 0.2, %v351_v60  ;;  %vm727_vm14 = vcmp.gt.f32.partialorder %v440_v8, 0.0  ;;  %v855_v17 = vmul.f32 0.2, %v440_v8 }
 0x144   :  { %v980_v48 = vsel %vm724_vm15, %v527_v3, %v852_v41 }
 0x145   :  { %v982_v47 = vsel %vm726_vm13, %v351_v60, %v854_v15  ;;  %v983_v32 = vsel %vm727_vm14, %v440_v8, %v855_v17  ;;  %v981_v8 = vsel %vm725_vm1, %v616_v21, %v853_v53 }
 0x146   :  { %v3535_v27 = vpack.c.bf16 %v982_v47, %v978_v23  ;;  %v3537_v4 = vpack.c.bf16 %v983_v32, %v979_v44 }
 0x147   :  { %v528_v37 = vpop.f32.mrf.mxu2  ;;  %v617_v46 = vpop.f32.mrf.mxu3 }
 0x148   :  { %v529_v62 = vadd.f32 %v528_v37, %v3279_v20  ;;  %v353_v36 = vpop.f32.mrf.mxu0  ;;  %v618_v49 = vadd.f32 %v617_v46, %v3281_v24  ;;  %v442_v43 = vpop.f32.mrf.mxu1 }
 0x149   :  { %v354_v60 = vadd.f32 %v353_v36, %v3269_v14  ;;  %v443_v17 = vadd.f32 %v442_v43, %v3271_v16 }
 0x14a   :  { %vm728_vm2 = vcmp.gt.f32.partialorder %v529_v62, 0.0  ;;  %v856_v42 = vmul.f32 0.2, %v529_v62  ;;  %vm729_vm3 = vcmp.gt.f32.partialorder %v618_v49, 0.0  ;;  %v857_v2 = vmul.f32 0.2, %v618_v49  ;;  %1506 = vmatmul.bf16.gmra.mxu0 %v3328_v7 }
 0x14b   :  { %1595 = vmatmul.bf16.gmra.mxu1 %v3331_v13  ;;  %v858_v37 = vmul.f32 0.2, %v354_v60  ;;  %vm730_vm4 = vcmp.gt.f32.partialorder %v354_v60, 0.0  ;;  %v859_v41 = vmul.f32 0.2, %v443_v17  ;;  %vm731_vm5 = vcmp.gt.f32.partialorder %v443_v17, 0.0 }
 0x14c   :  { %1684 = vmatmul.bf16.gmra.mxu2 %v3340_v31  ;;  %v984_v56 = vsel %vm728_vm2, %v529_v62, %v856_v42  ;;  %1773 = vmatmul.bf16.gmra.mxu3 %v3343_v35  ;;  %v985_v15 = vsel %vm729_vm3, %v618_v49, %v857_v2 }
 0x14d   :  { %v3546_v6 = vpack.c.bf16 %v984_v56, %v980_v48  ;;  %v3549_v23 = vpack.c.bf16 %v985_v15, %v981_v8  ;;  %v986_v49 = vsel %vm730_vm4, %v354_v60, %v858_v37  ;;  %v987_v48 = vsel %vm731_vm5, %v443_v17, %v859_v41 }
 0x14f   :  { %v531_v47 = vpop.f32.mrf.mxu2  ;;  %v620_v44 = vpop.f32.mrf.mxu3 }
 0x150   :  { %v355_v32 = vpop.f32.mrf.mxu0  ;;  %v444_v3 = vpop.f32.mrf.mxu1  ;;  %v532_v21 = vadd.f32 %v531_v47, %v3279_v20  ;;  %v621_v53 = vadd.f32 %v620_v44, %v3281_v24 }
 0x151   :  { %v356_v46 = vadd.f32 %v355_v32, %v3269_v14  ;;  %v445_v62 = vadd.f32 %v444_v3, %v3271_v16 }
 0x152   :  { %v860_v32 = vmul.f32 0.2, %v532_v21  ;;  %vm732_vm8 = vcmp.gt.f32.partialorder %v532_v21, 0.0  ;;  %v861_v47 = vmul.f32 0.2, %v621_v53  ;;  %vm733_vm9 = vcmp.gt.f32.partialorder %v621_v53, 0.0 }
 0x153   :  { %vm734_vm6 = vcmp.gt.f32.partialorder %v356_v46, 0.0  ;;  %v862_v36 = vmul.f32 0.2, %v356_v46  ;;  %vm735_vm7 = vcmp.gt.f32.partialorder %v445_v62, 0.0  ;;  %v863_v43 = vmul.f32 0.2, %v445_v62 }
 0x154   :  { %v988_v17 = vsel %vm732_vm8, %v532_v21, %v860_v32 }
 0x155   :  { %v990_v42 = vsel %vm734_vm6, %v356_v46, %v862_v36  ;;  %v991_v56 = vsel %vm735_vm7, %v445_v62, %v863_v43 }
 0x156   :  { %v3555_v2 = vpack.c.bf16 %v990_v42, %v986_v49  ;;  %v3557_v15 = vpack.c.bf16 %v991_v56, %v987_v48 }
 0x157   :  { %v533_v8 = vpop.f32.mrf.mxu2  ;;  %v622_v35 = vpop.f32.mrf.mxu3 }
 0x158   :  { %4169 = vst [vmem:[#allocation39_spill] sm:$0xff] %v3555_v2  ;;  %v534_v3 = vadd.f32 %v533_v8, %v3279_v20  ;;  %v358_v31 = vpop.f32.mrf.mxu0  ;;  %v623_v13 = vadd.f32 %v622_v35, %v3281_v24  ;;  %v447_v7 = vpop.f32.mrf.mxu1  ;;  %v989_v35 = vsel %vm733_vm9, %v621_v53, %v861_v47 }
 0x159   :  { %4170 = vst [vmem:[#allocation40_spill] sm:$0xff] %v3557_v15  ;;  %v359_v46 = vadd.f32 %v358_v31, %v3269_v14  ;;  %v448_v36 = vadd.f32 %v447_v7, %v3271_v16 }
 0x15a   :  { %vm736_vm10 = vcmp.gt.f32.partialorder %v534_v3, 0.0  ;;  %v864_v60 = vmul.f32 0.2, %v534_v3  ;;  %vm737_vm11 = vcmp.gt.f32.partialorder %v623_v13, 0.0  ;;  %v865_v44 = vmul.f32 0.2, %v623_v13  ;;  %1511 = vmatmul.bf16.gmra.mxu0 %v3349_v57 }
 0x15b   :  { %1600 = vmatmul.bf16.gmra.mxu1 %v3351_v63  ;;  %v866_v56 = vmul.f32 0.2, %v359_v46  ;;  %vm738_vm12 = vcmp.gt.f32.partialorder %v359_v46, 0.0  ;;  %v867_v32 = vmul.f32 0.2, %v448_v36  ;;  %vm739_vm0 = vcmp.gt.f32.partialorder %v448_v36, 0.0 }
 0x15c   :  { %1689 = vmatmul.bf16.gmra.mxu2 %v3361_v22  ;;  %v992_v37 = vsel %vm736_vm10, %v534_v3, %v864_v60  ;;  %1778 = vmatmul.bf16.gmra.mxu3 %v3364_v29  ;;  %v993_v62 = vsel %vm737_vm11, %v623_v13, %v865_v44 }
 0x15d   :  { %v3566_v41 = vpack.c.bf16 %v992_v37, %v988_v17  ;;  %v3569_v43 = vpack.c.bf16 %v993_v62, %v989_v35  ;;  %v994_v47 = vsel %vm738_vm12, %v359_v46, %v866_v56  ;;  %v995_v17 = vsel %vm739_vm0, %v448_v36, %v867_v32 }
 0x15f   :  { %4171 = vst [vmem:[#allocation41_spill] sm:$0xff] %v3566_v41  ;;  %v536_v49 = vpop.f32.mrf.mxu2  ;;  %v625_v42 = vpop.f32.mrf.mxu3 }
 0x160   :  { %4172 = vst [vmem:[#allocation42_spill] sm:$0xff] %v3569_v43  ;;  %v360_v48 = vpop.f32.mrf.mxu0  ;;  %v449_v21 = vpop.f32.mrf.mxu1  ;;  %v537_v13 = vadd.f32 %v536_v49, %v3279_v20  ;;  %v626_v53 = vadd.f32 %v625_v42, %v3281_v24 }
 0x161   :  { %v361_v8 = vadd.f32 %v360_v48, %v3269_v14  ;;  %v450_v31 = vadd.f32 %v449_v21, %v3271_v16 }
 0x162   :  { %v868_v48 = vmul.f32 0.2, %v537_v13  ;;  %vm740_vm15 = vcmp.gt.f32.partialorder %v537_v13, 0.0  ;;  %v869_v49 = vmul.f32 0.2, %v626_v53  ;;  %vm741_vm1 = vcmp.gt.f32.partialorder %v626_v53, 0.0 }
 0x163   :  { %vm742_vm13 = vcmp.gt.f32.partialorder %v361_v8, 0.0  ;;  %v870_v3 = vmul.f32 0.2, %v361_v8  ;;  %vm743_vm14 = vcmp.gt.f32.partialorder %v450_v31, 0.0  ;;  %v871_v7 = vmul.f32 0.2, %v450_v31 }
 0x164   :  { %v996_v36 = vsel %vm740_vm15, %v537_v13, %v868_v48 }
 0x165   :  { %v998_v60 = vsel %vm742_vm13, %v361_v8, %v870_v3  ;;  %v999_v37 = vsel %vm743_vm14, %v450_v31, %v871_v7 }
 0x166   :  { %v3575_v44 = vpack.c.bf16 %v998_v60, %v994_v47  ;;  %v3577_v62 = vpack.c.bf16 %v999_v37, %v995_v17 }
 0x167   :  { %v538_v35 = vpop.f32.mrf.mxu2  ;;  %v627_v29 = vpop.f32.mrf.mxu3 }
 0x168   :  { %4173 = vst [vmem:[#allocation43_spill] sm:$0xff] %v3575_v44  ;;  %v539_v21 = vadd.f32 %v538_v35, %v3279_v20  ;;  %v363_v22 = vpop.f32.mrf.mxu0  ;;  %v628_v63 = vadd.f32 %v627_v29, %v3281_v24  ;;  %v452_v57 = vpop.f32.mrf.mxu1  ;;  %v997_v29 = vsel %vm741_vm1, %v626_v53, %v869_v49 }
 0x169   :  { %4174 = vst [vmem:[#allocation44_spill] sm:$0xff] %v3577_v62  ;;  %v364_v8 = vadd.f32 %v363_v22, %v3269_v14  ;;  %v453_v3 = vadd.f32 %v452_v57, %v3271_v16 }
 0x16a   :  { %vm744_vm2 = vcmp.gt.f32.partialorder %v539_v21, 0.0  ;;  %v872_v46 = vmul.f32 0.2, %v539_v21  ;;  %vm745_vm3 = vcmp.gt.f32.partialorder %v628_v63, 0.0  ;;  %v873_v42 = vmul.f32 0.2, %v628_v63  ;;  %1516 = vmatmul.bf16.gmra.mxu0 %v3384_v18 }
 0x16b   :  { %1605 = vmatmul.bf16.gmra.mxu1 %v3386_v34  ;;  %v874_v37 = vmul.f32 0.2, %v364_v8  ;;  %vm746_vm4 = vcmp.gt.f32.partialorder %v364_v8, 0.0  ;;  %v875_v48 = vmul.f32 0.2, %v453_v3  ;;  %vm747_vm5 = vcmp.gt.f32.partialorder %v453_v3, 0.0 }
 0x16c   :  { %1694 = vmatmul.bf16.gmra.mxu2 %v3418_v25  ;;  %v1000_v56 = vsel %vm744_vm2, %v539_v21, %v872_v46  ;;  %1783 = vmatmul.bf16.gmra.mxu3 %v3420_v26  ;;  %v1001_v31 = vsel %vm745_vm3, %v628_v63, %v873_v42 }
 0x16d   :  { %v3586_v32 = vpack.c.bf16 %v1000_v56, %v996_v36  ;;  %v3589_v7 = vpack.c.bf16 %v1001_v31, %v997_v29  ;;  %v1002_v49 = vsel %vm746_vm4, %v364_v8, %v874_v37  ;;  %v1003_v36 = vsel %vm747_vm5, %v453_v3, %v875_v48 }
 0x16f   :  { %4175 = vst [vmem:[#allocation45_spill] sm:$0xff] %v3586_v32  ;;  %v541_v47 = vpop.f32.mrf.mxu2  ;;  %v630_v60 = vpop.f32.mrf.mxu3 }
 0x170   :  { %4176 = vst [vmem:[#allocation46_spill] sm:$0xff] %v3589_v7  ;;  %v365_v17 = vpop.f32.mrf.mxu0  ;;  %v454_v13 = vpop.f32.mrf.mxu1  ;;  %v542_v63 = vadd.f32 %v541_v47, %v3279_v20  ;;  %v631_v53 = vadd.f32 %v630_v60, %v3281_v24 }
 0x171   :  { %v366_v35 = vadd.f32 %v365_v17, %v3269_v14  ;;  %v455_v22 = vadd.f32 %v454_v13, %v3271_v16 }
 0x172   :  { %v876_v17 = vmul.f32 0.2, %v542_v63  ;;  %vm748_vm8 = vcmp.gt.f32.partialorder %v542_v63, 0.0  ;;  %v877_v47 = vmul.f32 0.2, %v631_v53  ;;  %vm749_vm9 = vcmp.gt.f32.partialorder %v631_v53, 0.0 }
 0x173   :  { %vm750_vm6 = vcmp.gt.f32.partialorder %v366_v35, 0.0  ;;  %v878_v21 = vmul.f32 0.2, %v366_v35  ;;  %vm751_vm7 = vcmp.gt.f32.partialorder %v455_v22, 0.0  ;;  %v879_v57 = vmul.f32 0.2, %v455_v22 }
 0x174   :  { %v1004_v3 = vsel %vm748_vm8, %v542_v63, %v876_v17 }
 0x175   :  { %v1006_v46 = vsel %vm750_vm6, %v366_v35, %v878_v21  ;;  %v1007_v56 = vsel %vm751_vm7, %v455_v22, %v879_v57 }
 0x176   :  { %v3595_v42 = vpack.c.bf16 %v1006_v46, %v1002_v49  ;;  %v3597_v31 = vpack.c.bf16 %v1007_v56, %v1003_v36 }
 0x177   :  { %v543_v29 = vpop.f32.mrf.mxu2  ;;  %v632_v26 = vpop.f32.mrf.mxu3 }
 0x178   :  { %4177 = vst [vmem:[#allocation47_spill] sm:$0xff] %v3595_v42  ;;  %v544_v13 = vadd.f32 %v543_v29, %v3279_v20  ;;  %v368_v25 = vpop.f32.mrf.mxu0  ;;  %v633_v34 = vadd.f32 %v632_v26, %v3281_v24  ;;  %v457_v18 = vpop.f32.mrf.mxu1  ;;  %v1005_v26 = vsel %vm749_vm9, %v631_v53, %v877_v47 }
 0x179   :  { %4178 = vst [vmem:[#allocation48_spill] sm:$0xff] %v3597_v31  ;;  %v369_v35 = vadd.f32 %v368_v25, %v3269_v14  ;;  %v458_v21 = vadd.f32 %v457_v18, %v3271_v16 }
 0x17a   :  { %vm752_vm10 = vcmp.gt.f32.partialorder %v544_v13, 0.0  ;;  %v880_v8 = vmul.f32 0.2, %v544_v13  ;;  %vm753_vm11 = vcmp.gt.f32.partialorder %v633_v34, 0.0  ;;  %v881_v60 = vmul.f32 0.2, %v633_v34  ;;  %1521 = vmatmul.bf16.gmra.mxu0 %v3442_v9 }
 0x17b   :  { %1610 = vmatmul.bf16.gmra.mxu1 %v3450_v0  ;;  %v882_v56 = vmul.f32 0.2, %v369_v35  ;;  %vm754_vm12 = vcmp.gt.f32.partialorder %v369_v35, 0.0  ;;  %v883_v17 = vmul.f32 0.2, %v458_v21  ;;  %vm755_vm0 = vcmp.gt.f32.partialorder %v458_v21, 0.0 }
 0x17c   :  { %1699 = vmatmul.bf16.gmra.mxu2 %v3466_v28  ;;  %v1008_v37 = vsel %vm752_vm10, %v544_v13, %v880_v8  ;;  %1788 = vmatmul.bf16.gmra.mxu3 %v3469_v54  ;;  %v1009_v22 = vsel %vm753_vm11, %v633_v34, %v881_v60 }
 0x17d   :  { %v3606_v48 = vpack.c.bf16 %v1008_v37, %v1004_v3  ;;  %v3609_v57 = vpack.c.bf16 %v1009_v22, %v1005_v26  ;;  %v1010_v47 = vsel %vm754_vm12, %v369_v35, %v882_v56  ;;  %v1011_v3 = vsel %vm755_vm0, %v458_v21, %v883_v17 }
 0x17f   :  { %4179 = vst [vmem:[#allocation49_spill] sm:$0xff] %v3606_v48  ;;  %v546_v49 = vpop.f32.mrf.mxu2  ;;  %v635_v46 = vpop.f32.mrf.mxu3 }
 0x180   :  { %4180 = vst [vmem:[#allocation50_spill] sm:$0xff] %v3609_v57  ;;  %v370_v36 = vpop.f32.mrf.mxu0  ;;  %v459_v63 = vpop.f32.mrf.mxu1  ;;  %v547_v34 = vadd.f32 %v546_v49, %v3279_v20  ;;  %v636_v53 = vadd.f32 %v635_v46, %v3281_v24 }
 0x181   :  { %v371_v29 = vadd.f32 %v370_v36, %v3269_v14  ;;  %v460_v25 = vadd.f32 %v459_v63, %v3271_v16 }
 0x182   :  { %v884_v36 = vmul.f32 0.2, %v547_v34  ;;  %vm756_vm15 = vcmp.gt.f32.partialorder %v547_v34, 0.0  ;;  %v885_v49 = vmul.f32 0.2, %v636_v53  ;;  %vm757_vm1 = vcmp.gt.f32.partialorder %v636_v53, 0.0 }
 0x183   :  { %vm758_vm13 = vcmp.gt.f32.partialorder %v371_v29, 0.0  ;;  %v886_v13 = vmul.f32 0.2, %v371_v29  ;;  %vm759_vm14 = vcmp.gt.f32.partialorder %v460_v25, 0.0  ;;  %v887_v18 = vmul.f32 0.2, %v460_v25 }
 0x184   :  { %v1012_v21 = vsel %vm756_vm15, %v547_v34, %v884_v36 }
 0x185   :  { %v1014_v8 = vsel %vm758_vm13, %v371_v29, %v886_v13  ;;  %v1015_v37 = vsel %vm759_vm14, %v460_v25, %v887_v18 }
 0x186   :  { %v3615_v60 = vpack.c.bf16 %v1014_v8, %v1010_v47  ;;  %v3617_v22 = vpack.c.bf16 %v1015_v37, %v1011_v3 }
 0x187   :  { %v548_v26 = vpop.f32.mrf.mxu2  ;;  %v637_v54 = vpop.f32.mrf.mxu3 }
 0x188   :  { %4181 = vst [vmem:[#allocation51_spill] sm:$0xff] %v3615_v60  ;;  %v549_v63 = vadd.f32 %v548_v26, %v3279_v20  ;;  %v373_v28 = vpop.f32.mrf.mxu0  ;;  %v638_v0 = vadd.f32 %v637_v54, %v3281_v24  ;;  %v462_v9 = vpop.f32.mrf.mxu1  ;;  %v1013_v54 = vsel %vm757_vm1, %v636_v53, %v885_v49 }
 0x189   :  { %4182 = vst [vmem:[#allocation52_spill] sm:$0xff] %v3617_v22  ;;  %v374_v29 = vadd.f32 %v373_v28, %v3269_v14  ;;  %v463_v13 = vadd.f32 %v462_v9, %v3271_v16 }
 0x18a   :  { %vm760_vm2 = vcmp.gt.f32.partialorder %v549_v63, 0.0  ;;  %v888_v35 = vmul.f32 0.2, %v549_v63  ;;  %vm761_vm3 = vcmp.gt.f32.partialorder %v638_v0, 0.0  ;;  %v889_v46 = vmul.f32 0.2, %v638_v0  ;;  %1526 = vmatmul.bf16.gmra.mxu0 %v3475_v51 }
 0x18b   :  { %1615 = vmatmul.bf16.gmra.mxu1 %v3477_v5  ;;  %v890_v37 = vmul.f32 0.2, %v374_v29  ;;  %vm762_vm4 = vcmp.gt.f32.partialorder %v374_v29, 0.0  ;;  %v891_v36 = vmul.f32 0.2, %v463_v13  ;;  %vm763_vm5 = vcmp.gt.f32.partialorder %v463_v13, 0.0 }
 0x18c   :  { %1704 = vmatmul.bf16.gmra.mxu2 %v3486_v30  ;;  %v1016_v56 = vsel %vm760_vm2, %v549_v63, %v888_v35  ;;  %1793 = vmatmul.bf16.gmra.mxu3 %v3489_v59  ;;  %v1017_v25 = vsel %vm761_vm3, %v638_v0, %v889_v46 }
 0x18d   :  { %v3626_v17 = vpack.c.bf16 %v1016_v56, %v1012_v21  ;;  %v3629_v18 = vpack.c.bf16 %v1017_v25, %v1013_v54  ;;  %v1018_v49 = vsel %vm762_vm4, %v374_v29, %v890_v37  ;;  %v1019_v21 = vsel %vm763_vm5, %v463_v13, %v891_v36 }
 0x18f   :  { %4183 = vst [vmem:[#allocation53_spill] sm:$0xff] %v3626_v17  ;;  %v551_v47 = vpop.f32.mrf.mxu2  ;;  %v640_v8 = vpop.f32.mrf.mxu3 }
 0x190   :  { %4184 = vst [vmem:[#allocation54_spill] sm:$0xff] %v3629_v18  ;;  %v375_v3 = vpop.f32.mrf.mxu0  ;;  %v464_v34 = vpop.f32.mrf.mxu1  ;;  %v552_v0 = vadd.f32 %v551_v47, %v3279_v20  ;;  %v641_v53 = vadd.f32 %v640_v8, %v3281_v24 }
 0x191   :  { %v376_v26 = vadd.f32 %v375_v3, %v3269_v14  ;;  %v465_v28 = vadd.f32 %v464_v34, %v3271_v16 }
 0x192   :  { %v892_v3 = vmul.f32 0.2, %v552_v0  ;;  %vm764_vm8 = vcmp.gt.f32.partialorder %v552_v0, 0.0  ;;  %v893_v47 = vmul.f32 0.2, %v641_v53  ;;  %vm765_vm9 = vcmp.gt.f32.partialorder %v641_v53, 0.0 }
 0x193   :  { %vm766_vm6 = vcmp.gt.f32.partialorder %v376_v26, 0.0  ;;  %v894_v63 = vmul.f32 0.2, %v376_v26  ;;  %vm767_vm7 = vcmp.gt.f32.partialorder %v465_v28, 0.0  ;;  %v895_v9 = vmul.f32 0.2, %v465_v28 }
 0x194   :  { %v1020_v13 = vsel %vm764_vm8, %v552_v0, %v892_v3 }
 0x195   :  { %v1022_v35 = vsel %vm766_vm6, %v376_v26, %v894_v63  ;;  %v1023_v56 = vsel %vm767_vm7, %v465_v28, %v895_v9 }
 0x196   :  { %v3635_v46 = vpack.c.bf16 %v1022_v35, %v1018_v49  ;;  %v3637_v25 = vpack.c.bf16 %v1023_v56, %v1019_v21 }
 0x197   :  { %v553_v54 = vpop.f32.mrf.mxu2  ;;  %v642_v59 = vpop.f32.mrf.mxu3 }
 0x198   :  { %4185 = vst [vmem:[#allocation55_spill] sm:$0xff] %v3635_v46  ;;  %v554_v34 = vadd.f32 %v553_v54, %v3279_v20  ;;  %v378_v30 = vpop.f32.mrf.mxu0  ;;  %v643_v5 = vadd.f32 %v642_v59, %v3281_v24  ;;  %v467_v51 = vpop.f32.mrf.mxu1  ;;  %v1021_v59 = vsel %vm765_vm9, %v641_v53, %v893_v47  ;;  %v1162_v53 = vld [vmem:[%s4095_s4] sm:$0x3] }
 0x199   :  { %4186 = vst [vmem:[#allocation56_spill] sm:$0xff] %v3637_v25  ;;  %v379_v26 = vadd.f32 %v378_v30, %v3269_v14  ;;  %v468_v63 = vadd.f32 %v467_v51, %v3271_v16 }
 0x19a   :  { %vm768_vm10 = vcmp.gt.f32.partialorder %v554_v34, 0.0  ;;  %v896_v29 = vmul.f32 0.2, %v554_v34  ;;  %vm769_vm11 = vcmp.gt.f32.partialorder %v643_v5, 0.0  ;;  %v897_v8 = vmul.f32 0.2, %v643_v5  ;;  %1531 = vmatmul.bf16.gmra.mxu0 %v3495_v61 }
 0x19b   :  { %1620 = vmatmul.bf16.gmra.mxu1 %v3497_v52  ;;  %v898_v56 = vmul.f32 0.2, %v379_v26  ;;  %vm770_vm12 = vcmp.gt.f32.partialorder %v379_v26, 0.0  ;;  %v899_v3 = vmul.f32 0.2, %v468_v63  ;;  %vm771_vm0 = vcmp.gt.f32.partialorder %v468_v63, 0.0 }
 0x19c   :  { %1709 = vmatmul.bf16.gmra.mxu2 %v3506_v33  ;;  %v1024_v37 = vsel %vm768_vm10, %v554_v34, %v896_v29  ;;  %1798 = vmatmul.bf16.gmra.mxu3 %v3509_v10  ;;  %v1025_v28 = vsel %vm769_vm11, %v643_v5, %v897_v8  ;;  %v3658_v29 = vperm.slane %v1162_v53, 0 }
 0x19d   :  { %v3646_v36 = vpack.c.bf16 %v1024_v37, %v1020_v13  ;;  %v3649_v9 = vpack.c.bf16 %v1025_v28, %v1021_v59 }
 0x19f   :  { %4187 = vst [vmem:[#allocation57_spill] sm:$0xff] %v3646_v36  ;;  %v556_v49 = vpop.f32.mrf.mxu2  ;;  %v645_v35 = vpop.f32.mrf.mxu3 }
 0x1a0   :  { %4188 = vst [vmem:[#allocation58_spill] sm:$0xff] %v3649_v9  ;;  %v380_v21 = vpop.f32.mrf.mxu0  ;;  %v469_v0 = vpop.f32.mrf.mxu1  ;;  %v557_v5 = vadd.f32 %v556_v49, %v3279_v20  ;;  %v646_v47 = vadd.f32 %v645_v35, %v3281_v24 }
 0x1a1   :  { %v381_v54 = vadd.f32 %v380_v21, %v3269_v14  ;;  %v470_v30 = vadd.f32 %v469_v0, %v3271_v16  ;;  %v1026_v14 = vsel %vm770_vm12, %v379_v26, %v898_v56  ;;  %v1027_v16 = vsel %vm771_vm0, %v468_v63, %v899_v3 }
 0x1a2   :  { %v900_v21 = vmul.f32 0.2, %v557_v5  ;;  %vm772_vm15 = vcmp.gt.f32.partialorder %v557_v5, 0.0  ;;  %v901_v33 = vmul.f32 0.2, %v646_v47  ;;  %vm773_vm1 = vcmp.gt.f32.partialorder %v646_v47, 0.0 }
 0x1a3   :  { %vm774_vm13 = vcmp.gt.f32.partialorder %v381_v54, 0.0  ;;  %v902_v51 = vmul.f32 0.2, %v381_v54  ;;  %vm775_vm14 = vcmp.gt.f32.partialorder %v470_v30, 0.0  ;;  %v903_v34 = vmul.f32 0.2, %v470_v30 }
 0x1a5   :  { %v1030_v8 = vsel %vm774_vm13, %v381_v54, %v902_v51  ;;  %v1031_v37 = vsel %vm775_vm14, %v470_v30, %v903_v34 }
 0x1a6   :  { %v3660_v13 = vpack.c.bf16 %v1030_v8, %v1026_v14  ;;  %v3662_v28 = vpack.c.bf16 %v1031_v37, %v1027_v16 }
 0x1a7   :  { %v558_v59 = vpop.f32.mrf.mxu2  ;;  %v647_v10 = vpop.f32.mrf.mxu3 }
 0x1a8   :  { %4189 = vst [vmem:[#allocation59_spill] sm:$0xff] %v3660_v13  ;;  %v559_v0 = vadd.f32 %v558_v59, %v3279_v20  ;;  %v1497_v49 = vpop.f32.mrf.mxu0  ;;  %v648_v35 = vadd.f32 %v647_v10, %v3281_v24  ;;  %v1586_v26 = vpop.f32.mrf.mxu1  ;;  %v1028_v20 = vsel %vm772_vm15, %v557_v5, %v900_v21  ;;  %v1029_v10 = vsel %vm773_vm1, %v646_v47, %v901_v33 }
 0x1a9   :  { %4190 = vst [vmem:[#allocation60_spill] sm:$0xff] %v3662_v28  ;;  %v1498_v53 = vadd.f32 %v1497_v49, %v3658_v29 }
 0x1aa   :  { %vm776_vm2 = vcmp.gt.f32.partialorder %v559_v0, 0.0  ;;  %v904_v56 = vmul.f32 0.2, %v559_v0  ;;  %vm777_vm3 = vcmp.gt.f32.partialorder %v648_v35, 0.0  ;;  %v905_v63 = vmul.f32 0.2, %v648_v35  ;;  %1536 = vmatmul.bf16.gmra.mxu0 %v3515_v1 }
 0x1ab   :  { %v1587_v54 = vadd.f32 %v1586_v26, %v1498_v53  ;;  %1625 = vmatmul.bf16.gmra.mxu1 %v3517_v11 }
 0x1ac   :  { %1714 = vmatmul.bf16.gmra.mxu2 %v3526_v45  ;;  %v1032_v3 = vsel %vm776_vm2, %v559_v0, %v904_v56  ;;  %1803 = vmatmul.bf16.gmra.mxu3 %v3529_v50  ;;  %v1033_v30 = vsel %vm777_vm3, %v648_v35, %v905_v63 }
 0x1ad   :  { %v3671_v24 = vpack.c.bf16 %v1032_v3, %v1028_v20  ;;  %v3673_v51 = vpack.c.bf16 %v1033_v30, %v1029_v10  ;;  %v2974_v30 = vld [vmem:[#allocation9 + $0x74] sm:$0xf] }
 0x1af   :  { %4191 = vst [vmem:[#allocation61_spill] sm:$0xff] %v3671_v24  ;;  %v1675_v34 = vpop.f32.mrf.mxu2  ;;  %v1764_v8 = vpop.f32.mrf.mxu3 }
 0x1b0   :  { %4192 = vst [vmem:[#allocation62_spill] sm:$0xff] %v3673_v51  ;;  %v1676_v14 = vadd.f32 %v1675_v34, %v1587_v54  ;;  %v1499_v16 = vpop.f32.mrf.mxu0  ;;  %v1588_v59 = vpop.f32.mrf.mxu1 }
 0x1b1   :  { %v1500_v37 = vadd.f32 %v1499_v16, %v3658_v29 }
 0x1b2   :  { %v1765_v49 = vadd.f32 %v1764_v8, %v1676_v14 }
 0x1b3   :  { %v1589_v53 = vadd.f32 %v1588_v59, %v1500_v37 }
 0x1b4   :  { %v2264_v33 = vmul.f32 0.2, %v1765_v49  ;;  %vm2200_vm4 = vcmp.gt.f32.partialorder %v1765_v49, 0.0 }
 0x1b6   :  { %v3681_v54 = vsel %vm2200_vm4, %v1765_v49, %v2264_v33 }
 0x1b7   :  { %v1677_v26 = vpop.f32.mrf.mxu2  ;;  %v1766_v21 = vpop.f32.mrf.mxu3 }
 0x1b8   :  { %v1678_v5 = vadd.f32 %v1677_v26, %v1589_v53  ;;  %v1502_v0 = vpop.f32.mrf.mxu0  ;;  %v1591_v20 = vpop.f32.mrf.mxu1 }
 0x1b9   :  { %v1503_v56 = vadd.f32 %v1502_v0, %v3658_v29 }
 0x1ba   :  { %v1767_v47 = vadd.f32 %v1766_v21, %v1678_v5  ;;  %1541 = vmatmul.bf16.gmra.mxu0 %v3535_v27 }
 0x1bb   :  { %v1592_v35 = vadd.f32 %v1591_v20, %v1503_v56  ;;  %1630 = vmatmul.bf16.gmra.mxu1 %v3537_v4 }
 0x1bc   :  { %vm2202_vm5 = vcmp.gt.f32.partialorder %v1767_v47, 0.0  ;;  %v2266_v63 = vmul.f32 0.2, %v1767_v47  ;;  %1719 = vmatmul.bf16.gmra.mxu2 %v3546_v6  ;;  %1808 = vmatmul.bf16.gmra.mxu3 %v3549_v23 }
 0x1be   :  { %v3683_v3 = vsel %vm2202_vm5, %v1767_v47, %v2266_v63  ;;  %v3006_v63 = vld [vmem:[#allocation9 + $0x174] sm:$0xf] }
 0x1bf   :  { %v1680_v10 = vpop.f32.mrf.mxu2  ;;  %v1769_v14 = vpop.f32.mrf.mxu3 }
 0x1c0   :  { %v1681_v34 = vadd.f32 %v1680_v10, %v1592_v35  ;;  %v1504_v8 = vpop.f32.mrf.mxu0  ;;  %v1593_v37 = vpop.f32.mrf.mxu1  ;;  %v2874_v10 = vld [vmem:[#allocation9 + $0x178] sm:$0xf0] }
 0x1c1   :  { %v1505_v16 = vadd.f32 %v1504_v8, %v3658_v29 }
 0x1c2   :  { %v1770_v59 = vadd.f32 %v1769_v14, %v1681_v34  ;;  %v2877_v34 = vor.u32 %v3006_v63, %v2874_v10  ;;  %v3022_v63 = vld [vmem:[#allocation9 + $0x1f4] sm:$0xf]  ;;  %v2810_v10 = vld [vmem:[#allocation9 + $0xf8] sm:$0xf0] }
 0x1c3   :  { %v1594_v53 = vadd.f32 %v1593_v37, %v1505_v16 }
 0x1c4   :  { %v2268_v20 = vmul.f32 0.2, %v1770_v59  ;;  %vm2204_vm6 = vcmp.gt.f32.partialorder %v1770_v59, 0.0  ;;  %2022 = vmatpush.bf16.msra.mxu2 %v2877_v34 }
 0x1c6   :  { %v3693_v14 = vsel %vm2204_vm6, %v1770_v59, %v2268_v20  ;;  %v2938_v59 = vld [vmem:[#allocation9 + $0x1f8] sm:$0xf0] }
 0x1c7   :  { %v1682_v26 = vpop.f32.mrf.mxu2  ;;  %v1771_v21 = vpop.f32.mrf.mxu3 }
 0x1c8   :  { %v1683_v5 = vadd.f32 %v1682_v26, %v1594_v53  ;;  %v1507_v0 = vpop.f32.mrf.mxu0  ;;  %v1596_v56 = vpop.f32.mrf.mxu1 }
 0x1c9   :  { %v1508_v49 = vadd.f32 %v1507_v0, %v3658_v29 }
 0x1ca   :  { %v1772_v33 = vadd.f32 %v1771_v21, %v1683_v5  ;;  %1546 = vmatmul.bf16.gmra.mxu0 %v3555_v2  ;;  %v2922_v2 = vld [vmem:[#allocation9 + $0x1d8] sm:$0xf0] }
 0x1cb   :  { %v1597_v47 = vadd.f32 %v1596_v56, %v1508_v49  ;;  %1635 = vmatmul.bf16.gmra.mxu1 %v3557_v15 }
 0x1cc   :  { %vm2206_vm7 = vcmp.gt.f32.partialorder %v1772_v33, 0.0  ;;  %v2270_v35 = vmul.f32 0.2, %v1772_v33  ;;  %1724 = vmatmul.bf16.gmra.mxu2 %v3566_v41  ;;  %1813 = vmatmul.bf16.gmra.mxu3 %v3569_v43  ;;  %v2746_v43 = vld [vmem:[#allocation9 + $0x78] sm:$0xf0] }
 0x1cd   :  { %v2749_v20 = vor.u32 %v2974_v30, %v2746_v43 }
 0x1ce   :  { %v3695_v8 = vsel %vm2206_vm7, %v1772_v33, %v2270_v35  ;;  %v2941_v33 = vor.u32 %v3022_v63, %v2938_v59  ;;  %v2990_v35 = vld [vmem:[#allocation9 + $0xf4] sm:$0xf] }
 0x1cf   :  { %v1685_v16 = vpop.f32.mrf.mxu2  ;;  %v1774_v26 = vpop.f32.mrf.mxu3  ;;  %v2813_v15 = vor.u32 %v2990_v35, %v2810_v10  ;;  %1844 = vmatpush.bf16.msra.mxu0 %v2749_v20 }
 0x1d0   :  { %v1686_v53 = vadd.f32 %v1685_v16, %v1597_v47  ;;  %v1509_v5 = vpop.f32.mrf.mxu0  ;;  %v1598_v0 = vpop.f32.mrf.mxu1  ;;  %2111 = vmatpush.bf16.msra.mxu3 %v2941_v33 }
 0x1d1   :  { %v1510_v21 = vadd.f32 %v1509_v5, %v3658_v29  ;;  %1933 = vmatpush.bf16.msra.mxu1 %v2813_v15 }
 0x1d2   :  { %v1775_v49 = vadd.f32 %v1774_v26, %v1686_v53 }
 0x1d3   :  { %v1599_v56 = vadd.f32 %v1598_v0, %v1510_v21 }
 0x1d4   :  { %v2272_v53 = vmul.f32 0.2, %v1775_v49  ;;  %vm2208_vm8 = vcmp.gt.f32.partialorder %v1775_v49, 0.0 }
 0x1d7   :  { %v1687_v41 = vpop.f32.mrf.mxu2  ;;  %v1776_v47 = vpop.f32.mrf.mxu3 }
 0x1d8   :  { %v1688_v37 = vadd.f32 %v1687_v41, %v1599_v56  ;;  %v1512_v16 = vpop.f32.mrf.mxu0  ;;  %v1601_v5 = vpop.f32.mrf.mxu1  ;;  %v3705_v41 = vsel %vm2208_vm8, %v1775_v49, %v2272_v53 }
 0x1d9   :  { %v1513_v34 = vadd.f32 %v1512_v16, %v3658_v29 }
 0x1da   :  { %v1777_v26 = vadd.f32 %v1776_v47, %v1688_v37  ;;  %1551 = vmatmul.bf16.gmra.mxu0 %v3575_v44 }
 0x1db   :  { %v1602_v21 = vadd.f32 %v1601_v5, %v1513_v34  ;;  %1640 = vmatmul.bf16.gmra.mxu1 %v3577_v62  ;;  %v3018_v62 = vld [vmem:[#allocation9 + $0x1d4] sm:$0xf] }
 0x1dc   :  { %vm2210_vm9 = vcmp.gt.f32.partialorder %v1777_v26, 0.0  ;;  %v2274_v43 = vmul.f32 0.2, %v1777_v26  ;;  %1729 = vmatmul.bf16.gmra.mxu2 %v3586_v32  ;;  %1818 = vmatmul.bf16.gmra.mxu3 %v3589_v7  ;;  %v3002_v32 = vld [vmem:[#allocation9 + $0x154] sm:$0xf] }
 0x1de   :  { %v3707_v30 = vsel %vm2210_vm9, %v1777_v26, %v2274_v43 }
 0x1df   :  { %v1690_v0 = vpop.f32.mrf.mxu2  ;;  %v1779_v56 = vpop.f32.mrf.mxu3 }
 0x1e0   :  { %v1691_v37 = vadd.f32 %v1690_v0, %v1602_v21  ;;  %v1514_v63 = vpop.f32.mrf.mxu0  ;;  %v1603_v20 = vpop.f32.mrf.mxu1  ;;  %v3004_v0 = vld [vmem:[#allocation9 + $0x164] sm:$0xf] }
 0x1e1   :  { %v1515_v59 = vadd.f32 %v1514_v63, %v3658_v29 }
 0x1e2   :  { %v1780_v33 = vadd.f32 %v1779_v56, %v1691_v37  ;;  %v2866_v37 = vld [vmem:[#allocation9 + $0x168] sm:$0xf0] }
 0x1e3   :  { %v1604_v35 = vadd.f32 %v1603_v20, %v1515_v59  ;;  %v2869_v56 = vor.u32 %v3004_v0, %v2866_v37  ;;  %v2930_v0 = vld [vmem:[#allocation9 + $0x1e8] sm:$0xf0] }
 0x1e4   :  { %v2276_v53 = vmul.f32 0.2, %v1780_v33  ;;  %vm2212_vm10 = vcmp.gt.f32.partialorder %v1780_v33, 0.0 }
 0x1e5   :  { %2023 = vmatpush.bf16.msra.mxu2 %v2869_v56  ;;  %v2986_v56 = vld [vmem:[#allocation9 + $0xd4] sm:$0xf] }
 0x1e6   :  { %v3717_v63 = vsel %vm2212_vm10, %v1780_v33, %v2276_v53  ;;  %v2988_v33 = vld [vmem:[#allocation9 + $0xe4] sm:$0xf]  ;;  %v2802_v53 = vld [vmem:[#allocation9 + $0xe8] sm:$0xf0] }
 0x1e7   :  { %v1692_v10 = vpop.f32.mrf.mxu2  ;;  %v1781_v16 = vpop.f32.mrf.mxu3  ;;  %v2805_v37 = vor.u32 %v2988_v33, %v2802_v53  ;;  %v2786_v53 = vld [vmem:[#allocation9 + $0xc8] sm:$0xf0] }
 0x1e8   :  { %v1693_v47 = vadd.f32 %v1692_v10, %v1604_v35  ;;  %v1517_v34 = vpop.f32.mrf.mxu0  ;;  %v1606_v5 = vpop.f32.mrf.mxu1  ;;  %v2794_v35 = vld [vmem:[#allocation9 + $0xd8] sm:$0xf0] }
 0x1e9   :  { %v1518_v49 = vadd.f32 %v1517_v34, %v3658_v29  ;;  %v2972_v34 = vld [vmem:[#allocation9 + $0x64] sm:$0xf]  ;;  %1934 = vmatpush.bf16.msra.mxu1 %v2805_v37  ;;  %v2797_v7 = vor.u32 %v2986_v56, %v2794_v35  ;;  %v2850_v37 = vld [vmem:[#allocation9 + $0x148] sm:$0xf0] }
 0x1ea   :  { %v1782_v26 = vadd.f32 %v1781_v16, %v1693_v47  ;;  %1556 = vmatmul.bf16.gmra.mxu0 %v3595_v42  ;;  %v2914_v56 = vld [vmem:[#allocation9 + $0x1c8] sm:$0xf0] }
 0x1eb   :  { %v1607_v43 = vadd.f32 %v1606_v5, %v1518_v49  ;;  %1645 = vmatmul.bf16.gmra.mxu1 %v3597_v31  ;;  %v2738_v49 = vld [vmem:[#allocation9 + $0x68] sm:$0xf0]  ;;  %v3020_v5 = vld [vmem:[#allocation9 + $0x1e4] sm:$0xf] }
 0x1ec   :  { %vm2214_vm11 = vcmp.gt.f32.partialorder %v1782_v26, 0.0  ;;  %v2278_v21 = vmul.f32 0.2, %v1782_v26  ;;  %1734 = vmatmul.bf16.gmra.mxu2 %v3606_v48  ;;  %1823 = vmatmul.bf16.gmra.mxu3 %v3609_v57  ;;  %v2741_v48 = vor.u32 %v2972_v34, %v2738_v49 }
 0x1ed   :  { %1935 = vmatpush.bf16.msra.mxu1 %v2797_v7  ;;  %v2714_v7 = vld [vmem:[#allocation9 + $0x38] sm:$0xf0] }
 0x1ee   :  { %v3719_v59 = vsel %vm2214_vm11, %v1782_v26, %v2278_v21  ;;  %v2933_v21 = vor.u32 %v3020_v5, %v2930_v0  ;;  %1845 = vmatpush.bf16.msra.mxu0 %v2741_v48  ;;  %v2925_v48 = vor.u32 %v3018_v62, %v2922_v2  ;;  %v2984_v0 = vld [vmem:[#allocation9 + $0xc4] sm:$0xf] }
 0x1ef   :  { %v1695_v20 = vpop.f32.mrf.mxu2  ;;  %v1784_v47 = vpop.f32.mrf.mxu3 }
 0x1f0   :  { %v1696_v10 = vadd.f32 %v1695_v20, %v1607_v43  ;;  %v1519_v16 = vpop.f32.mrf.mxu0  ;;  %v1608_v57 = vpop.f32.mrf.mxu1  ;;  %2112 = vmatpush.bf16.msra.mxu3 %v2933_v21  ;;  %v2970_v43 = vld [vmem:[#allocation9 + $0x54] sm:$0xf]  ;;  %v2730_v20 = vld [vmem:[#allocation9 + $0x58] sm:$0xf0]  ;;  %v3000_v21 = vld [vmem:[#allocation9 + $0x144] sm:$0xf] }
 0x1f1   :  { %v1520_v15 = vadd.f32 %v1519_v16, %v3658_v29  ;;  %v2733_v42 = vor.u32 %v2970_v43, %v2730_v20  ;;  %v2858_v16 = vld [vmem:[#allocation9 + $0x158] sm:$0xf0]  ;;  %v2853_v43 = vor.u32 %v3000_v21, %v2850_v37  ;;  %v3016_v20 = vld [vmem:[#allocation9 + $0x1c4] sm:$0xf] }
 0x1f2   :  { %v1785_v26 = vadd.f32 %v1784_v47, %v1696_v10  ;;  %v2861_v44 = vor.u32 %v3002_v32, %v2858_v16  ;;  %v2917_v2 = vor.u32 %v3016_v20, %v2914_v56  ;;  %v2778_v16 = vld [vmem:[#allocation9 + $0xb8] sm:$0xf0]  ;;  %v2706_v20 = vld [vmem:[#allocation9 + $0x28] sm:$0xf0]  ;;  %v2980_v56 = vld [vmem:[#allocation9 + $0xa4] sm:$0xf] }
 0x1f3   :  { %v1609_v31 = vadd.f32 %v1608_v57, %v1520_v15  ;;  %1846 = vmatpush.bf16.msra.mxu0 %v2733_v42  ;;  %v2968_v57 = vld [vmem:[#allocation9 + $0x44] sm:$0xf]  ;;  %v2722_v15 = vld [vmem:[#allocation9 + $0x48] sm:$0xf0]  ;;  %v2982_v42 = vld [vmem:[#allocation9 + $0xb4] sm:$0xf] }
 0x1f4   :  { %v2280_v34 = vmul.f32 0.2, %v1785_v26  ;;  %2024 = vmatpush.bf16.msra.mxu2 %v2861_v44  ;;  %v2725_v35 = vor.u32 %v2968_v57, %v2722_v15  ;;  %vm2216_vm12 = vcmp.gt.f32.partialorder %v1785_v26, 0.0  ;;  %2113 = vmatpush.bf16.msra.mxu3 %v2925_v48  ;;  %v2966_v44 = vld [vmem:[#allocation9 + $0x34] sm:$0xf] }
 0x1f5   :  { %v2998_v48 = vld [vmem:[#allocation9 + $0x134] sm:$0xf]  ;;  %v2842_v57 = vld [vmem:[#allocation9 + $0x138] sm:$0xf0] }
 0x1f6   :  { %v3014_v15 = vld [vmem:[#allocation9 + $0x1b4] sm:$0xf]  ;;  %v2906_v21 = vld [vmem:[#allocation9 + $0x1b8] sm:$0xf0] }
 0x1f7   :  { %v1697_v49 = vpop.f32.mrf.mxu2  ;;  %v1786_v47 = vpop.f32.mrf.mxu3  ;;  %1847 = vmatpush.bf16.msra.mxu0 %v2725_v35  ;;  %v2845_v35 = vor.u32 %v2998_v48, %v2842_v57  ;;  %v3012_v48 = vld [vmem:[#allocation9 + $0x1a4] sm:$0xf]  ;;  %v2898_v57 = vld [vmem:[#allocation9 + $0x1a8] sm:$0xf0] }
 0x1f8   :  { %v1698_v10 = vadd.f32 %v1697_v49, %v1609_v31  ;;  %v3724_v5 = vpop.f32.mrf.mxu0  ;;  %v3726_v33 = vpop.f32.mrf.mxu1  ;;  %v2789_v31 = vor.u32 %v2984_v0, %v2786_v53  ;;  %v3733_v49 = vsel %vm2216_vm12, %v1785_v26, %v2280_v34  ;;  %2025 = vmatpush.bf16.msra.mxu2 %v2853_v43  ;;  %2114 = vmatpush.bf16.msra.mxu3 %v2917_v2  ;;  %v2964_v43 = vld [vmem:[#allocation9 + $0x24] sm:$0xf]  ;;  %v2834_v2 = vld [vmem:[#allocation9 + $0x128] sm:$0xf0] }
 0x1f9   :  { %v2901_v37 = vor.u32 %v3012_v48, %v2898_v57  ;;  %v2976_v48 = vld [vmem:[#allocation9 + $0x84] sm:$0xf] }
 0x1fa   :  { %v1787_v32 = vadd.f32 %v1786_v47, %v1698_v10  ;;  %1561 = vmatmul.bf16.gmra.mxu0 %v3615_v60  ;;  %1936 = vmatpush.bf16.msra.mxu1 %v2789_v31  ;;  %v2717_v10 = vor.u32 %v2966_v44, %v2714_v7  ;;  %v2781_v47 = vor.u32 %v2982_v42, %v2778_v16  ;;  %v2996_v7 = vld [vmem:[#allocation9 + $0x124] sm:$0xf]  ;;  %v3010_v60 = vld [vmem:[#allocation9 + $0x194] sm:$0xf] }
 0x1fb   :  { %1650 = vmatmul.bf16.gmra.mxu1 %v3617_v22  ;;  %v2909_v31 = vor.u32 %v3014_v15, %v2906_v21  ;;  %v2837_v16 = vor.u32 %v2996_v7, %v2834_v2  ;;  %v2698_v15 = vld [vmem:[#allocation9 + $0x18] sm:$0xf0]  ;;  %v2978_v21 = vld [vmem:[#allocation9 + $0x94] sm:$0xf]  ;;  %v2690_v2 = vld [vmem:[#allocation9 + $0x8] sm:$0xf0] }
 0x1fc   :  { %vm2218_vm0 = vcmp.gt.f32.partialorder %v1787_v32, 0.0  ;;  %v2282_v62 = vmul.f32 0.2, %v1787_v32  ;;  %1739 = vmatmul.bf16.gmra.mxu2 %v3626_v17  ;;  %1828 = vmatmul.bf16.gmra.mxu3 %v3629_v18  ;;  %v2962_v18 = vld [vmem:[#allocation9 + $0x14] sm:$0xf] }
 0x1fd   :  { %1848 = vmatpush.bf16.msra.mxu0 %v2717_v10  ;;  %2026 = vmatpush.bf16.msra.mxu2 %v2845_v35  ;;  %v2762_v17 = vld [vmem:[#allocation9 + $0x98] sm:$0xf0]  ;;  %v2701_v10 = vor.u32 %v2962_v18, %v2698_v15  ;;  %v2754_v18 = vld [vmem:[#allocation9 + $0x88] sm:$0xf0] }
 0x1fe   :  { %v3736_v0 = vsel %vm2218_vm0, %v1787_v32, %v2282_v62  ;;  %v2709_v32 = vor.u32 %v2964_v43, %v2706_v20  ;;  %v2770_v62 = vld [vmem:[#allocation9 + $0xa8] sm:$0xf0]  ;;  %1937 = vmatpush.bf16.msra.mxu1 %v2781_v47  ;;  %2115 = vmatpush.bf16.msra.mxu3 %v2909_v31  ;;  %v2765_v43 = vor.u32 %v2978_v21, %v2762_v17  ;;  %v2994_v20 = vld [vmem:[#allocation9 + $0x114] sm:$0xf]  ;;  %v2826_v22 = vld [vmem:[#allocation9 + $0x118] sm:$0xf0] }
 0x1ff   :  { %v3738_v53 = vpop.f32.mrf.mxu2  ;;  %v3742_v26 = vpop.f32.mrf.mxu3  ;;  %v2773_v42 = vor.u32 %v2980_v56, %v2770_v62  ;;  %v2829_v35 = vor.u32 %v2994_v20, %v2826_v22  ;;  %v2890_v56 = vld [vmem:[#allocation9 + $0x198] sm:$0xf0]  ;;  %v2992_v17 = vld [vmem:[#allocation9 + $0x104] sm:$0xf]  ;;  %v2757_v15 = vor.u32 %v2976_v48, %v2754_v18  ;;  %v2882_v22 = vld [vmem:[#allocation9 + $0x188] sm:$0xf0] }
 0x200   :  { %v3744_v34 = vpop.f32.mrf.mxu0  ;;  %v3746_v44 = vpop.f32.mrf.mxu1  ;;  %v2893_v7 = vor.u32 %v3010_v60, %v2890_v56 }
 0x201   :  { %1849 = vmatpush.bf16.msra.mxu0 %v2709_v32  ;;  %2027 = vmatpush.bf16.msra.mxu2 %v2837_v16  ;;  %v2960_v32 = vld [vmem:[#allocation9 + $0x4] sm:$0xf]  ;;  %v2818_v16 = vld [vmem:[#allocation9 + $0x108] sm:$0xf0] }
 0x202   :  { %1938 = vmatpush.bf16.msra.mxu1 %v2773_v42  ;;  %2116 = vmatpush.bf16.msra.mxu3 %v2901_v37  ;;  %v2693_v42 = vor.u32 %v2960_v32, %v2690_v2  ;;  %v2821_v21 = vor.u32 %v2992_v17, %v2818_v16  ;;  %v3008_v37 = vld [vmem:[#allocation9 + $0x184] sm:$0xf] }
 0x203   :  { %v2885_v20 = vor.u32 %v3008_v37, %v2882_v22 }
 0x205   :  { %1850 = vmatpush.bf16.msra.mxu0 %v2701_v10  ;;  %2028 = vmatpush.bf16.msra.mxu2 %v2829_v35 }
 0x206   :  { %1939 = vmatpush.bf16.msra.mxu1 %v2765_v43  ;;  %2117 = vmatpush.bf16.msra.mxu3 %v2893_v7 }
 0x207   :  { %v3748_v47 = vpop.f32.mrf.mxu2  ;;  %v3750_v62 = vpop.f32.mrf.mxu3 }
 0x208   :  { %v1527_v31 = vpop.f32.mrf.mxu0  ;;  %v1616_v57 = vpop.f32.mrf.mxu1 }
 0x209   :  { %1851 = vmatpush.bf16.msra.mxu0 %v2693_v42  ;;  %2029 = vmatpush.bf16.msra.mxu2 %v2821_v21 }
 0x20a   :  { %1566 = vmatmul.bf16.gmra.mxu0 %v3635_v46  ;;  %1940 = vmatpush.bf16.msra.mxu1 %v2757_v15 }
 0x20b   :  { %1655 = vmatmul.bf16.gmra.mxu1 %v3637_v25  ;;  %2118 = vmatpush.bf16.msra.mxu3 %v2885_v20  ;;  %v1528_v20 = vadd.f32 %v1527_v31, %v3658_v29 }
 0x20c   :  { %1744 = vmatmul.bf16.gmra.mxu2 %v3646_v36  ;;  %1833 = vmatmul.bf16.gmra.mxu3 %v3649_v9 }
 0x20d   :  { %v1617_v36 = vadd.f32 %v1616_v57, %v1528_v20  ;;  %v1523_v57 = vadd.f32 %v3724_v5, %v3658_v29 }
 0x20f   :  { %v1705_v60 = vpop.f32.mrf.mxu2  ;;  %v1794_v10 = vpop.f32.mrf.mxu3 }
 0x210   :  { %v1529_v43 = vpop.f32.mrf.mxu0  ;;  %v1618_v35 = vpop.f32.mrf.mxu1 }
 0x211   :  { %v1530_v21 = vadd.f32 %v1529_v43, %v3658_v29  ;;  %v1525_v43 = vadd.f32 %v3744_v34, %v3658_v29 }
 0x217   :  { %v1707_v56 = vpop.f32.mrf.mxu2  ;;  %v1796_v32 = vpop.f32.mrf.mxu3 }
 0x218   :  { %v1532_v2 = vpop.f32.mrf.mxu0  ;;  %v1621_v48 = vpop.f32.mrf.mxu1 }
 0x219   :  { %v1533_v7 = vadd.f32 %v1532_v2, %v3658_v29 }
 0x21a   :  { %1571 = vmatmul.bf16.gmra.mxu0 %v3660_v13  ;;  %v1619_v13 = vadd.f32 %v1618_v35, %v1530_v21 }
 0x21b   :  { %1660 = vmatmul.bf16.gmra.mxu1 %v3662_v28  ;;  %v1622_v18 = vadd.f32 %v1621_v48, %v1533_v7 }
 0x21c   :  { %1749 = vmatmul.bf16.gmra.mxu2 %v3671_v24  ;;  %1838 = vmatmul.bf16.gmra.mxu3 %v3673_v51  ;;  %v1708_v24 = vadd.f32 %v1707_v56, %v1619_v13 }
 0x21e   :  { %v1797_v13 = vadd.f32 %v1796_v32, %v1708_v24 }
 0x21f   :  { %v1710_v42 = vpop.f32.mrf.mxu2  ;;  %v1799_v17 = vpop.f32.mrf.mxu3 }
 0x220   :  { %v1534_v16 = vpop.f32.mrf.mxu0  ;;  %v1623_v15 = vpop.f32.mrf.mxu1  ;;  %v1711_v37 = vadd.f32 %v1710_v42, %v1622_v18  ;;  %v1706_v42 = vadd.f32 %v1705_v60, %v1617_v36  ;;  %v2290_v24 = vmul.f32 0.2, %v1797_v13  ;;  %vm2226_vm15 = vcmp.gt.f32.partialorder %v1797_v13, 0.0 }
 0x221   :  { %v1535_v22 = vadd.f32 %v1534_v16, %v3658_v29 }
 0x222   :  { %v1800_v2 = vadd.f32 %v1799_v17, %v1711_v37  ;;  %v1795_v36 = vadd.f32 %v1794_v10, %v1706_v42 }
 0x223   :  { %v1624_v9 = vadd.f32 %v1623_v15, %v1535_v22 }
 0x224   :  { %v2292_v18 = vmul.f32 0.2, %v1800_v2  ;;  %vm2228_vm13 = vcmp.gt.f32.partialorder %v1800_v2, 0.0  ;;  %vm2224_vm1 = vcmp.gt.f32.partialorder %v1795_v36, 0.0 }
 0x227   :  { %v1712_v28 = vpop.f32.mrf.mxu2  ;;  %v1801_v51 = vpop.f32.mrf.mxu3 }
 0x228   :  { %v1713_v25 = vadd.f32 %v1712_v28, %v1624_v9  ;;  %v1537_v46 = vpop.f32.mrf.mxu0  ;;  %v1626_v7 = vpop.f32.mrf.mxu1 }
 0x229   :  { %v1538_v48 = vadd.f32 %v1537_v46, %v3658_v29  ;;  %v1614_v46 = vadd.f32 %v3746_v44, %v1525_v43  ;;  %v2288_v44 = vmul.f32 0.2, %v1795_v36 }
 0x22a   :  { %v1802_v16 = vadd.f32 %v1801_v51, %v1713_v25  ;;  %1852 = vmatmul.bf16.vlgmr.msra.gmra.mxu0 %v3287_v38  ;;  %v2356_v25 = vsel %vm2228_vm13, %v1800_v2, %v2292_v18  ;;  %v1612_v38 = vadd.f32 %v3726_v33, %v1523_v57  ;;  %v2354_v33 = vsel %vm2226_vm15, %v1797_v13, %v2290_v24 }
 0x22b   :  { %v1627_v31 = vadd.f32 %v1626_v7, %v1538_v48  ;;  %1941 = vmatmul.bf16.vlgmr.msra.gmra.mxu1 %v3289_v40  ;;  %v1703_v5 = vadd.f32 %v3748_v47, %v1614_v46  ;;  %v2352_v15 = vsel %vm2224_vm1, %v1795_v36, %v2288_v44 }
 0x22c   :  { %vm2230_vm14 = vcmp.gt.f32.partialorder %v1802_v16, 0.0  ;;  %v2294_v9 = vmul.f32 0.2, %v1802_v16  ;;  %2030 = vmatmul.bf16.vlgmr.msra.gmra.mxu2 %v3296_v55  ;;  %2119 = vmatmul.bf16.vlgmr.msra.gmra.mxu3 %v3300_v58  ;;  %v1701_v58 = vadd.f32 %v3738_v53, %v1612_v38  ;;  %v2405_v37 = vpack.c.bf16 %v2354_v33, %v2352_v15  ;;  %v4196_v33 = vld [vmem:[#allocation18_spill] sm:$0xff]  ;;  %v4198_v15 = vld [vmem:[#allocation20_spill] sm:$0xff] }
 0x22d   :  { %v1792_v17 = vadd.f32 %v3750_v62, %v1703_v5 }
 0x22e   :  { %v2358_v28 = vsel %vm2230_vm14, %v1802_v16, %v2294_v9  ;;  %v1790_v47 = vadd.f32 %v3742_v26, %v1701_v58 }
 0x22f   :  { %v2407_v51 = vpack.c.bf16 %v2358_v28, %v2356_v25  ;;  %v1715_v34 = vpop.f32.mrf.mxu2  ;;  %v1804_v35 = vpop.f32.mrf.mxu3  ;;  %v2286_v22 = vmul.f32 0.2, %v1792_v17  ;;  %vm2222_vm2 = vcmp.gt.f32.partialorder %v1792_v17, 0.0 }
 0x230   :  { %v1716_v60 = vadd.f32 %v1715_v34, %v1627_v31  ;;  %v1539_v56 = vpop.f32.mrf.mxu0  ;;  %v1628_v55 = vpop.f32.mrf.mxu1  ;;  %v2284_v43 = vmul.f32 0.2, %v1790_v47  ;;  %vm2220_vm3 = vcmp.gt.f32.partialorder %v1790_v47, 0.0  ;;  %v4193_v31 = vld [vmem:[#allocation16_spill] sm:$0xff] }
 0x231   :  { %v1540_v40 = vadd.f32 %v1539_v56, %v3658_v29  ;;  %2438 = vmatpush.bf16.xpose.msrb.mxu0 %v2407_v51  ;;  %v2350_v16 = vsel %vm2222_vm2, %v1792_v17, %v2286_v22 }
 0x232   :  { %v1805_v10 = vadd.f32 %v1804_v35, %v1716_v60  ;;  %v2348_v57 = vsel %vm2220_vm3, %v1790_v47, %v2284_v43  ;;  %v4197_v47 = vld [vmem:[#allocation19_spill] sm:$0xff] }
 0x233   :  { %v1629_v32 = vadd.f32 %v1628_v55, %v1540_v40  ;;  %v2403_v36 = vpack.c.bf16 %v2350_v16, %v2348_v57  ;;  %v4194_v55 = vpack.c.bf16 %v3736_v0, %v3733_v49 }
 0x234   :  { %v2296_v42 = vmul.f32 0.2, %v1805_v10  ;;  %vm2232_vm4 = vcmp.gt.f32.partialorder %v1805_v10, 0.0 }
 0x236   :  { %v3785_v13 = vsel %vm2232_vm4, %v1805_v10, %v2296_v42 }
 0x237   :  { %v1717_v21 = vpop.f32.mrf.mxu2  ;;  %v1806_v2 = vpop.f32.mrf.mxu3 }
 0x238   :  { %v1718_v20 = vadd.f32 %v1717_v21, %v1629_v32  ;;  %v1542_v48 = vpop.f32.mrf.mxu0  ;;  %v1631_v53 = vpop.f32.mrf.mxu1  ;;  %v4195_v32 = vld [vmem:[#allocation17_spill] sm:$0xff] }
 0x239   :  { %v1543_v7 = vadd.f32 %v1542_v48, %v3658_v29  ;;  %2439 = vmatpush.bf16.xpose.msrb.mxu0 %v2405_v37 }
 0x23a   :  { %v1807_v18 = vadd.f32 %v1806_v2, %v1718_v20  ;;  %1857 = vmatmul.bf16.gmra.mxu0 %v3307_v12 }
 0x23b   :  { %v1632_v62 = vadd.f32 %v1631_v53, %v1543_v7  ;;  %1946 = vmatmul.bf16.gmra.mxu1 %v3309_v19  ;;  %v4199_v53 = vpack.c.bf16 %v3719_v59, %v3717_v63  ;;  %v4202_v59 = vld [vmem:[#allocation22_spill] sm:$0xff] }
 0x23c   :  { %vm2234_vm5 = vcmp.gt.f32.partialorder %v1807_v18, 0.0  ;;  %v2298_v26 = vmul.f32 0.2, %v1807_v18  ;;  %2035 = vmatmul.bf16.gmra.mxu2 %v3319_v39  ;;  %2124 = vmatmul.bf16.gmra.mxu3 %v4193_v31 }
 0x23e   :  { %v3787_v9 = vsel %vm2234_vm5, %v1807_v18, %v2298_v26 }
 0x23f   :  { %v1720_v46 = vpop.f32.mrf.mxu2  ;;  %v2409_v25 = vpack.c.bf16 %v3787_v9, %v3785_v13  ;;  %v1809_v28 = vpop.f32.mrf.mxu3 }
 0x240   :  { %v1721_v12 = vadd.f32 %v1720_v46, %v1632_v62  ;;  %v1544_v51 = vpop.f32.mrf.mxu0  ;;  %v1633_v34 = vpop.f32.mrf.mxu1  ;;  %v4200_v46 = vpack.c.bf16 %v3707_v30, %v3705_v41 }
 0x241   :  { %v1545_v19 = vadd.f32 %v1544_v51, %v3658_v29  ;;  %2440 = vmatpush.bf16.xpose.msrb.mxu0 %v2403_v36  ;;  %v4201_v51 = vld [vmem:[#allocation21_spill] sm:$0xff] }
 0x242   :  { %v1810_v39 = vadd.f32 %v1809_v28, %v1721_v12 }
 0x243   :  { %v1634_v38 = vadd.f32 %v1633_v34, %v1545_v19  ;;  %v4203_v19 = vld [vmem:[#allocation23_spill] sm:$0xff]  ;;  %v4204_v34 = vld [vmem:[#allocation24_spill] sm:$0xff] }
 0x244   :  { %v2300_v58 = vmul.f32 0.2, %v1810_v39  ;;  %vm2236_vm6 = vcmp.gt.f32.partialorder %v1810_v39, 0.0 }
 0x246   :  { %v3800_v21 = vsel %vm2236_vm6, %v1810_v39, %v2300_v58 }
 0x247   :  { %v1722_v5 = vpop.f32.mrf.mxu2  ;;  %v1811_v60 = vpop.f32.mrf.mxu3 }
 0x248   :  { %v1723_v24 = vadd.f32 %v1722_v5, %v1634_v38  ;;  %v1547_v35 = vpop.f32.mrf.mxu0  ;;  %v1636_v40 = vpop.f32.mrf.mxu1 }
 0x249   :  { %v1548_v56 = vadd.f32 %v1547_v35, %v3658_v29  ;;  %2441 = vmatpush.bf16.xpose.msrb.mxu0 %v4194_v55 }
 0x24a   :  { %v1812_v44 = vadd.f32 %v1811_v60, %v1723_v24  ;;  %1862 = vmatmul.bf16.gmra.mxu0 %v4195_v32 }
 0x24b   :  { %v1637_v10 = vadd.f32 %v1636_v40, %v1548_v56  ;;  %1951 = vmatmul.bf16.gmra.mxu1 %v4196_v33  ;;  %v4205_v40 = vpack.c.bf16 %v3695_v8, %v3693_v14  ;;  %v4208_v8 = vld [vmem:[#allocation26_spill] sm:$0xff] }
 0x24c   :  { %vm2238_vm7 = vcmp.gt.f32.partialorder %v1812_v44, 0.0  ;;  %v2302_v17 = vmul.f32 0.2, %v1812_v44  ;;  %2040 = vmatmul.bf16.gmra.mxu2 %v4197_v47  ;;  %2129 = vmatmul.bf16.gmra.mxu3 %v4198_v15  ;;  %v4206_v15 = vpack.c.bf16 %v3683_v3, %v3681_v54 }
 0x24e   :  { %v3802_v37 = vsel %vm2238_vm7, %v1812_v44, %v2302_v17 }
 0x24f   :  { %v1725_v49 = vpop.f32.mrf.mxu2  ;;  %v2411_v0 = vpack.c.bf16 %v3802_v37, %v3800_v21  ;;  %v1814_v20 = vpop.f32.mrf.mxu3  ;;  %v4230_v37 = vld [vmem:[#allocation48_spill] sm:$0xff] }
 0x250   :  { %v1726_v22 = vadd.f32 %v1725_v49, %v1637_v10  ;;  %v1549_v2 = vpop.f32.mrf.mxu0  ;;  %v1638_v7 = vpop.f32.mrf.mxu1 }
 0x251   :  { %v1550_v48 = vadd.f32 %v1549_v2, %v3658_v29  ;;  %2442 = vmatpush.bf16.xpose.msrb.mxu0 %v4199_v53  ;;  %v4207_v2 = vld [vmem:[#allocation25_spill] sm:$0xff] }
 0x252   :  { %v1815_v43 = vadd.f32 %v1814_v20, %v1726_v22 }
 0x253   :  { %v1639_v42 = vadd.f32 %v1638_v7, %v1550_v48  ;;  %v4209_v48 = vld [vmem:[#allocation27_spill] sm:$0xff]  ;;  %v4210_v7 = vld [vmem:[#allocation28_spill] sm:$0xff] }
 0x254   :  { %v2304_v36 = vmul.f32 0.2, %v1815_v43  ;;  %vm2240_vm8 = vcmp.gt.f32.partialorder %v1815_v43, 0.0 }
 0x256   :  { %v3818_v39 = vsel %vm2240_vm8, %v1815_v43, %v2304_v36 }
 0x257   :  { %v1727_v18 = vpop.f32.mrf.mxu2  ;;  %v1816_v26 = vpop.f32.mrf.mxu3 }
 0x258   :  { %v1728_v62 = vadd.f32 %v1727_v18, %v1639_v42  ;;  %v1552_v16 = vpop.f32.mrf.mxu0  ;;  %v1641_v57 = vpop.f32.mrf.mxu1 }
 0x259   :  { %v1553_v31 = vadd.f32 %v1552_v16, %v3658_v29  ;;  %2443 = vmatpush.bf16.xpose.msrb.mxu0 %v4200_v46 }
 0x25a   :  { %v1817_v12 = vadd.f32 %v1816_v26, %v1728_v62  ;;  %1867 = vmatmul.bf16.gmra.mxu0 %v4201_v51 }
 0x25b   :  { %v1642_v28 = vadd.f32 %v1641_v57, %v1553_v31  ;;  %1956 = vmatmul.bf16.gmra.mxu1 %v4202_v59 }
 0x25c   :  { %vm2242_vm9 = vcmp.gt.f32.partialorder %v1817_v12, 0.0  ;;  %v2306_v63 = vmul.f32 0.2, %v1817_v12  ;;  %2045 = vmatmul.bf16.gmra.mxu2 %v4203_v19  ;;  %2134 = vmatmul.bf16.gmra.mxu3 %v4204_v34  ;;  %v4211_v19 = vld [vmem:[#allocation29_spill] sm:$0xff] }
 0x25e   :  { %v3820_v38 = vsel %vm2242_vm9, %v1817_v12, %v2306_v63 }
 0x25f   :  { %v1730_v41 = vpop.f32.mrf.mxu2  ;;  %v2413_v30 = vpack.c.bf16 %v3820_v38, %v3818_v39  ;;  %v1819_v24 = vpop.f32.mrf.mxu3 }
 0x260   :  { %v1731_v5 = vadd.f32 %v1730_v41, %v1642_v28  ;;  %v1554_v60 = vpop.f32.mrf.mxu0  ;;  %v1643_v56 = vpop.f32.mrf.mxu1  ;;  %v4212_v41 = vld [vmem:[#allocation30_spill] sm:$0xff] }
 0x261   :  { %v1555_v35 = vadd.f32 %v1554_v60, %v3658_v29  ;;  %2444 = vmatpush.bf16.xpose.msrb.mxu0 %v4205_v40 }
 0x262   :  { %v1820_v55 = vadd.f32 %v1819_v24, %v1731_v5  ;;  %v4213_v5 = vld [vmem:[#allocation31_spill] sm:$0xff]  ;;  %v4214_v24 = vld [vmem:[#allocation32_spill] sm:$0xff] }
 0x263   :  { %v1644_v58 = vadd.f32 %v1643_v56, %v1555_v35 }
 0x264   :  { %v2308_v49 = vmul.f32 0.2, %v1820_v55  ;;  %vm2244_vm10 = vcmp.gt.f32.partialorder %v1820_v55, 0.0 }
 0x266   :  { %v3836_v53 = vsel %vm2244_vm10, %v1820_v55, %v2308_v49  ;;  %v4217_v49 = vld [vmem:[#allocation35_spill] sm:$0xff] }
 0x267   :  { %v1732_v44 = vpop.f32.mrf.mxu2  ;;  %v1821_v32 = vpop.f32.mrf.mxu3 }
 0x268   :  { %v1733_v10 = vadd.f32 %v1732_v44, %v1644_v58  ;;  %v1557_v17 = vpop.f32.mrf.mxu0  ;;  %v1646_v47 = vpop.f32.mrf.mxu1 }
 0x269   :  { %v1558_v33 = vadd.f32 %v1557_v17, %v3658_v29  ;;  %2445 = vmatpush.bf16.xpose.msrb.mxu0 %v4206_v15  ;;  %v4216_v15 = vld [vmem:[#allocation34_spill] sm:$0xff] }
 0x26a   :  { %v1822_v22 = vadd.f32 %v1821_v32, %v1733_v10  ;;  %1872 = vmatmul.bf16.gmra.mxu0 %v4207_v2 }
 0x26b   :  { %v1647_v20 = vadd.f32 %v1646_v47, %v1558_v33  ;;  %1961 = vmatmul.bf16.gmra.mxu1 %v4208_v8  ;;  %v4215_v47 = vld [vmem:[#allocation33_spill] sm:$0xff] }
 0x26c   :  { %vm2246_vm11 = vcmp.gt.f32.partialorder %v1822_v22, 0.0  ;;  %v2310_v14 = vmul.f32 0.2, %v1822_v22  ;;  %2050 = vmatmul.bf16.gmra.mxu2 %v4209_v48  ;;  %2139 = vmatmul.bf16.gmra.mxu3 %v4210_v7 }
 0x26e   :  { %v3838_v43 = vsel %vm2246_vm11, %v1822_v22, %v2310_v14  ;;  %v4218_v22 = vld [vmem:[#allocation36_spill] sm:$0xff] }
 0x26f   :  { %v1735_v54 = vpop.f32.mrf.mxu2  ;;  %v2415_v3 = vpack.c.bf16 %v3838_v43, %v3836_v53  ;;  %v1824_v18 = vpop.f32.mrf.mxu3  ;;  %v4226_v43 = vld [vmem:[#allocation44_spill] sm:$0xff] }
 0x270   :  { %v1736_v42 = vadd.f32 %v1735_v54, %v1647_v20  ;;  %v1559_v62 = vpop.f32.mrf.mxu0  ;;  %v1648_v16 = vpop.f32.mrf.mxu1 }
 0x271   :  { %v1560_v26 = vadd.f32 %v1559_v62, %v3658_v29  ;;  %v4219_v62 = vld [vmem:[#allocation37_spill] sm:$0xff] }
 0x272   :  { %v1825_v31 = vadd.f32 %v1824_v18, %v1736_v42 }
 0x273   :  { %v1649_v57 = vadd.f32 %v1648_v16, %v1560_v26  ;;  %v4220_v26 = vld [vmem:[#allocation38_spill] sm:$0xff] }
 0x274   :  { %v2312_v63 = vmul.f32 0.2, %v1825_v31  ;;  %vm2248_vm12 = vcmp.gt.f32.partialorder %v1825_v31, 0.0 }
 0x276   :  { %v3851_v60 = vsel %vm2248_vm12, %v1825_v31, %v2312_v63 }
 0x277   :  { %v1737_v46 = vpop.f32.mrf.mxu2  ;;  %v1826_v12 = vpop.f32.mrf.mxu3 }
 0x278   :  { %v1738_v36 = vadd.f32 %v1737_v46, %v1649_v57  ;;  %v3843_v28 = vpop.f32.mrf.mxu0  ;;  %v3845_v51 = vpop.f32.mrf.mxu1 }
 0x27a   :  { %v1827_v59 = vadd.f32 %v1826_v12, %v1738_v36  ;;  %1877 = vmatmul.bf16.gmra.mxu0 %v4211_v19 }
 0x27b   :  { %1966 = vmatmul.bf16.gmra.mxu1 %v4212_v41 }
 0x27c   :  { %vm2250_vm0 = vcmp.gt.f32.partialorder %v1827_v59, 0.0  ;;  %v2314_v34 = vmul.f32 0.2, %v1827_v59  ;;  %2055 = vmatmul.bf16.gmra.mxu2 %v4213_v5  ;;  %2144 = vmatmul.bf16.gmra.mxu3 %v4214_v24 }
 0x27e   :  { %v3853_v35 = vsel %vm2250_vm0, %v1827_v59, %v2314_v34 }
 0x27f   :  { %v3855_v56 = vpop.f32.mrf.mxu2  ;;  %v2417_v40 = vpack.c.bf16 %v3853_v35, %v3851_v60  ;;  %v3859_v55 = vpop.f32.mrf.mxu3 }
 0x280   :  { %v1564_v58 = vpop.f32.mrf.mxu0  ;;  %v1653_v44 = vpop.f32.mrf.mxu1 }
 0x287   :  { %v3861_v10 = vpop.f32.mrf.mxu2  ;;  %v3863_v32 = vpop.f32.mrf.mxu3 }
 0x288   :  { %v1567_v17 = vpop.f32.mrf.mxu0  ;;  %v1656_v33 = vpop.f32.mrf.mxu1 }
 0x28a   :  { %1882 = vmatmul.bf16.gmra.mxu0 %v4215_v47 }
 0x28b   :  { %1971 = vmatmul.bf16.gmra.mxu1 %v4216_v15 }
 0x28c   :  { %2060 = vmatmul.bf16.gmra.mxu2 %v4217_v49  ;;  %2149 = vmatmul.bf16.gmra.mxu3 %v4218_v22 }
 0x28f   :  { %v1745_v20 = vpop.f32.mrf.mxu2  ;;  %v1834_v2 = vpop.f32.mrf.mxu3 }
 0x290   :  { %v1569_v14 = vpop.f32.mrf.mxu0  ;;  %v1658_v8 = vpop.f32.mrf.mxu1 }
 0x291   :  { %v1570_v12 = vadd.f32 %v1569_v14, %v3658_v29 }
 0x293   :  { %v1659_v34 = vadd.f32 %v1658_v8, %v1570_v12  ;;  %v1563_v8 = vadd.f32 %v3843_v28, %v3658_v29 }
 0x297   :  { %v1747_v48 = vpop.f32.mrf.mxu2  ;;  %v1836_v7 = vpop.f32.mrf.mxu3 }
 0x298   :  { %v1572_v54 = vpop.f32.mrf.mxu0  ;;  %v1661_v42 = vpop.f32.mrf.mxu1  ;;  %v1748_v15 = vadd.f32 %v1747_v48, %v1659_v34 }
 0x299   :  { %v1573_v18 = vadd.f32 %v1572_v54, %v3658_v29 }
 0x29a   :  { %1887 = vmatmul.bf16.gmra.mxu0 %v3495_v61  ;;  %v1568_v61 = vadd.f32 %v1567_v17, %v3658_v29  ;;  %v1565_v17 = vadd.f32 %v1564_v58, %v3658_v29 }
 0x29b   :  { %1976 = vmatmul.bf16.gmra.mxu1 %v3497_v52  ;;  %v1662_v31 = vadd.f32 %v1661_v42, %v1573_v18  ;;  %v3043_v52 = vld [vmem:[%s4095_s4] sm:$0x3] }
 0x29c   :  { %2065 = vmatmul.bf16.gmra.mxu2 %v4219_v62  ;;  %2154 = vmatmul.bf16.gmra.mxu3 %v4220_v26  ;;  %v3880_v19 = vperm.slane %v3043_v52, 1  ;;  %v1657_v47 = vadd.f32 %v1656_v33, %v1568_v61  ;;  %v1837_v33 = vadd.f32 %v1836_v7, %v1748_v15  ;;  %v1654_v58 = vadd.f32 %v1653_v44, %v1565_v17 }
 0x29e   :  { %v1746_v18 = vadd.f32 %v1745_v20, %v1657_v47  ;;  %v1743_v12 = vadd.f32 %v3861_v10, %v1654_v58  ;;  %vm2258_vm15 = vcmp.gt.f32.partialorder %v1837_v33, 0.0 }
 0x29f   :  { %v1750_v16 = vpop.f32.mrf.mxu2  ;;  %v1839_v57 = vpop.f32.mrf.mxu3 }
 0x2a0   :  { %v1574_v46 = vpop.f32.mrf.mxu0  ;;  %v1663_v36 = vpop.f32.mrf.mxu1  ;;  %v1751_v63 = vadd.f32 %v1750_v16, %v1662_v31  ;;  %v1835_v20 = vadd.f32 %v1834_v2, %v1746_v18  ;;  %v1832_v61 = vadd.f32 %v3863_v32, %v1743_v12 }
 0x2a1   :  { %v1575_v59 = vadd.f32 %v1574_v46, %v3658_v29  ;;  %v2322_v29 = vmul.f32 0.2, %v1837_v33 }
 0x2a2   :  { %v1840_v41 = vadd.f32 %v1839_v57, %v1751_v63  ;;  %v2320_v44 = vmul.f32 0.2, %v1835_v20  ;;  %vm2256_vm1 = vcmp.gt.f32.partialorder %v1835_v20, 0.0  ;;  %vm2254_vm2 = vcmp.gt.f32.partialorder %v1832_v61, 0.0 }
 0x2a3   :  { %v1664_v5 = vadd.f32 %v1663_v36, %v1575_v59 }
 0x2a4   :  { %v2324_v62 = vmul.f32 0.2, %v1840_v41  ;;  %vm2260_vm13 = vcmp.gt.f32.partialorder %v1840_v41, 0.0  ;;  %v2384_v52 = vsel %vm2256_vm1, %v1835_v20, %v2320_v44 }
 0x2a6   :  { %v2388_v31 = vsel %vm2260_vm13, %v1840_v41, %v2324_v62 }
 0x2a7   :  { %v1752_v24 = vpop.f32.mrf.mxu2  ;;  %v1841_v22 = vpop.f32.mrf.mxu3 }
 0x2a8   :  { %v1753_v49 = vadd.f32 %v1752_v24, %v1664_v5  ;;  %v1853_v14 = vpop.f32.mrf.mxu0  ;;  %v1942_v42 = vpop.f32.mrf.mxu1  ;;  %v2318_v5 = vmul.f32 0.2, %v1832_v61 }
 0x2a9   :  { %v1854_v54 = vadd.f32 %v1853_v14, %v3880_v19 }
 0x2aa   :  { %v1842_v26 = vadd.f32 %v1841_v22, %v1753_v49  ;;  %1892 = vmatmul.bf16.gmra.mxu0 %v3515_v1  ;;  %v1652_v1 = vadd.f32 %v3845_v51, %v1563_v8  ;;  %v2386_v51 = vsel %vm2258_vm15, %v1837_v33, %v2322_v29 }
 0x2ab   :  { %v1943_v16 = vadd.f32 %v1942_v42, %v1854_v54  ;;  %1981 = vmatmul.bf16.gmra.mxu1 %v3517_v11  ;;  %v2421_v41 = vpack.c.bf16 %v2386_v51, %v2384_v52  ;;  %v2382_v42 = vsel %vm2254_vm2, %v1832_v61, %v2318_v5 }
 0x2ac   :  { %vm2262_vm14 = vcmp.gt.f32.partialorder %v1842_v26, 0.0  ;;  %v2326_v48 = vmul.f32 0.2, %v1842_v26  ;;  %2070 = vmatmul.bf16.gmra.mxu2 %v3526_v45  ;;  %2159 = vmatmul.bf16.gmra.mxu3 %v3529_v50  ;;  %v1741_v50 = vadd.f32 %v3855_v56, %v1652_v1 }
 0x2ae   :  { %v2390_v57 = vsel %vm2262_vm14, %v1842_v26, %v2326_v48  ;;  %v1830_v10 = vadd.f32 %v3859_v55, %v1741_v50  ;;  %v4224_v50 = vld [vmem:[#allocation42_spill] sm:$0xff] }
 0x2af   :  { %v2423_v46 = vpack.c.bf16 %v2390_v57, %v2388_v31  ;;  %v2031_v36 = vpop.f32.mrf.mxu2  ;;  %v2120_v7 = vpop.f32.mrf.mxu3 }
 0x2b0   :  { %v2032_v28 = vadd.f32 %v2031_v36, %v1943_v16  ;;  %v1855_v63 = vpop.f32.mrf.mxu0  ;;  %v1944_v45 = vpop.f32.mrf.mxu1  ;;  %v2316_v22 = vmul.f32 0.2, %v1830_v10  ;;  %vm2252_vm3 = vcmp.gt.f32.partialorder %v1830_v10, 0.0 }
 0x2b1   :  { %v1856_v11 = vadd.f32 %v1855_v63, %v3880_v19  ;;  %2464 = vmatpush.bf16.xpose.msrb.mxu2 %v2423_v46 }
 0x2b2   :  { %v2121_v2 = vadd.f32 %v2120_v7, %v2032_v28  ;;  %v2380_v17 = vsel %vm2252_vm3, %v1830_v10, %v2316_v22  ;;  %v4221_v7 = vld [vmem:[#allocation39_spill] sm:$0xff] }
 0x2b3   :  { %v1945_v59 = vadd.f32 %v1944_v45, %v1856_v11  ;;  %v2419_v16 = vpack.c.bf16 %v2382_v42, %v2380_v17  ;;  %v4222_v11 = vld [vmem:[#allocation40_spill] sm:$0xff]  ;;  %v4223_v45 = vld [vmem:[#allocation41_spill] sm:$0xff] }
 0x2b4   :  { %v2265_v14 = vmul.f32 0.2, %v2121_v2  ;;  %vm2201_vm4 = vcmp.gt.f32.partialorder %v2121_v2, 0.0 }
 0x2b6   :  { %v3901_v18 = vsel %vm2201_vm4, %v2121_v2, %v2265_v14 }
 0x2b7   :  { %v2033_v34 = vpop.f32.mrf.mxu2  ;;  %v2122_v47 = vpop.f32.mrf.mxu3 }
 0x2b8   :  { %v2034_v24 = vadd.f32 %v2033_v34, %v1945_v59  ;;  %v1858_v15 = vpop.f32.mrf.mxu0  ;;  %v1947_v56 = vpop.f32.mrf.mxu1 }
 0x2b9   :  { %v1859_v49 = vadd.f32 %v1858_v15, %v3880_v19  ;;  %2465 = vmatpush.bf16.xpose.msrb.mxu2 %v2421_v41 }
 0x2ba   :  { %v2123_v54 = vadd.f32 %v2122_v47, %v2034_v24  ;;  %1897 = vmatmul.bf16.gmra.mxu0 %v3535_v27 }
 0x2bb   :  { %v1948_v32 = vadd.f32 %v1947_v56, %v1859_v49  ;;  %1986 = vmatmul.bf16.gmra.mxu1 %v3537_v4 }
 0x2bc   :  { %vm2203_vm5 = vcmp.gt.f32.partialorder %v2123_v54, 0.0  ;;  %v2267_v55 = vmul.f32 0.2, %v2123_v54  ;;  %2075 = vmatmul.bf16.gmra.mxu2 %v3546_v6  ;;  %2164 = vmatmul.bf16.gmra.mxu3 %v3549_v23 }
 0x2be   :  { %v3903_v62 = vsel %vm2203_vm5, %v2123_v54, %v2267_v55  ;;  %v4225_v54 = vld [vmem:[#allocation43_spill] sm:$0xff] }
 0x2bf   :  { %v2036_v26 = vpop.f32.mrf.mxu2  ;;  %v2394_v8 = vpack.c.bf16 %v3903_v62, %v3901_v18  ;;  %v2125_v33 = vpop.f32.mrf.mxu3 }
 0x2c0   :  { %v2037_v27 = vadd.f32 %v2036_v26, %v1948_v32  ;;  %v1860_v48 = vpop.f32.mrf.mxu0  ;;  %v1949_v58 = vpop.f32.mrf.mxu1  ;;  %v4228_v32 = vld [vmem:[#allocation46_spill] sm:$0xff] }
 0x2c1   :  { %v1861_v4 = vadd.f32 %v1860_v48, %v3880_v19  ;;  %2466 = vmatpush.bf16.xpose.msrb.mxu2 %v2419_v16 }
 0x2c2   :  { %v2126_v6 = vadd.f32 %v2125_v33, %v2037_v27 }
 0x2c3   :  { %v1950_v20 = vadd.f32 %v1949_v58, %v1861_v4 }
 0x2c4   :  { %v2269_v12 = vmul.f32 0.2, %v2126_v6  ;;  %vm2205_vm6 = vcmp.gt.f32.partialorder %v2126_v6, 0.0 }
 0x2c6   :  { %v3916_v44 = vsel %vm2205_vm6, %v2126_v6, %v2269_v12  ;;  %v4232_v12 = vld [vmem:[#allocation50_spill] sm:$0xff] }
 0x2c7   :  { %v2038_v23 = vpop.f32.mrf.mxu2  ;;  %v2127_v57 = vpop.f32.mrf.mxu3 }
 0x2c8   :  { %v2039_v31 = vadd.f32 %v2038_v23, %v1950_v20  ;;  %v1863_v46 = vpop.f32.mrf.mxu0  ;;  %v1952_v1 = vpop.f32.mrf.mxu1 }
 0x2c9   :  { %v1864_v36 = vadd.f32 %v1863_v46, %v3880_v19  ;;  %2467 = vmatpush.bf16.xpose.msrb.mxu2 %v2417_v40 }
 0x2ca   :  { %v2128_v29 = vadd.f32 %v2127_v57, %v2039_v31  ;;  %1902 = vmatmul.bf16.gmra.mxu0 %v4221_v7 }
 0x2cb   :  { %v1953_v28 = vadd.f32 %v1952_v1, %v1864_v36  ;;  %1991 = vmatmul.bf16.gmra.mxu1 %v4222_v11  ;;  %v4229_v1 = vld [vmem:[#allocation47_spill] sm:$0xff] }
 0x2cc   :  { %vm2207_vm7 = vcmp.gt.f32.partialorder %v2128_v29, 0.0  ;;  %v2271_v63 = vmul.f32 0.2, %v2128_v29  ;;  %2080 = vmatmul.bf16.gmra.mxu2 %v4223_v45  ;;  %2169 = vmatmul.bf16.gmra.mxu3 %v4224_v50 }
 0x2ce   :  { %v3918_v2 = vsel %vm2207_vm7, %v2128_v29, %v2271_v63 }
 0x2cf   :  { %v2041_v60 = vpop.f32.mrf.mxu2  ;;  %v2396_v35 = vpack.c.bf16 %v3918_v2, %v3916_v44  ;;  %v2130_v59 = vpop.f32.mrf.mxu3 }
 0x2d0   :  { %v2042_v40 = vadd.f32 %v2041_v60, %v1953_v28  ;;  %v1865_v61 = vpop.f32.mrf.mxu0  ;;  %v1954_v10 = vpop.f32.mrf.mxu1 }
 0x2d1   :  { %v1866_v51 = vadd.f32 %v1865_v61, %v3880_v19  ;;  %2468 = vmatpush.bf16.xpose.msrb.mxu2 %v2415_v3  ;;  %v4227_v3 = vld [vmem:[#allocation45_spill] sm:$0xff]  ;;  %v4233_v61 = vld [vmem:[#allocation51_spill] sm:$0xff] }
 0x2d2   :  { %v2131_v52 = vadd.f32 %v2130_v59, %v2042_v40 }
 0x2d3   :  { %v1955_v34 = vadd.f32 %v1954_v10, %v1866_v51  ;;  %v4234_v51 = vld [vmem:[#allocation52_spill] sm:$0xff]  ;;  %v4235_v10 = vld [vmem:[#allocation53_spill] sm:$0xff] }
 0x2d4   :  { %v2273_v56 = vmul.f32 0.2, %v2131_v52  ;;  %vm2209_vm8 = vcmp.gt.f32.partialorder %v2131_v52, 0.0 }
 0x2d6   :  { %v3934_v55 = vsel %vm2209_vm8, %v2131_v52, %v2273_v56  ;;  %v4236_v52 = vld [vmem:[#allocation54_spill] sm:$0xff] }
 0x2d7   :  { %v2043_v41 = vpop.f32.mrf.mxu2  ;;  %v2132_v24 = vpop.f32.mrf.mxu3 }
 0x2d8   :  { %v2044_v5 = vadd.f32 %v2043_v41, %v1955_v34  ;;  %v1868_v47 = vpop.f32.mrf.mxu0  ;;  %v1957_v49 = vpop.f32.mrf.mxu1 }
 0x2d9   :  { %v1869_v15 = vadd.f32 %v1868_v47, %v3880_v19  ;;  %2469 = vmatpush.bf16.xpose.msrb.mxu2 %v2413_v30 }
 0x2da   :  { %v2133_v22 = vadd.f32 %v2132_v24, %v2044_v5  ;;  %1907 = vmatmul.bf16.gmra.mxu0 %v4225_v54  ;;  %v4239_v54 = vld [vmem:[#allocation57_spill] sm:$0xff] }
 0x2db   :  { %v1958_v14 = vadd.f32 %v1957_v49, %v1869_v15  ;;  %1996 = vmatmul.bf16.gmra.mxu1 %v4226_v43 }
 0x2dc   :  { %vm2211_vm9 = vcmp.gt.f32.partialorder %v2133_v22, 0.0  ;;  %v2275_v53 = vmul.f32 0.2, %v2133_v22  ;;  %2085 = vmatmul.bf16.gmra.mxu2 %v4227_v3  ;;  %2174 = vmatmul.bf16.gmra.mxu3 %v4228_v32 }
 0x2de   :  { %v3936_v42 = vsel %vm2211_vm9, %v2133_v22, %v2275_v53  ;;  %v4237_v22 = vld [vmem:[#allocation55_spill] sm:$0xff]  ;;  %v4240_v53 = vld [vmem:[#allocation58_spill] sm:$0xff] }
 0x2df   :  { %v2046_v39 = vpop.f32.mrf.mxu2  ;;  %v2398_v38 = vpack.c.bf16 %v3936_v42, %v3934_v55  ;;  %v2135_v17 = vpop.f32.mrf.mxu3 }
 0x2e0   :  { %v2047_v30 = vadd.f32 %v2046_v39, %v1958_v14  ;;  %v1870_v26 = vpop.f32.mrf.mxu0  ;;  %v1959_v27 = vpop.f32.mrf.mxu1  ;;  %v4238_v14 = vld [vmem:[#allocation56_spill] sm:$0xff] }
 0x2e1   :  { %v1871_v16 = vadd.f32 %v1870_v26, %v3880_v19  ;;  %2470 = vmatpush.bf16.xpose.msrb.mxu2 %v2411_v0  ;;  %v4231_v0 = vld [vmem:[#allocation49_spill] sm:$0xff] }
 0x2e2   :  { %v2136_v33 = vadd.f32 %v2135_v17, %v2047_v30 }
 0x2e3   :  { %v1960_v48 = vadd.f32 %v1959_v27, %v1871_v16  ;;  %v4241_v27 = vld [vmem:[#allocation59_spill] sm:$0xff] }
 0x2e4   :  { %v2277_v57 = vmul.f32 0.2, %v2136_v33  ;;  %vm2213_vm10 = vcmp.gt.f32.partialorder %v2136_v33, 0.0 }
 0x2e6   :  { %v3952_v29 = vsel %vm2213_vm10, %v2136_v33, %v2277_v57 }
 0x2e7   :  { %v2048_v4 = vpop.f32.mrf.mxu2  ;;  %v2137_v6 = vpop.f32.mrf.mxu3 }
 0x2e8   :  { %v2049_v58 = vadd.f32 %v2048_v4, %v1960_v48  ;;  %v1873_v20 = vpop.f32.mrf.mxu0  ;;  %v1962_v31 = vpop.f32.mrf.mxu1  ;;  %v4242_v48 = vld [vmem:[#allocation60_spill] sm:$0xff]  ;;  %v4243_v4 = vld [vmem:[#allocation61_spill] sm:$0xff] }
 0x2e9   :  { %v1874_v23 = vadd.f32 %v1873_v20, %v3880_v19  ;;  %2471 = vmatpush.bf16.xpose.msrb.mxu2 %v2409_v25 }
 0x2ea   :  { %v2138_v46 = vadd.f32 %v2137_v6, %v2049_v58  ;;  %1912 = vmatmul.bf16.gmra.mxu0 %v4229_v1  ;;  %v4244_v58 = vld [vmem:[#allocation62_spill] sm:$0xff] }
 0x2eb   :  { %v1963_v36 = vadd.f32 %v1962_v31, %v1874_v23  ;;  %2001 = vmatmul.bf16.gmra.mxu1 %v4230_v37 }
 0x2ec   :  { %vm2215_vm11 = vcmp.gt.f32.partialorder %v2138_v46, 0.0  ;;  %v2279_v21 = vmul.f32 0.2, %v2138_v46  ;;  %2090 = vmatmul.bf16.gmra.mxu2 %v4231_v0  ;;  %2179 = vmatmul.bf16.gmra.mxu3 %v4232_v12 }
 0x2ee   :  { %v3954_v28 = vsel %vm2215_vm11, %v2138_v46, %v2279_v21 }
 0x2ef   :  { %v2051_v13 = vpop.f32.mrf.mxu2  ;;  %v2400_v9 = vpack.c.bf16 %v3954_v28, %v3952_v29  ;;  %v2140_v7 = vpop.f32.mrf.mxu3 }
 0x2f0   :  { %v2052_v25 = vadd.f32 %v2051_v13, %v1963_v36  ;;  %v3958_v63 = vpop.f32.mrf.mxu0  ;;  %v3960_v11 = vpop.f32.mrf.mxu1 }
 0x2f2   :  { %v3962_v45 = vadd.f32 %v2140_v7, %v2052_v25 }
 0x2f4   :  { %vm2217_vm5 = vcmp.gt.f32.partialorder %v3962_v45, 0.0 }
 0x2f7   :  { %v3964_v50 = vpop.f32.mrf.mxu2  ;;  %v3966_v60 = vpop.f32.mrf.mxu3 }
 0x2f8   :  { %v1878_v40 = vpop.f32.mrf.mxu0  ;;  %v3968_v59 = vpop.f32.mrf.mxu1 }
 0x2fa   :  { %1917 = vmatmul.bf16.gmra.mxu0 %v4233_v61 }
 0x2fb   :  { %2006 = vmatmul.bf16.gmra.mxu1 %v4234_v51 }
 0x2fc   :  { %2095 = vmatmul.bf16.gmra.mxu2 %v4235_v10  ;;  %2184 = vmatmul.bf16.gmra.mxu3 %v4236_v52 }
 0x2ff   :  { %v3974_v34 = vpop.f32.mrf.mxu2  ;;  %v3976_v41 = vpop.f32.mrf.mxu3 }
 0x300   :  { %v1880_v5 = vpop.f32.mrf.mxu0  ;;  %v1969_v24 = vpop.f32.mrf.mxu1 }
 0x307   :  { %v2058_v47 = vpop.f32.mrf.mxu2  ;;  %v3978_v15 = vpop.f32.mrf.mxu3 }
 0x308   :  { %v1883_v49 = vpop.f32.mrf.mxu0  ;;  %v1972_v56 = vpop.f32.mrf.mxu1 }
 0x309   :  { %v1884_v21 = vadd.f32 %v1883_v49, %v3880_v19  ;;  %v1879_v49 = vadd.f32 %v1878_v40, %v3880_v19 }
 0x30a   :  { %1922 = vmatmul.bf16.gmra.mxu0 %v4237_v22 }
 0x30b   :  { %2011 = vmatmul.bf16.gmra.mxu1 %v4238_v14  ;;  %v1973_v25 = vadd.f32 %v1972_v56, %v1884_v21  ;;  %v1881_v14 = vadd.f32 %v1880_v5, %v3880_v19 }
 0x30c   :  { %2100 = vmatmul.bf16.gmra.mxu2 %v4239_v54  ;;  %2189 = vmatmul.bf16.gmra.mxu3 %v4240_v53 }
 0x30d   :  { %v1970_v56 = vadd.f32 %v1969_v24, %v1881_v14  ;;  %v1876_v24 = vadd.f32 %v3958_v63, %v3880_v19 }
 0x30f   :  { %v2061_v43 = vpop.f32.mrf.mxu2  ;;  %v2150_v3 = vpop.f32.mrf.mxu3 }
 0x310   :  { %v1885_v32 = vpop.f32.mrf.mxu0  ;;  %v1974_v39 = vpop.f32.mrf.mxu1  ;;  %v2062_v54 = vadd.f32 %v2061_v43, %v1973_v25 }
 0x311   :  { %v1886_v46 = vadd.f32 %v1885_v32, %v3880_v19 }
 0x313   :  { %v1975_v37 = vadd.f32 %v1974_v39, %v1886_v46 }
 0x317   :  { %v2063_v30 = vpop.f32.mrf.mxu2  ;;  %v2152_v17 = vpop.f32.mrf.mxu3 }
 0x318   :  { %v1888_v26 = vpop.f32.mrf.mxu0  ;;  %v1977_v16 = vpop.f32.mrf.mxu1  ;;  %v2064_v7 = vadd.f32 %v2063_v30, %v1975_v37  ;;  %v2151_v30 = vadd.f32 %v2150_v3, %v2062_v54 }
 0x319   :  { %v1889_v33 = vadd.f32 %v1888_v26, %v3880_v19 }
 0x31a   :  { %1927 = vmatmul.bf16.gmra.mxu0 %v4241_v27  ;;  %v2153_v39 = vadd.f32 %v2152_v17, %v2064_v7  ;;  %v2289_v17 = vmul.f32 0.2, %v2151_v30  ;;  %vm2225_vm14 = vcmp.gt.f32.partialorder %v2151_v30, 0.0 }
 0x31b   :  { %2016 = vmatmul.bf16.gmra.mxu1 %v4242_v48  ;;  %v1978_v20 = vadd.f32 %v1977_v16, %v1889_v33 }
 0x31c   :  { %2105 = vmatmul.bf16.gmra.mxu2 %v4243_v4  ;;  %2194 = vmatmul.bf16.gmra.mxu3 %v4244_v58  ;;  %v1968_v58 = vadd.f32 %v3968_v59, %v1879_v49  ;;  %v2291_v5 = vmul.f32 0.2, %v2153_v39  ;;  %vm2227_vm13 = vcmp.gt.f32.partialorder %v2153_v39, 0.0  ;;  %v2353_v21 = vsel %vm2225_vm14, %v2151_v30, %v2289_v17 }
 0x31e   :  { %v2057_v3 = vadd.f32 %v3974_v34, %v1968_v58 }
 0x31f   :  { %v2066_v6 = vpop.f32.mrf.mxu2  ;;  %v2155_v23 = vpop.f32.mrf.mxu3 }
 0x320   :  { %v1890_v31 = vpop.f32.mrf.mxu0  ;;  %v1979_v57 = vpop.f32.mrf.mxu1  ;;  %v2067_v36 = vadd.f32 %v2066_v6, %v1978_v20  ;;  %v2059_v6 = vadd.f32 %v2058_v47, %v1970_v56  ;;  %v2355_v47 = vsel %vm2227_vm13, %v2153_v39, %v2291_v5 }
 0x321   :  { %v1891_v1 = vadd.f32 %v1890_v31, %v3880_v19 }
 0x322   :  { %v2156_v0 = vadd.f32 %v2155_v23, %v2067_v36  ;;  %v2148_v59 = vadd.f32 %v3978_v15, %v2059_v6  ;;  %v1965_v36 = vadd.f32 %v3960_v11, %v1876_v24 }
 0x323   :  { %v1980_v12 = vadd.f32 %v1979_v57, %v1891_v1  ;;  %v2146_v1 = vadd.f32 %v3976_v41, %v2057_v3 }
 0x324   :  { %v2293_v53 = vmul.f32 0.2, %v2156_v0  ;;  %vm2229_vm12 = vcmp.gt.f32.partialorder %v2156_v0, 0.0  ;;  %vm2223_vm15 = vcmp.gt.f32.partialorder %v2148_v59, 0.0 }
 0x325   :  { %v2285_v15 = vmul.f32 0.2, %v2146_v1  ;;  %vm2221_vm1 = vcmp.gt.f32.partialorder %v2146_v1, 0.0 }
 0x326   :  { %v2357_v27 = vsel %vm2229_vm12, %v2156_v0, %v2293_v53  ;;  %v2406_v0 = vpack.c.bf16 %v2355_v47, %v2353_v21 }
 0x327   :  { %v2068_v13 = vpop.f32.mrf.mxu2  ;;  %v2157_v51 = vpop.f32.mrf.mxu3 }
 0x328   :  { %v2069_v61 = vadd.f32 %v2068_v13, %v1980_v12  ;;  %v1893_v10 = vpop.f32.mrf.mxu0  ;;  %v1982_v22 = vpop.f32.mrf.mxu1  ;;  %v2054_v12 = vadd.f32 %v3964_v50, %v1965_v36  ;;  %v2287_v13 = vmul.f32 0.2, %v2148_v59 }
 0x329   :  { %v1894_v52 = vadd.f32 %v1893_v10, %v3880_v19 }
 0x32a   :  { %v2158_v32 = vadd.f32 %v2157_v51, %v2069_v61  ;;  %v2143_v41 = vadd.f32 %v3966_v60, %v2054_v12  ;;  %v2351_v50 = vsel %vm2223_vm15, %v2148_v59, %v2287_v13 }
 0x32b   :  { %v1983_v26 = vadd.f32 %v1982_v22, %v1894_v52  ;;  %v2349_v22 = vsel %vm2221_vm1, %v2146_v1, %v2285_v15 }
 0x32c   :  { %vm2231_vm0 = vcmp.gt.f32.partialorder %v2158_v32, 0.0  ;;  %v2295_v16 = vmul.f32 0.2, %v2158_v32  ;;  %v2283_v49 = vmul.f32 0.2, %v2143_v41  ;;  %vm2219_vm4 = vcmp.gt.f32.partialorder %v2143_v41, 0.0 }
 0x32e   :  { %v2359_v33 = vsel %vm2231_vm0, %v2158_v32, %v2295_v16  ;;  %v2404_v32 = vpack.c.bf16 %v2351_v50, %v2349_v22 }
 0x32f   :  { %v2408_v48 = vpack.c.bf16 %v2359_v33, %v2357_v27  ;;  %v2071_v4 = vpop.f32.mrf.mxu2  ;;  %v2160_v20 = vpop.f32.mrf.mxu3  ;;  %v2281_v27 = vmul.f32 0.2, %v3962_v45 }
 0x330   :  { %v2072_v43 = vadd.f32 %v2071_v4, %v1983_v26  ;;  %v1895_v23 = vpop.f32.mrf.mxu0  ;;  %v1984_v40 = vpop.f32.mrf.mxu1  ;;  %v2347_v4 = vsel %vm2219_vm4, %v2143_v41, %v2283_v49 }
 0x331   :  { %v1896_v31 = vadd.f32 %v1895_v23, %v3880_v19  ;;  %2451 = vmatpush.bf16.xpose.msrb.mxu1 %v2408_v48  ;;  %v2345_v58 = vsel %vm2217_vm5, %v3962_v45, %v2281_v27 }
 0x332   :  { %v2161_v57 = vadd.f32 %v2160_v20, %v2072_v43  ;;  %v2402_v5 = vpack.c.bf16 %v2347_v4, %v2345_v58 }
 0x333   :  { %v1985_v46 = vadd.f32 %v1984_v40, %v1896_v31 }
 0x334   :  { %v2297_v51 = vmul.f32 0.2, %v2161_v57  ;;  %vm2233_vm2 = vcmp.gt.f32.partialorder %v2161_v57, 0.0 }
 0x336   :  { %v4006_v14 = vsel %vm2233_vm2, %v2161_v57, %v2297_v51 }
 0x337   :  { %v2073_v37 = vpop.f32.mrf.mxu2  ;;  %v2162_v25 = vpop.f32.mrf.mxu3 }
 0x338   :  { %v2074_v63 = vadd.f32 %v2073_v37, %v1985_v46  ;;  %v1898_v34 = vpop.f32.mrf.mxu0  ;;  %v1987_v61 = vpop.f32.mrf.mxu1 }
 0x339   :  { %v1899_v7 = vadd.f32 %v1898_v34, %v3880_v19  ;;  %2452 = vmatpush.bf16.xpose.msrb.mxu1 %v2406_v0 }
 0x33a   :  { %v2163_v10 = vadd.f32 %v2162_v25, %v2074_v63 }
 0x33b   :  { %v1988_v11 = vadd.f32 %v1987_v61, %v1899_v7 }
 0x33c   :  { %vm2235_vm3 = vcmp.gt.f32.partialorder %v2163_v10, 0.0  ;;  %v2299_v52 = vmul.f32 0.2, %v2163_v10 }
 0x33e   :  { %v4008_v54 = vsel %vm2235_vm3, %v2163_v10, %v2299_v52 }
 0x33f   :  { %v2076_v53 = vpop.f32.mrf.mxu2  ;;  %v2410_v26 = vpack.c.bf16 %v4008_v54, %v4006_v14  ;;  %v2165_v16 = vpop.f32.mrf.mxu3 }
 0x340   :  { %v2077_v39 = vadd.f32 %v2076_v53, %v1988_v11  ;;  %v1900_v56 = vpop.f32.mrf.mxu0  ;;  %v1989_v30 = vpop.f32.mrf.mxu1 }
 0x341   :  { %v1901_v60 = vadd.f32 %v1900_v56, %v3880_v19  ;;  %2453 = vmatpush.bf16.xpose.msrb.mxu1 %v2404_v32 }
 0x342   :  { %v2166_v33 = vadd.f32 %v2165_v16, %v2077_v39 }
 0x343   :  { %v1990_v48 = vadd.f32 %v1989_v30, %v1901_v60 }
 0x344   :  { %v2301_v24 = vmul.f32 0.2, %v2166_v33  ;;  %vm2237_vm6 = vcmp.gt.f32.partialorder %v2166_v33, 0.0 }
 0x346   :  { %v4017_v46 = vsel %vm2237_vm6, %v2166_v33, %v2301_v24 }
 0x347   :  { %v2078_v6 = vpop.f32.mrf.mxu2  ;;  %v2167_v20 = vpop.f32.mrf.mxu3 }
 0x348   :  { %v2079_v43 = vadd.f32 %v2078_v6, %v1990_v48  ;;  %v1903_v23 = vpop.f32.mrf.mxu0  ;;  %v1992_v40 = vpop.f32.mrf.mxu1 }
 0x349   :  { %v1904_v31 = vadd.f32 %v1903_v23, %v3880_v19  ;;  %2454 = vmatpush.bf16.xpose.msrb.mxu1 %v2402_v5 }
 0x34a   :  { %v2168_v3 = vadd.f32 %v2167_v20, %v2079_v43 }
 0x34b   :  { %v1993_v17 = vadd.f32 %v1992_v40, %v1904_v31 }
 0x34c   :  { %vm2239_vm7 = vcmp.gt.f32.partialorder %v2168_v3, 0.0  ;;  %v2303_v57 = vmul.f32 0.2, %v2168_v3 }
 0x34e   :  { %v4019_v59 = vsel %vm2239_vm7, %v2168_v3, %v2303_v57 }
 0x34f   :  { %v2081_v45 = vpop.f32.mrf.mxu2  ;;  %v2412_v47 = vpack.c.bf16 %v4019_v59, %v4017_v46  ;;  %v2170_v1 = vpop.f32.mrf.mxu3 }
 0x350   :  { %v2082_v36 = vadd.f32 %v2081_v45, %v1993_v17  ;;  %v1905_v21 = vpop.f32.mrf.mxu0  ;;  %v1994_v0 = vpop.f32.mrf.mxu1 }
 0x351   :  { %v1906_v37 = vadd.f32 %v1905_v21, %v3880_v19  ;;  %2455 = vmatpush.bf16.xpose.msrb.mxu1 %v2400_v9 }
 0x352   :  { %v2171_v12 = vadd.f32 %v2170_v1, %v2082_v36 }
 0x353   :  { %v1995_v13 = vadd.f32 %v1994_v0, %v1906_v37 }
 0x354   :  { %v2305_v51 = vmul.f32 0.2, %v2171_v12  ;;  %vm2241_vm8 = vcmp.gt.f32.partialorder %v2171_v12, 0.0 }
 0x356   :  { %v4031_v28 = vsel %vm2241_vm8, %v2171_v12, %v2305_v51 }
 0x357   :  { %v2083_v63 = vpop.f32.mrf.mxu2  ;;  %v2172_v34 = vpop.f32.mrf.mxu3 }
 0x358   :  { %v2084_v25 = vadd.f32 %v2083_v63, %v1995_v13  ;;  %v1908_v7 = vpop.f32.mrf.mxu0  ;;  %v1997_v15 = vpop.f32.mrf.mxu1 }
 0x359   :  { %v1909_v61 = vadd.f32 %v1908_v7, %v3880_v19  ;;  %2456 = vmatpush.bf16.xpose.msrb.mxu1 %v2398_v38 }
 0x35a   :  { %v2173_v10 = vadd.f32 %v2172_v34, %v2084_v25 }
 0x35b   :  { %v1998_v11 = vadd.f32 %v1997_v15, %v1909_v61 }
 0x35c   :  { %vm2243_vm9 = vcmp.gt.f32.partialorder %v2173_v10, 0.0  ;;  %v2307_v29 = vmul.f32 0.2, %v2173_v10 }
 0x35e   :  { %v4033_v9 = vsel %vm2243_vm9, %v2173_v10, %v2307_v29 }
 0x35f   :  { %v2086_v41 = vpop.f32.mrf.mxu2  ;;  %v2414_v52 = vpack.c.bf16 %v4033_v9, %v4031_v28  ;;  %v2175_v22 = vpop.f32.mrf.mxu3 }
 0x360   :  { %v2087_v50 = vadd.f32 %v2086_v41, %v1998_v11  ;;  %v1910_v53 = vpop.f32.mrf.mxu0  ;;  %v1999_v42 = vpop.f32.mrf.mxu1 }
 0x361   :  { %v1911_v55 = vadd.f32 %v1910_v53, %v3880_v19  ;;  %2457 = vmatpush.bf16.xpose.msrb.mxu1 %v2396_v35 }
 0x362   :  { %v2176_v38 = vadd.f32 %v2175_v22, %v2087_v50 }
 0x363   :  { %v2000_v32 = vadd.f32 %v1999_v42, %v1911_v55 }
 0x364   :  { %v2309_v27 = vmul.f32 0.2, %v2176_v38  ;;  %vm2245_vm10 = vcmp.gt.f32.partialorder %v2176_v38, 0.0 }
 0x366   :  { %v4045_v2 = vsel %vm2245_vm10, %v2176_v38, %v2309_v27 }
 0x367   :  { %v2088_v49 = vpop.f32.mrf.mxu2  ;;  %v2177_v16 = vpop.f32.mrf.mxu3 }
 0x368   :  { %v2089_v39 = vadd.f32 %v2088_v49, %v2000_v32  ;;  %v1913_v56 = vpop.f32.mrf.mxu0  ;;  %v2002_v30 = vpop.f32.mrf.mxu1 }
 0x369   :  { %v1914_v60 = vadd.f32 %v1913_v56, %v3880_v19  ;;  %2458 = vmatpush.bf16.xpose.msrb.mxu1 %v2394_v8 }
 0x36a   :  { %v2178_v33 = vadd.f32 %v2177_v16, %v2089_v39 }
 0x36b   :  { %v2003_v48 = vadd.f32 %v2002_v30, %v1914_v60 }
 0x36c   :  { %vm2247_vm11 = vcmp.gt.f32.partialorder %v2178_v33, 0.0  ;;  %v2311_v44 = vmul.f32 0.2, %v2178_v33 }
 0x36e   :  { %v4047_v35 = vsel %vm2247_vm11, %v2178_v33, %v2311_v44 }
 0x36f   :  { %v2091_v4 = vpop.f32.mrf.mxu2  ;;  %v2416_v58 = vpack.c.bf16 %v4047_v35, %v4045_v2  ;;  %v2180_v5 = vpop.f32.mrf.mxu3 }
 0x370   :  { %v2092_v6 = vadd.f32 %v2091_v4, %v2003_v48  ;;  %v1915_v43 = vpop.f32.mrf.mxu0  ;;  %v2004_v62 = vpop.f32.mrf.mxu1 }
 0x371   :  { %v1916_v18 = vadd.f32 %v1915_v43, %v3880_v19 }
 0x372   :  { %v2181_v8 = vadd.f32 %v2180_v5, %v2092_v6 }
 0x373   :  { %v2005_v20 = vadd.f32 %v2004_v62, %v1916_v18 }
 0x374   :  { %v2313_v17 = vmul.f32 0.2, %v2181_v8  ;;  %vm2249_vm12 = vcmp.gt.f32.partialorder %v2181_v8, 0.0 }
 0x376   :  { %v4052_v36 = vsel %vm2249_vm12, %v2181_v8, %v2313_v17  ;;  %vm2531_vm12 = vcmask 1040384  }
 0x377   :  { %v2093_v23 = vpop.f32.mrf.mxu2  ;;  %v2182_v40 = vpop.f32.mrf.mxu3 }
 0x378   :  { %v2094_v31 = vadd.f32 %v2093_v23, %v2005_v20  ;;  %v1918_v24 = vpop.f32.mrf.mxu0  ;;  %v2007_v3 = vpop.f32.mrf.mxu1 }
 0x379   :  { %v1919_v8 = vadd.f32 %v1918_v24, %v3880_v19 }
 0x37a   :  { %v2183_v57 = vadd.f32 %v2182_v40, %v2094_v31 }
 0x37c   :  { %vm2251_vm0 = vcmp.gt.f32.partialorder %v2183_v57, 0.0  ;;  %v2315_v45 = vmul.f32 0.2, %v2183_v57 }
 0x37e   :  { %v4054_v1 = vsel %vm2251_vm0, %v2183_v57, %v2315_v45 }
 0x37f   :  { %v2096_v21 = vpop.f32.mrf.mxu2  ;;  %v2418_v37 = vpack.c.bf16 %v4054_v1, %v4052_v36  ;;  %v2185_v0 = vpop.f32.mrf.mxu3 }
 0x380   :  { %v1920_v12 = vpop.f32.mrf.mxu0  ;;  %v2009_v13 = vpop.f32.mrf.mxu1 }
 0x381   :  { %v1921_v5 = vadd.f32 %v1920_v12, %v3880_v19 }
 0x383   :  { %v2010_v31 = vadd.f32 %v2009_v13, %v1921_v5 }
 0x387   :  { %v2098_v63 = vpop.f32.mrf.mxu2  ;;  %v2187_v25 = vpop.f32.mrf.mxu3 }
 0x388   :  { %v1923_v34 = vpop.f32.mrf.mxu0  ;;  %v2012_v7 = vpop.f32.mrf.mxu1 }
 0x389   :  { %v1924_v16 = vadd.f32 %v1923_v34, %v3880_v19  ;;  %v2008_v34 = vadd.f32 %v2007_v3, %v1919_v8 }
 0x38b   :  { %v2013_v48 = vadd.f32 %v2012_v7, %v1924_v16  ;;  %v2099_v7 = vadd.f32 %v2098_v63, %v2010_v31  ;;  %v2097_v12 = vadd.f32 %v2096_v21, %v2008_v34  ;;  %v2392_v63 = vld [vmem:[%s4096_s5] sm:$0x3]  ;;  %s3181_s5 = smov [#allocation11]  }
 0x38c   :  { %2433 = vst [vmem:[#allocation1] ss:$9 sm:$0xff] %v2392_v63  ;;  %s2544_s27 = sshll.u32 %s3181_s5, 4  ;;  %s2545_s27 = int_to_ptr.vmem [resolvable:$true] %s2544_s27 }
 0x38f   :  { %v2101_v61 = vpop.f32.mrf.mxu2  ;;  %v2190_v15 = vpop.f32.mrf.mxu3 }
 0x390   :  { %v1925_v51 = vpop.f32.mrf.mxu0  ;;  %v2014_v10 = vpop.f32.mrf.mxu1  ;;  %v2102_v43 = vadd.f32 %v2101_v61, %v2013_v48 }
 0x391   :  { %v1926_v32 = vadd.f32 %v1925_v51, %v3880_v19 }
 0x392   :  { %v2191_v40 = vadd.f32 %v2190_v15, %v2102_v43 }
 0x393   :  { %v2015_v60 = vadd.f32 %v2014_v10, %v1926_v32  ;;  %v2188_v10 = vadd.f32 %v2187_v25, %v2099_v7  ;;  %v2434_v21 = vld [vmem:[#allocation1] sm:$0xff]  ;;  %v2425_v25 = vld [vmem:[#allocation2] sm:$0x1] }
 0x394   :  { %v2321_v61 = vmul.f32 0.2, %v2191_v40  ;;  %vm2257_vm1 = vcmp.gt.f32.partialorder %v2191_v40, 0.0  ;;  %2472 = vmatmul.bf16.vlgmr.msrb.gmra.mxu2 %v2434_v21  ;;  %2446 = vmatmul.bf16.vlgmr.msrb.gmra.mxu0 %v2434_v21 }
 0x395   :  { %vm2255_vm2 = vcmp.gt.f32.partialorder %v2188_v10, 0.0 }
 0x397   :  { %v2103_v11 = vpop.f32.mrf.mxu2  ;;  %v2192_v29 = vpop.f32.mrf.mxu3 }
 0x398   :  { %v1928_v41 = vpop.f32.mrf.mxu0  ;;  %v2017_v50 = vpop.f32.mrf.mxu1  ;;  %v2104_v44 = vadd.f32 %v2103_v11, %v2015_v60 }
 0x399   :  { %v1929_v22 = vadd.f32 %v1928_v41, %v3880_v19  ;;  %v2186_v41 = vadd.f32 %v2185_v0, %v2097_v12  ;;  %v2435_v0 = vld [vmem:[#allocation1 + $0x9] sm:$0xff] }
 0x39a   :  { %v2193_v20 = vadd.f32 %v2192_v29, %v2104_v44  ;;  %v2319_v29 = vmul.f32 0.2, %v2188_v10  ;;  %2459 = vmatmul.bf16.vlgmr.msrb.gmra.mxu1 %v2435_v0 }
 0x39b   :  { %v2018_v55 = vadd.f32 %v2017_v50, %v1929_v22  ;;  %v2317_v13 = vmul.f32 0.2, %v2186_v41  ;;  %vm2253_vm3 = vcmp.gt.f32.partialorder %v2186_v41, 0.0  ;;  %v3180_v22 = vmov 0  }
 0x39c   :  { %v2323_v51 = vmul.f32 0.2, %v2193_v20  ;;  %vm2259_vm15 = vcmp.gt.f32.partialorder %v2193_v20, 0.0  ;;  %v2383_v15 = vsel %vm2255_vm2, %v2188_v10, %v2319_v29  ;;  %3034 = vset.pattern.permute.xlu0 %v3180_v22 }
 0x39d   :  { %v2381_v50 = vsel %vm2253_vm3, %v2186_v41, %v2317_v13  ;;  %2428 = vperm.xlu0 %3034, %v2425_v25  }
 0x39e   :  { %v2387_v11 = vsel %vm2259_vm15, %v2193_v20, %v2323_v51  ;;  %v2420_v3 = vpack.c.bf16 %v2383_v15, %v2381_v50 }
 0x39f   :  { %v2106_v53 = vpop.f32.mrf.mxu2  ;;  %v2195_v42 = vpop.f32.mrf.mxu3 }
 0x3a0   :  { %v1930_v38 = vpop.f32.mrf.mxu0  ;;  %v2107_v49 = vadd.f32 %v2106_v53, %v2018_v55  ;;  %v2019_v56 = vpop.f32.mrf.mxu1 }
 0x3a1   :  { %v1931_v39 = vadd.f32 %v1930_v38, %v3880_v19  ;;  %v2385_v19 = vsel %vm2257_vm1, %v2191_v40, %v2321_v61 }
 0x3a2   :  { %v2196_v30 = vadd.f32 %v2195_v42, %v2107_v49  ;;  %v2422_v24 = vpack.c.bf16 %v2387_v11, %v2385_v19 }
 0x3a3   :  { %v2020_v27 = vadd.f32 %v2019_v56, %v1931_v39 }
 0x3a4   :  { %v2325_v18 = vmul.f32 0.2, %v2196_v30  ;;  %vm2261_vm13 = vcmp.gt.f32.partialorder %v2196_v30, 0.0 }
 0x3a6   :  { %v2389_v17 = vsel %vm2261_vm13, %v2196_v30, %v2325_v18 }
 0x3a7   :  { %v2108_v33 = vpop.f32.mrf.mxu2  ;;  %v2197_v6 = vpop.f32.mrf.mxu3 }
 0x3a8   :  { %v2109_v4 = vadd.f32 %v2108_v33, %v2020_v27 }
 0x3aa   :  { %v2198_v62 = vadd.f32 %v2197_v6, %v2109_v4 }
 0x3ac   :  { %vm2263_vm14 = vcmp.gt.f32.partialorder %v2198_v62, 0.0  ;;  %v2327_v23 = vmul.f32 0.2, %v2198_v62 }
 0x3ae   :  { %v2391_v57 = vsel %vm2263_vm14, %v2198_v62, %v2327_v23  ;;  %v2534_v62 = vlaneseq }
 0x3af   :  { %v2424_v45 = vpack.c.bf16 %v2391_v57, %v2389_v17 }
 0x3b0   :  { %vm2536_vm0 = vcmp.lt.s32.totalorder %v2534_v62, 256 }
 0x3b1   :  { %2477 = vmatpush.bf16.xpose.msrb.mxu3 %v2424_v45 }
 0x3b9   :  { %2478 = vmatpush.bf16.xpose.msrb.mxu3 %v2422_v24 }
 0x3c1   :  { %2479 = vmatpush.bf16.xpose.msrb.mxu3 %v2420_v3 }
 0x3c9   :  { %2480 = vmatpush.bf16.xpose.msrb.mxu3 %v2418_v37 }
 0x3d1   :  { %2481 = vmatpush.bf16.xpose.msrb.mxu3 %v2416_v58 }
 0x3d9   :  { %2482 = vmatpush.bf16.xpose.msrb.mxu3 %v2414_v52 }
 0x3e1   :  { %2483 = vmatpush.bf16.xpose.msrb.mxu3 %v2412_v47 }
 0x3e9   :  { %2484 = vmatpush.bf16.xpose.msrb.mxu3 %v2410_v26 }
 0x3f0   :  { %2485 = vmatmul.bf16.vlgmr.msrb.gmra.mxu3 %v2435_v0 }
 0x40f   :  { %v2429_v53 = vpop.permute.xlu0 %2428 }
 0x410   :  { %v2431_v55 = vperm.slane %v2429_v53, 0 }
 0x411   :  { %v2447_v36 = vpop.f32.mrf.mxu0 }
 0x412   :  { %v2448_v42 = vadd.f32 %v2447_v36, %v2431_v55 }
 0x417   :  { %v2460_v1 = vpop.f32.mrf.mxu1  ;;  %v2473_v2 = vpop.f32.mrf.mxu2 }
 0x418   :  { %v2461_v28 = vadd.f32 %v2460_v1, %v2448_v42  ;;  %v2474_v46 = vadd.f32 %v2473_v2, %v2431_v55 }
 0x419   :  { %v2449_v35 = vpop.f32.mrf.mxu0 }
 0x41a   :  { %v2942_v9 = vmul.f32 -1.442695, %v2461_v28 }
 0x41c   :  { %3035 = vpow2.f32 %v2942_v9 }
 0x41f   :  { %v2462_v58 = vpop.f32.mrf.mxu1  ;;  %v2475_v37 = vpop.f32.mrf.mxu2 }
 0x422   :  { %v3036_v52 = vpop.eup %3035 }
 0x423   :  { %v2496_v59 = vadd.f32 1.0, %v3036_v52 }
 0x425   :  { %3037 = vrcp.f32 %v2496_v59  ;;  %vm2503_vm4 = vweird.f32 %v2496_v59  ;;  %v2509_v48 = vand.u32 2147483648, %v2496_v59  ;;  %v2507_v6 = vand.u32 2147483647, %v2496_v59 }
 0x427   :  { %v2510_v8 = vor.u32 1.1754944e-38, %v2509_v48  ;;  %vm2508_vm10 = vcmp.eq.f32.partialorder %v2507_v6, 8.507059e+37 }
 0x42b   :  { %v3038_v26 = vpop.eup %3037 }
 0x42c   :  { %v2499_v39 = vmul.f32 %v3038_v26, %v2496_v59  ;;  %vm2504_vm5 = vweird.f32 %v3038_v26 }
 0x42d   :  { %vm4082_vm7 = vmor %vm2503_vm4, %vm2504_vm5 }
 0x42e   :  { %v2500_v16 = vsub.f32 1.0, %v2499_v39 }
 0x430   :  { %v2501_v60 = vmul.f32 %v3038_v26, %v2500_v16 }
 0x432   :  { %v2502_v33 = vadd.f32 %v3038_v26, %v2501_v60 }
 0x434   :  { %v2506_v23 = vsel %vm4082_vm7, %v3038_v26, %v2502_v33 }
 0x435   :  { %v2511_v57 = vsel %vm2508_vm10, %v2510_v8, %v2506_v23 }
 0x473   :  { %v2486_v47 = vpop.f32.mrf.mxu3 }
 0x474   :  { %v2487_v38 = vadd.f32 %v2486_v47, %v2474_v46 }
 0x476   :  { %v2943_v14 = vmul.f32 -1.442695, %v2487_v38 }
 0x478   :  { %3039 = vpow2.f32 %v2943_v14 }
 0x47b   :  { %v2488_v54 = vpop.f32.mrf.mxu3 }
 0x47e   :  { %v3040_v32 = vpop.eup %3039 }
 0x47f   :  { %v2497_v49 = vadd.f32 1.0, %v3040_v32 }
 0x481   :  { %3041 = vrcp.f32 %v2497_v49  ;;  %v2524_v44 = vand.u32 2147483648, %v2497_v49  ;;  %v2522_v5 = vand.u32 2147483647, %v2497_v49  ;;  %vm2518_vm8 = vweird.f32 %v2497_v49 }
 0x483   :  { %v2525_v20 = vor.u32 1.1754944e-38, %v2524_v44  ;;  %vm2523_vm11 = vcmp.eq.f32.partialorder %v2522_v5, 8.507059e+37 }
 0x487   :  { %v3042_v56 = vpop.eup %3041 }
 0x488   :  { %v2514_v30 = vmul.f32 %v3042_v56, %v2497_v49  ;;  %vm2519_vm6 = vweird.f32 %v3042_v56 }
 0x489   :  { %vm2520_vm9 = vmor %vm2518_vm8, %vm2519_vm6 }
 0x48a   :  { %v2515_v27 = vsub.f32 1.0, %v2514_v30 }
 0x48c   :  { %v2516_v4 = vmul.f32 %v3042_v56, %v2515_v27 }
 0x48e   :  { %v2517_v18 = vadd.f32 %v3042_v56, %v2516_v4 }
 0x490   :  { %v2521_v31 = vsel %vm2520_vm9, %v3042_v56, %v2517_v18 }
 0x491   :  { %v2526_v40 = vsel %vm2523_vm11, %v2525_v20, %v2521_v31 }
 0x492   :  { %v2530_v17 = vrot.slane %v2526_v40, 7 }
 0x494   :  { %v2532_v45 = vsel %vm2531_vm12, %v2511_v57, %v2530_v17 }
 0x495   :  { %2538 = vst.msk [vmem:[#allocation11] sm:$0x3] %vm2536_vm0, %v2532_v45 }
 0x496   :  { %2549 = dma.vmem_to_hbm [thread:$0]  %s2545_s27, 32, %s2547_s30, [#allocation5]  }
 0x497   :  { %3170 = dma.done.wait [#allocation5], 32  }
 0x498   :  { %3171 = vsyncadd [#allocation5], 4294967264 }
 0x499   :  { %2554 = vsyncpa [#allocation4], 1 }
 0x49a   :  { %2555 = vsyncpa [#allocation7], 1 }
 0x49b   :  { %2556 = vsyncpa [#allocation10], 1 }
 0x49c   :  { %2557 = vsyncpa [#allocation5], 1 }

</bundles_post_ra>
